<compile_context>
chip_gen: v6e
topology: v6e:2x2x1
jax: 0.10.0
libtpu: 0.0.40
codegen_flags: <defaults>
</compile_context>

<pallas_src>
import functools

import jax
import jax.numpy as jnp
from jax.experimental import pallas as pl
from jax.experimental.pallas import tpu as pltpu


def _round_up(a: int, b: int) -> int:
    return ((a + b - 1) // b) * b


def _cdiv(a: int, b: int) -> int:
    return (a + b - 1) // b


# ----------------------------- Pallas kernel --------------------------------
def _hebbian_conv_kernel(x_ref, w_ref, b_ref, o_ref, *, kh, kw, sh, sw, tr, ow_pad):
    """Fused im2col + GEMM + bias + ReLU for TR output rows of one image.

    x_ref: (1, H_pad, W_pad, Cp)   resident padded NHWC image (compute dtype)
    w_ref: (KH*KW, Cp, O_pad)      resident normalized weight, (i, j)-major
    b_ref: (1, O_pad)              f32 bias
    o_ref: (1, TR, OW_pad, O_pad)  NHWC output rows for this grid step
    """
    r = pl.program_id(1)
    c = x_ref.shape[-1]
    o_pad = o_ref.shape[-1]
    for t in range(tr):                                    # static unroll, tr small
        oh = r * tr + t                                    # output row index
        # All KH input rows needed for this output row (dynamic start, static size).
        rows = x_ref[0, pl.ds(oh * sh, kh), :, :]          # (KH, W_pad, Cp) from VMEM
        acc = jnp.zeros((ow_pad, o_pad), jnp.float32)
        for i in range(kh):
            for j in range(kw):
                if sw == 1:
                    lhs = rows[i, j:j + ow_pad, :]         # (OW_pad, Cp), static slice
                else:
                    lhs = jax.lax.slice(
                        rows, (i, j, 0),
                        (i + 1, j + (ow_pad - 1) * sw + 1, c),
                        (1, sw, 1))[0]                     # (OW_pad, Cp)
                acc = acc + jnp.dot(lhs, w_ref[i * kw + j],
                                    preferred_element_type=jnp.float32)  # MXU
        y = jnp.maximum(acc + b_ref[...], 0.0)             # f32 bias + ReLU epilogue
        o_ref[0, t] = y.astype(o_ref.dtype)                # lane-dense store


# ------------------------------- wrapper -------------------------------------
def _resident_spec(shape):
    """Full-array block with a constant index_map; single-buffered when the
    installed JAX supports pipeline_mode (saves a second VMEM weight copy)."""
    index_map = lambda b, r: (0,) * len(shape)
    try:
        return pl.BlockSpec(shape, index_map, pipeline_mode=pl.Buffered(1))
    except Exception:  # older JAX without pipeline_mode / Buffered
        return pl.BlockSpec(shape, index_map)


def hebbian_conv2d_forward(x, weight, bias, stride, w_nrm=True,
                           compute_dtype=jnp.bfloat16):
    """x: (N, C, H, W) f32; weight: (O, C, KH, KW); bias: (O,).
    Returns ReLU(conv2d(x, normalized weight, bias, stride)) as (N, O, OH, OW).

    compute_dtype: matmul operand dtype.  bf16 (default) halves HBM traffic for
    this memory-bound op; pass jnp.float32 for full f32 parity with PyTorch.
    """
    out_channels, in_channels, kh, kw = weight.shape
    if isinstance(stride, int):
        stride = (stride, stride)
    sh, sw = stride
    n, c, h, w = x.shape
    assert c == in_channels
    oh = (h - kh) // sh + 1
    ow = (w - kw) // sw + 1

    # ---- weight: per-filter L2 norm (once, f32), reorder to (KH*KW, C, O) ----
    w_flat = weight.reshape(out_channels, -1).astype(jnp.float32)
    if w_nrm:
        nrm = jnp.sqrt(jnp.sum(w_flat * w_flat, axis=1, keepdims=True))
        w_flat = w_flat / jnp.maximum(nrm, 1e-12)
    o_pad = _round_up(out_channels, 128)                     # lane-dense outputs
    c_pad = _round_up(in_channels, 8)                        # aligned contraction
    w_kijo = jnp.transpose(
        w_flat.reshape(out_channels, in_channels, kh, kw), (2, 3, 1, 0)
    ).reshape(kh * kw, in_channels, out_channels)
    w_p = jnp.pad(w_kijo, ((0, 0), (0, c_pad - in_channels),
                           (0, o_pad - out_channels))).astype(compute_dtype)
    b_p = jnp.pad(bias.astype(jnp.float32),
                  (0, o_pad - out_channels)).reshape(1, o_pad)

    # ---- tiling: TR output rows per grid step ----
    tr = max(1, min(8, 128 // (kh * kw), oh))      # keep static unroll modest
    while n * _cdiv(oh, tr) < 4 and tr > 1:        # >= 4 grid steps (2 TCs on v7x)
        tr = max(1, tr // 2)
    oh_pad = _round_up(oh, tr)
    ow_pad = _round_up(ow, 16)                     # sublane-aligned GEMM M / stores

    h_pad = max(h, (oh_pad - 1) * sh + kh)         # rows any padded oh may touch
    w_pad_ = max(w, (ow_pad - 1) * sw + kw)

    # NCHW f32 -> padded NHWC compute_dtype: one fused XLA pass over (small) x.
    x_nhwc = jnp.transpose(x, (0, 2, 3, 1)).astype(compute_dtype)
    x_p = jnp.pad(x_nhwc, ((0, 0), (0, h_pad - h), (0, w_pad_ - w),
                           (0, c_pad - in_channels)))

    grid = (n, oh_pad // tr)

    # ---- VMEM budget (generation aware: 64 MiB/TC v7x, 128 MiB v5e/v6e) ----
    esz = jnp.dtype(compute_dtype).itemsize
    sub = 32 // esz                                 # sublane packing (16 bf16 / 8 f32)
    x_blk = h_pad * _round_up(w_pad_, sub) * _round_up(c_pad, 128) * esz
    w_blk = kh * kw * _round_up(c_pad, sub) * o_pad * esz
    o_blk = tr * _round_up(ow_pad, sub) * o_pad * esz
    b_blk = 8 * o_pad * 4
    need = 2 * x_blk + w_blk + b_blk + 2 * o_blk
    try:
        vmem_cap = int(pltpu.get_tpu_info().vmem_capacity_bytes)
    except Exception:
        vmem_cap = 64 << 20                         # conservative: v7x per-TC VMEM
    vmem_limit = min(max(2 * need, 32 << 20), 100 << 20, vmem_cap - (16 << 20))
    vmem_limit = int(max(vmem_limit, need + (2 << 20)))

    cost = pl.CostEstimate(
        flops=2 * n * oh * ow * in_channels * kh * kw * out_channels,
        transcendentals=0,
        bytes_accessed=(x_p.size * esz + w_p.size * esz
                        + n * oh_pad * ow_pad * o_pad * esz),
    )

    kernel = functools.partial(_hebbian_conv_kernel, kh=kh, kw=kw, sh=sh, sw=sw,
                               tr=tr, ow_pad=ow_pad)

    y_nhwc = pl.pallas_call(
        kernel,
        out_shape=jax.ShapeDtypeStruct((n, oh_pad, ow_pad, o_pad), compute_dtype),
        grid_spec=pltpu.PrefetchScalarGridSpec(
            num_scalar_prefetch=0,
            grid=grid,
            in_specs=[
                # Image: index_map constant along the inner (row-block) axis, so
                # it is DMA'd once per batch element and reused from VMEM.
                pl.BlockSpec((1, h_pad, w_pad_, c_pad), lambda b, r: (b, 0, 0, 0)),
                _resident_spec((kh * kw, c_pad, o_pad)),     # normalized weight
                _resident_spec((1, o_pad)),                  # bias
            ],
            out_specs=pl.BlockSpec((1, tr, ow_pad, o_pad),
                                   lambda b, r: (b, r, 0, 0)),
        ),
        compiler_params=pltpu.CompilerParams(
            dimension_semantics=("parallel", "parallel"),
            vmem_limit_bytes=vmem_limit,
        ),
        cost_estimate=cost,
    )(x_p, w_p, b_p)

    # Strip padding; one fused transpose+cast pass back to NCHW f32.
    y = y_nhwc[:, :oh, :ow, :out_channels]
    # TODO(synk): return `y` (NHWC) directly when the consumer accepts NHWC --
    # the transpose below is an extra full HBM pass over the output.
    return jnp.transpose(y, (0, 3, 1, 2)).astype(x.dtype)


# -------------------------------- demo ---------------------------------------
if __name__ == "__main__":
    key = jax.random.PRNGKey(0)
    k_x, k_w = jax.random.split(key)

    # Module config (small, deterministic)
    in_channels, out_channels = 4, 8
    kernel_size, stride = 3, 1
    n, h, w = 2, 16, 16

    x = jax.random.normal(k_x, (n, in_channels, h, w), dtype=jnp.float32)

    # xavier_normal_ init: std = sqrt(2 / (fan_in + fan_out))
    fan_in = in_channels * kernel_size * kernel_size
    fan_out = out_channels * kernel_size * kernel_size
    std = (2.0 / (fan_in + fan_out)) ** 0.5
    weight = std * jax.random.normal(
        k_w, (out_channels, in_channels, kernel_size, kernel_size), dtype=jnp.float32
    )
    bias = jnp.zeros((out_channels,), dtype=jnp.float32)

    # Reference: f32 conv with the same per-filter L2-normalized weight + ReLU.
    w_flat = weight.reshape(out_channels, -1)
    w_n = (w_flat / jnp.maximum(
        jnp.sqrt(jnp.sum(w_flat * w_flat, axis=1, keepdims=True)), 1e-12)
           ).reshape(weight.shape)
    y_ref = jax.lax.conv_general_dilated(
        x, w_n, window_strides=(stride, stride), padding="VALID",
        dimension_numbers=("NCHW", "OIHW", "NCHW"))
    y_ref = jnp.maximum(y_ref + bias.reshape(1, -1, 1, 1), 0.0)

    # Default path: bf16 MXU operands, f32 accumulation.
    y = hebbian_conv2d_forward(x, weight, bias, stride, w_nrm=True)
    jax.block_until_ready(y)
    assert y.shape == (n, out_channels, h - kernel_size + 1, w - kernel_size + 1)
    assert float(jnp.max(jnp.abs(y - y_ref))) < 0.1

    # Full-f32 parity path (flag exposed per correctness feedback).
    y32 = hebbian_conv2d_forward(x, weight, bias, stride, w_nrm=True,
                                 compute_dtype=jnp.float32)
    jax.block_until_ready(y32)
    assert float(jnp.max(jnp.abs(y32 - y_ref))) < 1e-3

    print("KERNEL_OK")
</pallas_src>

<mosaic_0001>
module attributes {stable_mosaic.version = 11 : i64} {
  func.func @_hebbian_conv_kernel(%arg0: i32, %arg1: i32, %arg2: memref<1x18x18x8xbf16, #tpu.memory_space<vmem>>, %arg3: memref<9x8x128xbf16, #tpu.memory_space<vmem>>, %arg4: memref<1x128xf32, #tpu.memory_space<vmem>>, %arg5: memref<1x8x16x128xbf16, #tpu.memory_space<vmem>>) attributes {dimension_semantics = [#tpu.dimension_semantics<parallel>, #tpu.dimension_semantics<parallel>], iteration_bounds = array<i64: 2, 2>, scalar_prefetch = 0 : i64, scratch_operands = 0 : i64, tpu.core_type = #tpu.core_type<tc>, window_params = [{transform_indices = @transform_0, window_bounds = array<i64: 1, 18, 18, 8>}, {pipeline_mode = #tpu.pipeline_mode<synchronous>, transform_indices = @transform_1, window_bounds = array<i64: 9, 8, 128>}, {pipeline_mode = #tpu.pipeline_mode<synchronous>, transform_indices = @transform_2, window_bounds = array<i64: 1, 128>}, {transform_indices = @transform_3, window_bounds = array<i64: 1, 8, 16, 128>}]} {
    %c8_i32 = arith.constant 8 : i32
    %0 = arith.muli %arg1, %c8_i32 : i32
    %c0_i32 = arith.constant 0 : i32
    %1 = arith.addi %0, %c0_i32 : i32
    %c1_i32 = arith.constant 1 : i32
    %2 = arith.muli %1, %c1_i32 : i32
    %c0 = arith.constant 0 : index
    %3 = arith.index_cast %2 : i32 to index
    %c0_0 = arith.constant 0 : index
    %c0_1 = arith.constant 0 : index
    %4 = vector.load %arg2[%c0, %3, %c0_0, %c0_1] : memref<1x18x18x8xbf16, #tpu.memory_space<vmem>>, vector<1x3x18x8xbf16>
    %5 = vector.shape_cast %4 : vector<1x3x18x8xbf16> to vector<3x18x8xbf16>
    %cst = arith.constant 0.000000e+00 : f32
    %6 = vector.broadcast %cst : f32 to vector<16x128xf32>
    %7 = vector.extract_strided_slice %5 {offsets = [0, 0, 0], sizes = [1, 16, 8], strides = [1, 1, 1]} : vector<3x18x8xbf16> to vector<1x16x8xbf16>
    %8 = vector.shape_cast %7 : vector<1x16x8xbf16> to vector<16x8xbf16>
    %c0_2 = arith.constant 0 : index
    %c0_3 = arith.constant 0 : index
    %c0_4 = arith.constant 0 : index
    %9 = vector.load %arg3[%c0_2, %c0_3, %c0_4] : memref<9x8x128xbf16, #tpu.memory_space<vmem>>, vector<1x8x128xbf16>
    %10 = vector.shape_cast %9 : vector<1x8x128xbf16> to vector<8x128xbf16>
    %cst_5 = arith.constant dense<0.000000e+00> : vector<16x128xf32>
    %11 = tpu.matmul %8, %10, %cst_5 {dimension_numbers = #tpu.dot_dimension_numbers<[1], [0], [0], [1], [0, 0, 1, 1], [], []>} : vector<16x8xbf16>, vector<8x128xbf16>, vector<16x128xf32> -> vector<16x128xf32>
    %12 = arith.addf %6, %11 : vector<16x128xf32>
    %13 = vector.extract_strided_slice %5 {offsets = [0, 1, 0], sizes = [1, 16, 8], strides = [1, 1, 1]} : vector<3x18x8xbf16> to vector<1x16x8xbf16>
    %14 = vector.shape_cast %13 : vector<1x16x8xbf16> to vector<16x8xbf16>
    %c1 = arith.constant 1 : index
    %c0_6 = arith.constant 0 : index
    %c0_7 = arith.constant 0 : index
    %15 = vector.load %arg3[%c1, %c0_6, %c0_7] : memref<9x8x128xbf16, #tpu.memory_space<vmem>>, vector<1x8x128xbf16>
    %16 = vector.shape_cast %15 : vector<1x8x128xbf16> to vector<8x128xbf16>
    %cst_8 = arith.constant dense<0.000000e+00> : vector<16x128xf32>
    %17 = tpu.matmul %14, %16, %cst_8 {dimension_numbers = #tpu.dot_dimension_numbers<[1], [0], [0], [1], [0, 0, 1, 1], [], []>} : vector<16x8xbf16>, vector<8x128xbf16>, vector<16x128xf32> -> vector<16x128xf32>
    %18 = arith.addf %12, %17 : vector<16x128xf32>
    %19 = vector.extract_strided_slice %5 {offsets = [0, 2, 0], sizes = [1, 16, 8], strides = [1, 1, 1]} : vector<3x18x8xbf16> to vector<1x16x8xbf16>
    %20 = vector.shape_cast %19 : vector<1x16x8xbf16> to vector<16x8xbf16>
    %c2 = arith.constant 2 : index
    %c0_9 = arith.constant 0 : index
    %c0_10 = arith.constant 0 : index
    %21 = vector.load %arg3[%c2, %c0_9, %c0_10] : memref<9x8x128xbf16, #tpu.memory_space<vmem>>, vector<1x8x128xbf16>
    %22 = vector.shape_cast %21 : vector<1x8x128xbf16> to vector<8x128xbf16>
    %cst_11 = arith.constant dense<0.000000e+00> : vector<16x128xf32>
    %23 = tpu.matmul %20, %22, %cst_11 {dimension_numbers = #tpu.dot_dimension_numbers<[1], [0], [0], [1], [0, 0, 1, 1], [], []>} : vector<16x8xbf16>, vector<8x128xbf16>, vector<16x128xf32> -> vector<16x128xf32>
    %24 = arith.addf %18, %23 : vector<16x128xf32>
    %25 = vector.extract_strided_slice %5 {offsets = [1, 0, 0], sizes = [1, 16, 8], strides = [1, 1, 1]} : vector<3x18x8xbf16> to vector<1x16x8xbf16>
    %26 = vector.shape_cast %25 : vector<1x16x8xbf16> to vector<16x8xbf16>
    %c3 = arith.constant 3 : index
    %c0_12 = arith.constant 0 : index
    %c0_13 = arith.constant 0 : index
    %27 = vector.load %arg3[%c3, %c0_12, %c0_13] : memref<9x8x128xbf16, #tpu.memory_space<vmem>>, vector<1x8x128xbf16>
    %28 = vector.shape_cast %27 : vector<1x8x128xbf16> to vector<8x128xbf16>
    %cst_14 = arith.constant dense<0.000000e+00> : vector<16x128xf32>
    %29 = tpu.matmul %26, %28, %cst_14 {dimension_numbers = #tpu.dot_dimension_numbers<[1], [0], [0], [1], [0, 0, 1, 1], [], []>} : vector<16x8xbf16>, vector<8x128xbf16>, vector<16x128xf32> -> vector<16x128xf32>
    %30 = arith.addf %24, %29 : vector<16x128xf32>
    %31 = vector.extract_strided_slice %5 {offsets = [1, 1, 0], sizes = [1, 16, 8], strides = [1, 1, 1]} : vector<3x18x8xbf16> to vector<1x16x8xbf16>
    %32 = vector.shape_cast %31 : vector<1x16x8xbf16> to vector<16x8xbf16>
    %c4 = arith.constant 4 : index
    %c0_15 = arith.constant 0 : index
    %c0_16 = arith.constant 0 : index
    %33 = vector.load %arg3[%c4, %c0_15, %c0_16] : memref<9x8x128xbf16, #tpu.memory_space<vmem>>, vector<1x8x128xbf16>
    %34 = vector.shape_cast %33 : vector<1x8x128xbf16> to vector<8x128xbf16>
    %cst_17 = arith.constant dense<0.000000e+00> : vector<16x128xf32>
    %35 = tpu.matmul %32, %34, %cst_17 {dimension_numbers = #tpu.dot_dimension_numbers<[1], [0], [0], [1], [0, 0, 1, 1], [], []>} : vector<16x8xbf16>, vector<8x128xbf16>, vector<16x128xf32> -> vector<16x128xf32>
    %36 = arith.addf %30, %35 : vector<16x128xf32>
    %37 = vector.extract_strided_slice %5 {offsets = [1, 2, 0], sizes = [1, 16, 8], strides = [1, 1, 1]} : vector<3x18x8xbf16> to vector<1x16x8xbf16>
    %38 = vector.shape_cast %37 : vector<1x16x8xbf16> to vector<16x8xbf16>
    %c5 = arith.constant 5 : index
    %c0_18 = arith.constant 0 : index
    %c0_19 = arith.constant 0 : index
    %39 = vector.load %arg3[%c5, %c0_18, %c0_19] : memref<9x8x128xbf16, #tpu.memory_space<vmem>>, vector<1x8x128xbf16>
    %40 = vector.shape_cast %39 : vector<1x8x128xbf16> to vector<8x128xbf16>
    %cst_20 = arith.constant dense<0.000000e+00> : vector<16x128xf32>
    %41 = tpu.matmul %38, %40, %cst_20 {dimension_numbers = #tpu.dot_dimension_numbers<[1], [0], [0], [1], [0, 0, 1, 1], [], []>} : vector<16x8xbf16>, vector<8x128xbf16>, vector<16x128xf32> -> vector<16x128xf32>
    %42 = arith.addf %36, %41 : vector<16x128xf32>
    %43 = vector.extract_strided_slice %5 {offsets = [2, 0, 0], sizes = [1, 16, 8], strides = [1, 1, 1]} : vector<3x18x8xbf16> to vector<1x16x8xbf16>
    %44 = vector.shape_cast %43 : vector<1x16x8xbf16> to vector<16x8xbf16>
    %c6 = arith.constant 6 : index
    %c0_21 = arith.constant 0 : index
    %c0_22 = arith.constant 0 : index
    %45 = vector.load %arg3[%c6, %c0_21, %c0_22] : memref<9x8x128xbf16, #tpu.memory_space<vmem>>, vector<1x8x128xbf16>
    %46 = vector.shape_cast %45 : vector<1x8x128xbf16> to vector<8x128xbf16>
    %cst_23 = arith.constant dense<0.000000e+00> : vector<16x128xf32>
    %47 = tpu.matmul %44, %46, %cst_23 {dimension_numbers = #tpu.dot_dimension_numbers<[1], [0], [0], [1], [0, 0, 1, 1], [], []>} : vector<16x8xbf16>, vector<8x128xbf16>, vector<16x128xf32> -> vector<16x128xf32>
    %48 = arith.addf %42, %47 : vector<16x128xf32>
    %49 = vector.extract_strided_slice %5 {offsets = [2, 1, 0], sizes = [1, 16, 8], strides = [1, 1, 1]} : vector<3x18x8xbf16> to vector<1x16x8xbf16>
    %50 = vector.shape_cast %49 : vector<1x16x8xbf16> to vector<16x8xbf16>
    %c7 = arith.constant 7 : index
    %c0_24 = arith.constant 0 : index
    %c0_25 = arith.constant 0 : index
    %51 = vector.load %arg3[%c7, %c0_24, %c0_25] : memref<9x8x128xbf16, #tpu.memory_space<vmem>>, vector<1x8x128xbf16>
    %52 = vector.shape_cast %51 : vector<1x8x128xbf16> to vector<8x128xbf16>
    %cst_26 = arith.constant dense<0.000000e+00> : vector<16x128xf32>
    %53 = tpu.matmul %50, %52, %cst_26 {dimension_numbers = #tpu.dot_dimension_numbers<[1], [0], [0], [1], [0, 0, 1, 1], [], []>} : vector<16x8xbf16>, vector<8x128xbf16>, vector<16x128xf32> -> vector<16x128xf32>
    %54 = arith.addf %48, %53 : vector<16x128xf32>
    %55 = vector.extract_strided_slice %5 {offsets = [2, 2, 0], sizes = [1, 16, 8], strides = [1, 1, 1]} : vector<3x18x8xbf16> to vector<1x16x8xbf16>
    %56 = vector.shape_cast %55 : vector<1x16x8xbf16> to vector<16x8xbf16>
    %c8 = arith.constant 8 : index
    %c0_27 = arith.constant 0 : index
    %c0_28 = arith.constant 0 : index
    %57 = vector.load %arg3[%c8, %c0_27, %c0_28] : memref<9x8x128xbf16, #tpu.memory_space<vmem>>, vector<1x8x128xbf16>
    %58 = vector.shape_cast %57 : vector<1x8x128xbf16> to vector<8x128xbf16>
    %cst_29 = arith.constant dense<0.000000e+00> : vector<16x128xf32>
    %59 = tpu.matmul %56, %58, %cst_29 {dimension_numbers = #tpu.dot_dimension_numbers<[1], [0], [0], [1], [0, 0, 1, 1], [], []>} : vector<16x8xbf16>, vector<8x128xbf16>, vector<16x128xf32> -> vector<16x128xf32>
    %60 = arith.addf %54, %59 : vector<16x128xf32>
    %c0_30 = arith.constant 0 : index
    %c0_31 = arith.constant 0 : index
    %61 = vector.load %arg4[%c0_30, %c0_31] : memref<1x128xf32, #tpu.memory_space<vmem>>, vector<1x128xf32>
    %62 = vector.broadcast %61 : vector<1x128xf32> to vector<16x128xf32>
    %63 = arith.addf %60, %62 : vector<16x128xf32>
    %cst_32 = arith.constant 0.000000e+00 : f32
    %64 = vector.broadcast %cst_32 : f32 to vector<16x128xf32>
    %65 = arith.maximumf %63, %64 : vector<16x128xf32>
    %66 = arith.truncf %65 : vector<16x128xf32> to vector<16x128xbf16>
    %c0_33 = arith.constant 0 : index
    %c0_34 = arith.constant 0 : index
    %c0_35 = arith.constant 0 : index
    %c0_36 = arith.constant 0 : index
    %67 = vector.load %arg5[%c0_33, %c0_34, %c0_35, %c0_36] : memref<1x8x16x128xbf16, #tpu.memory_space<vmem>>, vector<1x1x16x128xbf16>
    %68 = vector.shape_cast %67 : vector<1x1x16x128xbf16> to vector<16x128xbf16>
    %69 = vector.shape_cast %66 : vector<16x128xbf16> to vector<1x1x16x128xbf16>
    tpu.vector_store %arg5[%c0_33, %c0_34, %c0_35, %c0_36], %69 {strides = array<i32>} : memref<1x8x16x128xbf16, #tpu.memory_space<vmem>>, vector<1x1x16x128xbf16>,
    %c8_i32_37 = arith.constant 8 : i32
    %70 = arith.muli %arg1, %c8_i32_37 : i32
    %c1_i32_38 = arith.constant 1 : i32
    %71 = arith.addi %70, %c1_i32_38 : i32
    %c1_i32_39 = arith.constant 1 : i32
    %72 = arith.muli %71, %c1_i32_39 : i32
    %c0_40 = arith.constant 0 : index
    %73 = arith.index_cast %72 : i32 to index
    %c0_41 = arith.constant 0 : index
    %c0_42 = arith.constant 0 : index
    %74 = vector.load %arg2[%c0_40, %73, %c0_41, %c0_42] : memref<1x18x18x8xbf16, #tpu.memory_space<vmem>>, vector<1x3x18x8xbf16>
    %75 = vector.shape_cast %74 : vector<1x3x18x8xbf16> to vector<3x18x8xbf16>
    %cst_43 = arith.constant 0.000000e+00 : f32
    %76 = vector.broadcast %cst_43 : f32 to vector<16x128xf32>
    %77 = vector.extract_strided_slice %75 {offsets = [0, 0, 0], sizes = [1, 16, 8], strides = [1, 1, 1]} : vector<3x18x8xbf16> to vector<1x16x8xbf16>
    %78 = vector.shape_cast %77 : vector<1x16x8xbf16> to vector<16x8xbf16>
    %c0_44 = arith.constant 0 : index
    %c0_45 = arith.constant 0 : index
    %c0_46 = arith.constant 0 : index
    %79 = vector.load %arg3[%c0_44, %c0_45, %c0_46] : memref<9x8x128xbf16, #tpu.memory_space<vmem>>, vector<1x8x128xbf16>
    %80 = vector.shape_cast %79 : vector<1x8x128xbf16> to vector<8x128xbf16>
    %cst_47 = arith.constant dense<0.000000e+00> : vector<16x128xf32>
    %81 = tpu.matmul %78, %80, %cst_47 {dimension_numbers = #tpu.dot_dimension_numbers<[1], [0], [0], [1], [0, 0, 1, 1], [], []>} : vector<16x8xbf16>, vector<8x128xbf16>, vector<16x128xf32> -> vector<16x128xf32>
    %82 = arith.addf %76, %81 : vector<16x128xf32>
    %83 = vector.extract_strided_slice %75 {offsets = [0, 1, 0], sizes = [1, 16, 8], strides = [1, 1, 1]} : vector<3x18x8xbf16> to vector<1x16x8xbf16>
    %84 = vector.shape_cast %83 : vector<1x16x8xbf16> to vector<16x8xbf16>
    %c1_48 = arith.constant 1 : index
    %c0_49 = arith.constant 0 : index
    %c0_50 = arith.constant 0 : index
    %85 = vector.load %arg3[%c1_48, %c0_49, %c0_50] : memref<9x8x128xbf16, #tpu.memory_space<vmem>>, vector<1x8x128xbf16>
    %86 = vector.shape_cast %85 : vector<1x8x128xbf16> to vector<8x128xbf16>
    %cst_51 = arith.constant dense<0.000000e+00> : vector<16x128xf32>
    %87 = tpu.matmul %84, %86, %cst_51 {dimension_numbers = #tpu.dot_dimension_numbers<[1], [0], [0], [1], [0, 0, 1, 1], [], []>} : vector<16x8xbf16>, vector<8x128xbf16>, vector<16x128xf32> -> vector<16x128xf32>
    %88 = arith.addf %82, %87 : vector<16x128xf32>
    %89 = vector.extract_strided_slice %75 {offsets = [0, 2, 0], sizes = [1, 16, 8], strides = [1, 1, 1]} : vector<3x18x8xbf16> to vector<1x16x8xbf16>
    %90 = vector.shape_cast %89 : vector<1x16x8xbf16> to vector<16x8xbf16>
    %c2_52 = arith.constant 2 : index
    %c0_53 = arith.constant 0 : index
    %c0_54 = arith.constant 0 : index
    %91 = vector.load %arg3[%c2_52, %c0_53, %c0_54] : memref<9x8x128xbf16, #tpu.memory_space<vmem>>, vector<1x8x128xbf16>
    %92 = vector.shape_cast %91 : vector<1x8x128xbf16> to vector<8x128xbf16>
    %cst_55 = arith.constant dense<0.000000e+00> : vector<16x128xf32>
    %93 = tpu.matmul %90, %92, %cst_55 {dimension_numbers = #tpu.dot_dimension_numbers<[1], [0], [0], [1], [0, 0, 1, 1], [], []>} : vector<16x8xbf16>, vector<8x128xbf16>, vector<16x128xf32> -> vector<16x128xf32>
    %94 = arith.addf %88, %93 : vector<16x128xf32>
    %95 = vector.extract_strided_slice %75 {offsets = [1, 0, 0], sizes = [1, 16, 8], strides = [1, 1, 1]} : vector<3x18x8xbf16> to vector<1x16x8xbf16>
    %96 = vector.shape_cast %95 : vector<1x16x8xbf16> to vector<16x8xbf16>
    %c3_56 = arith.constant 3 : index
    %c0_57 = arith.constant 0 : index
    %c0_58 = arith.constant 0 : index
    %97 = vector.load %arg3[%c3_56, %c0_57, %c0_58] : memref<9x8x128xbf16, #tpu.memory_space<vmem>>, vector<1x8x128xbf16>
    %98 = vector.shape_cast %97 : vector<1x8x128xbf16> to vector<8x128xbf16>
    %cst_59 = arith.constant dense<0.000000e+00> : vector<16x128xf32>
    %99 = tpu.matmul %96, %98, %cst_59 {dimension_numbers = #tpu.dot_dimension_numbers<[1], [0], [0], [1], [0, 0, 1, 1], [], []>} : vector<16x8xbf16>, vector<8x128xbf16>, vector<16x128xf32> -> vector<16x128xf32>
    %100 = arith.addf %94, %99 : vector<16x128xf32>
    %101 = vector.extract_strided_slice %75 {offsets = [1, 1, 0], sizes = [1, 16, 8], strides = [1, 1, 1]} : vector<3x18x8xbf16> to vector<1x16x8xbf16>
    %102 = vector.shape_cast %101 : vector<1x16x8xbf16> to vector<16x8xbf16>
    %c4_60 = arith.constant 4 : index
    %c0_61 = arith.constant 0 : index
    %c0_62 = arith.constant 0 : index
    %103 = vector.load %arg3[%c4_60, %c0_61, %c0_62] : memref<9x8x128xbf16, #tpu.memory_space<vmem>>, vector<1x8x128xbf16>
    %104 = vector.shape_cast %103 : vector<1x8x128xbf16> to vector<8x128xbf16>
    %cst_63 = arith.constant dense<0.000000e+00> : vector<16x128xf32>
    %105 = tpu.matmul %102, %104, %cst_63 {dimension_numbers = #tpu.dot_dimension_numbers<[1], [0], [0], [1], [0, 0, 1, 1], [], []>} : vector<16x8xbf16>, vector<8x128xbf16>, vector<16x128xf32> -> vector<16x128xf32>
    %106 = arith.addf %100, %105 : vector<16x128xf32>
    %107 = vector.extract_strided_slice %75 {offsets = [1, 2, 0], sizes = [1, 16, 8], strides = [1, 1, 1]} : vector<3x18x8xbf16> to vector<1x16x8xbf16>
    %108 = vector.shape_cast %107 : vector<1x16x8xbf16> to vector<16x8xbf16>
    %c5_64 = arith.constant 5 : index
    %c0_65 = arith.constant 0 : index
    %c0_66 = arith.constant 0 : index
    %109 = vector.load %arg3[%c5_64, %c0_65, %c0_66] : memref<9x8x128xbf16, #tpu.memory_space<vmem>>, vector<1x8x128xbf16>
    %110 = vector.shape_cast %109 : vector<1x8x128xbf16> to vector<8x128xbf16>
    %cst_67 = arith.constant dense<0.000000e+00> : vector<16x128xf32>
    %111 = tpu.matmul %108, %110, %cst_67 {dimension_numbers = #tpu.dot_dimension_numbers<[1], [0], [0], [1], [0, 0, 1, 1], [], []>} : vector<16x8xbf16>, vector<8x128xbf16>, vector<16x128xf32> -> vector<16x128xf32>
    %112 = arith.addf %106, %111 : vector<16x128xf32>
    %113 = vector.extract_strided_slice %75 {offsets = [2, 0, 0], sizes = [1, 16, 8], strides = [1, 1, 1]} : vector<3x18x8xbf16> to vector<1x16x8xbf16>
    %114 = vector.shape_cast %113 : vector<1x16x8xbf16> to vector<16x8xbf16>
    %c6_68 = arith.constant 6 : index
    %c0_69 = arith.constant 0 : index
    %c0_70 = arith.constant 0 : index
    %115 = vector.load %arg3[%c6_68, %c0_69, %c0_70] : memref<9x8x128xbf16, #tpu.memory_space<vmem>>, vector<1x8x128xbf16>
    %116 = vector.shape_cast %115 : vector<1x8x128xbf16> to vector<8x128xbf16>
    %cst_71 = arith.constant dense<0.000000e+00> : vector<16x128xf32>
    %117 = tpu.matmul %114, %116, %cst_71 {dimension_numbers = #tpu.dot_dimension_numbers<[1], [0], [0], [1], [0, 0, 1, 1], [], []>} : vector<16x8xbf16>, vector<8x128xbf16>, vector<16x128xf32> -> vector<16x128xf32>
    %118 = arith.addf %112, %117 : vector<16x128xf32>
    %119 = vector.extract_strided_slice %75 {offsets = [2, 1, 0], sizes = [1, 16, 8], strides = [1, 1, 1]} : vector<3x18x8xbf16> to vector<1x16x8xbf16>
    %120 = vector.shape_cast %119 : vector<1x16x8xbf16> to vector<16x8xbf16>
    %c7_72 = arith.constant 7 : index
    %c0_73 = arith.constant 0 : index
    %c0_74 = arith.constant 0 : index
    %121 = vector.load %arg3[%c7_72, %c0_73, %c0_74] : memref<9x8x128xbf16, #tpu.memory_space<vmem>>, vector<1x8x128xbf16>
    %122 = vector.shape_cast %121 : vector<1x8x128xbf16> to vector<8x128xbf16>
    %cst_75 = arith.constant dense<0.000000e+00> : vector<16x128xf32>
    %123 = tpu.matmul %120, %122, %cst_75 {dimension_numbers = #tpu.dot_dimension_numbers<[1], [0], [0], [1], [0, 0, 1, 1], [], []>} : vector<16x8xbf16>, vector<8x128xbf16>, vector<16x128xf32> -> vector<16x128xf32>
    %124 = arith.addf %118, %123 : vector<16x128xf32>
    %125 = vector.extract_strided_slice %75 {offsets = [2, 2, 0], sizes = [1, 16, 8], strides = [1, 1, 1]} : vector<3x18x8xbf16> to vector<1x16x8xbf16>
    %126 = vector.shape_cast %125 : vector<1x16x8xbf16> to vector<16x8xbf16>
    %c8_76 = arith.constant 8 : index
    %c0_77 = arith.constant 0 : index
    %c0_78 = arith.constant 0 : index
    %127 = vector.load %arg3[%c8_76, %c0_77, %c0_78] : memref<9x8x128xbf16, #tpu.memory_space<vmem>>, vector<1x8x128xbf16>
    %128 = vector.shape_cast %127 : vector<1x8x128xbf16> to vector<8x128xbf16>
    %cst_79 = arith.constant dense<0.000000e+00> : vector<16x128xf32>
    %129 = tpu.matmul %126, %128, %cst_79 {dimension_numbers = #tpu.dot_dimension_numbers<[1], [0], [0], [1], [0, 0, 1, 1], [], []>} : vector<16x8xbf16>, vector<8x128xbf16>, vector<16x128xf32> -> vector<16x128xf32>
    %130 = arith.addf %124, %129 : vector<16x128xf32>
    %c0_80 = arith.constant 0 : index
    %c0_81 = arith.constant 0 : index
    %131 = vector.load %arg4[%c0_80, %c0_81] : memref<1x128xf32, #tpu.memory_space<vmem>>, vector<1x128xf32>
    %132 = vector.broadcast %131 : vector<1x128xf32> to vector<16x128xf32>
    %133 = arith.addf %130, %132 : vector<16x128xf32>
    %cst_82 = arith.constant 0.000000e+00 : f32
    %134 = vector.broadcast %cst_82 : f32 to vector<16x128xf32>
    %135 = arith.maximumf %133, %134 : vector<16x128xf32>
    %136 = arith.truncf %135 : vector<16x128xf32> to vector<16x128xbf16>
    %c0_83 = arith.constant 0 : index
    %c1_84 = arith.constant 1 : index
    %c0_85 = arith.constant 0 : index
    %c0_86 = arith.constant 0 : index
    %137 = vector.load %arg5[%c0_83, %c1_84, %c0_85, %c0_86] : memref<1x8x16x128xbf16, #tpu.memory_space<vmem>>, vector<1x1x16x128xbf16>
    %138 = vector.shape_cast %137 : vector<1x1x16x128xbf16> to vector<16x128xbf16>
    %139 = vector.shape_cast %136 : vector<16x128xbf16> to vector<1x1x16x128xbf16>
    tpu.vector_store %arg5[%c0_83, %c1_84, %c0_85, %c0_86], %139 {strides = array<i32>} : memref<1x8x16x128xbf16, #tpu.memory_space<vmem>>, vector<1x1x16x128xbf16>,
    %c8_i32_87 = arith.constant 8 : i32
    %140 = arith.muli %arg1, %c8_i32_87 : i32
    %c2_i32 = arith.constant 2 : i32
    %141 = arith.addi %140, %c2_i32 : i32
    %c1_i32_88 = arith.constant 1 : i32
    %142 = arith.muli %141, %c1_i32_88 : i32
    %c0_89 = arith.constant 0 : index
    %143 = arith.index_cast %142 : i32 to index
    %c0_90 = arith.constant 0 : index
    %c0_91 = arith.constant 0 : index
    %144 = vector.load %arg2[%c0_89, %143, %c0_90, %c0_91] : memref<1x18x18x8xbf16, #tpu.memory_space<vmem>>, vector<1x3x18x8xbf16>
    %145 = vector.shape_cast %144 : vector<1x3x18x8xbf16> to vector<3x18x8xbf16>
    %cst_92 = arith.constant 0.000000e+00 : f32
    %146 = vector.broadcast %cst_92 : f32 to vector<16x128xf32>
    %147 = vector.extract_strided_slice %145 {offsets = [0, 0, 0], sizes = [1, 16, 8], strides = [1, 1, 1]} : vector<3x18x8xbf16> to vector<1x16x8xbf16>
    %148 = vector.shape_cast %147 : vector<1x16x8xbf16> to vector<16x8xbf16>
    %c0_93 = arith.constant 0 : index
    %c0_94 = arith.constant 0 : index
    %c0_95 = arith.constant 0 : index
    %149 = vector.load %arg3[%c0_93, %c0_94, %c0_95] : memref<9x8x128xbf16, #tpu.memory_space<vmem>>, vector<1x8x128xbf16>
    %150 = vector.shape_cast %149 : vector<1x8x128xbf16> to vector<8x128xbf16>
    %cst_96 = arith.constant dense<0.000000e+00> : vector<16x128xf32>
    %151 = tpu.matmul %148, %150, %cst_96 {dimension_numbers = #tpu.dot_dimension_numbers<[1], [0], [0], [1], [0, 0, 1, 1], [], []>} : vector<16x8xbf16>, vector<8x128xbf16>, vector<16x128xf32> -> vector<16x128xf32>
    %152 = arith.addf %146, %151 : vector<16x128xf32>
    %153 = vector.extract_strided_slice %145 {offsets = [0, 1, 0], sizes = [1, 16, 8], strides = [1, 1, 1]} : vector<3x18x8xbf16> to vector<1x16x8xbf16>
    %154 = vector.shape_cast %153 : vector<1x16x8xbf16> to vector<16x8xbf16>
    %c1_97 = arith.constant 1 : index
    %c0_98 = arith.constant 0 : index
    %c0_99 = arith.constant 0 : index
    %155 = vector.load %arg3[%c1_97, %c0_98, %c0_99] : memref<9x8x128xbf16, #tpu.memory_space<vmem>>, vector<1x8x128xbf16>
    %156 = vector.shape_cast %155 : vector<1x8x128xbf16> to vector<8x128xbf16>
    %cst_100 = arith.constant dense<0.000000e+00> : vector<16x128xf32>
    %157 = tpu.matmul %154, %156, %cst_100 {dimension_numbers = #tpu.dot_dimension_numbers<[1], [0], [0], [1], [0, 0, 1, 1], [], []>} : vector<16x8xbf16>, vector<8x128xbf16>, vector<16x128xf32> -> vector<16x128xf32>
    %158 = arith.addf %152, %157 : vector<16x128xf32>
    %159 = vector.extract_strided_slice %145 {offsets = [0, 2, 0], sizes = [1, 16, 8], strides = [1, 1, 1]} : vector<3x18x8xbf16> to vector<1x16x8xbf16>
    %160 = vector.shape_cast %159 : vector<1x16x8xbf16> to vector<16x8xbf16>
    %c2_101 = arith.constant 2 : index
    %c0_102 = arith.constant 0 : index
    %c0_103 = arith.constant 0 : index
    %161 = vector.load %arg3[%c2_101, %c0_102, %c0_103] : memref<9x8x128xbf16, #tpu.memory_space<vmem>>, vector<1x8x128xbf16>
    %162 = vector.shape_cast %161 : vector<1x8x128xbf16> to vector<8x128xbf16>
    %cst_104 = arith.constant dense<0.000000e+00> : vector<16x128xf32>
    %163 = tpu.matmul %160, %162, %cst_104 {dimension_numbers = #tpu.dot_dimension_numbers<[1], [0], [0], [1], [0, 0, 1, 1], [], []>} : vector<16x8xbf16>, vector<8x128xbf16>, vector<16x128xf32> -> vector<16x128xf32>
    %164 = arith.addf %158, %163 : vector<16x128xf32>
    %165 = vector.extract_strided_slice %145 {offsets = [1, 0, 0], sizes = [1, 16, 8], strides = [1, 1, 1]} : vector<3x18x8xbf16> to vector<1x16x8xbf16>
    %166 = vector.shape_cast %165 : vector<1x16x8xbf16> to vector<16x8xbf16>
    %c3_105 = arith.constant 3 : index
    %c0_106 = arith.constant 0 : index
    %c0_107 = arith.constant 0 : index
    %167 = vector.load %arg3[%c3_105, %c0_106, %c0_107] : memref<9x8x128xbf16, #tpu.memory_space<vmem>>, vector<1x8x128xbf16>
    %168 = vector.shape_cast %167 : vector<1x8x128xbf16> to vector<8x128xbf16>
    %cst_108 = arith.constant dense<0.000000e+00> : vector<16x128xf32>
    %169 = tpu.matmul %166, %168, %cst_108 {dimension_numbers = #tpu.dot_dimension_numbers<[1], [0], [0], [1], [0, 0, 1, 1], [], []>} : vector<16x8xbf16>, vector<8x128xbf16>, vector<16x128xf32> -> vector<16x128xf32>
    %170 = arith.addf %164, %169 : vector<16x128xf32>
    %171 = vector.extract_strided_slice %145 {offsets = [1, 1, 0], sizes = [1, 16, 8], strides = [1, 1, 1]} : vector<3x18x8xbf16> to vector<1x16x8xbf16>
    %172 = vector.shape_cast %171 : vector<1x16x8xbf16> to vector<16x8xbf16>
    %c4_109 = arith.constant 4 : index
    %c0_110 = arith.constant 0 : index
    %c0_111 = arith.constant 0 : index
    %173 = vector.load %arg3[%c4_109, %c0_110, %c0_111] : memref<9x8x128xbf16, #tpu.memory_space<vmem>>, vector<1x8x128xbf16>
    %174 = vector.shape_cast %173 : vector<1x8x128xbf16> to vector<8x128xbf16>
    %cst_112 = arith.constant dense<0.000000e+00> : vector<16x128xf32>
    %175 = tpu.matmul %172, %174, %cst_112 {dimension_numbers = #tpu.dot_dimension_numbers<[1], [0], [0], [1], [0, 0, 1, 1], [], []>} : vector<16x8xbf16>, vector<8x128xbf16>, vector<16x128xf32> -> vector<16x128xf32>
    %176 = arith.addf %170, %175 : vector<16x128xf32>
    %177 = vector.extract_strided_slice %145 {offsets = [1, 2, 0], sizes = [1, 16, 8], strides = [1, 1, 1]} : vector<3x18x8xbf16> to vector<1x16x8xbf16>
    %178 = vector.shape_cast %177 : vector<1x16x8xbf16> to vector<16x8xbf16>
    %c5_113 = arith.constant 5 : index
    %c0_114 = arith.constant 0 : index
    %c0_115 = arith.constant 0 : index
    %179 = vector.load %arg3[%c5_113, %c0_114, %c0_115] : memref<9x8x128xbf16, #tpu.memory_space<vmem>>, vector<1x8x128xbf16>
    %180 = vector.shape_cast %179 : vector<1x8x128xbf16> to vector<8x128xbf16>
    %cst_116 = arith.constant dense<0.000000e+00> : vector<16x128xf32>
    %181 = tpu.matmul %178, %180, %cst_116 {dimension_numbers = #tpu.dot_dimension_numbers<[1], [0], [0], [1], [0, 0, 1, 1], [], []>} : vector<16x8xbf16>, vector<8x128xbf16>, vector<16x128xf32> -> vector<16x128xf32>
    %182 = arith.addf %176, %181 : vector<16x128xf32>
    %183 = vector.extract_strided_slice %145 {offsets = [2, 0, 0], sizes = [1, 16, 8], strides = [1, 1, 1]} : vector<3x18x8xbf16> to vector<1x16x8xbf16>
    %184 = vector.shape_cast %183 : vector<1x16x8xbf16> to vector<16x8xbf16>
    %c6_117 = arith.constant 6 : index
    %c0_118 = arith.constant 0 : index
    %c0_119 = arith.constant 0 : index
    %185 = vector.load %arg3[%c6_117, %c0_118, %c0_119] : memref<9x8x128xbf16, #tpu.memory_space<vmem>>, vector<1x8x128xbf16>
    %186 = vector.shape_cast %185 : vector<1x8x128xbf16> to vector<8x128xbf16>
    %cst_120 = arith.constant dense<0.000000e+00> : vector<16x128xf32>
    %187 = tpu.matmul %184, %186, %cst_120 {dimension_numbers = #tpu.dot_dimension_numbers<[1], [0], [0], [1], [0, 0, 1, 1], [], []>} : vector<16x8xbf16>, vector<8x128xbf16>, vector<16x128xf32> -> vector<16x128xf32>
    %188 = arith.addf %182, %187 : vector<16x128xf32>
    %189 = vector.extract_strided_slice %145 {offsets = [2, 1, 0], sizes = [1, 16, 8], strides = [1, 1, 1]} : vector<3x18x8xbf16> to vector<1x16x8xbf16>
    %190 = vector.shape_cast %189 : vector<1x16x8xbf16> to vector<16x8xbf16>
    %c7_121 = arith.constant 7 : index
    %c0_122 = arith.constant 0 : index
    %c0_123 = arith.constant 0 : index
    %191 = vector.load %arg3[%c7_121, %c0_122, %c0_123] : memref<9x8x128xbf16, #tpu.memory_space<vmem>>, vector<1x8x128xbf16>
    %192 = vector.shape_cast %191 : vector<1x8x128xbf16> to vector<8x128xbf16>
    %cst_124 = arith.constant dense<0.000000e+00> : vector<16x128xf32>
    %193 = tpu.matmul %190, %192, %cst_124 {dimension_numbers = #tpu.dot_dimension_numbers<[1], [0], [0], [1], [0, 0, 1, 1], [], []>} : vector<16x8xbf16>, vector<8x128xbf16>, vector<16x128xf32> -> vector<16x128xf32>
    %194 = arith.addf %188, %193 : vector<16x128xf32>
    %195 = vector.extract_strided_slice %145 {offsets = [2, 2, 0], sizes = [1, 16, 8], strides = [1, 1, 1]} : vector<3x18x8xbf16> to vector<1x16x8xbf16>
    %196 = vector.shape_cast %195 : vector<1x16x8xbf16> to vector<16x8xbf16>
    %c8_125 = arith.constant 8 : index
    %c0_126 = arith.constant 0 : index
    %c0_127 = arith.constant 0 : index
    %197 = vector.load %arg3[%c8_125, %c0_126, %c0_127] : memref<9x8x128xbf16, #tpu.memory_space<vmem>>, vector<1x8x128xbf16>
    %198 = vector.shape_cast %197 : vector<1x8x128xbf16> to vector<8x128xbf16>
    %cst_128 = arith.constant dense<0.000000e+00> : vector<16x128xf32>
    %199 = tpu.matmul %196, %198, %cst_128 {dimension_numbers = #tpu.dot_dimension_numbers<[1], [0], [0], [1], [0, 0, 1, 1], [], []>} : vector<16x8xbf16>, vector<8x128xbf16>, vector<16x128xf32> -> vector<16x128xf32>
    %200 = arith.addf %194, %199 : vector<16x128xf32>
    %c0_129 = arith.constant 0 : index
    %c0_130 = arith.constant 0 : index
    %201 = vector.load %arg4[%c0_129, %c0_130] : memref<1x128xf32, #tpu.memory_space<vmem>>, vector<1x128xf32>
    %202 = vector.broadcast %201 : vector<1x128xf32> to vector<16x128xf32>
    %203 = arith.addf %200, %202 : vector<16x128xf32>
    %cst_131 = arith.constant 0.000000e+00 : f32
    %204 = vector.broadcast %cst_131 : f32 to vector<16x128xf32>
    %205 = arith.maximumf %203, %204 : vector<16x128xf32>
    %206 = arith.truncf %205 : vector<16x128xf32> to vector<16x128xbf16>
    %c0_132 = arith.constant 0 : index
    %c2_133 = arith.constant 2 : index
    %c0_134 = arith.constant 0 : index
    %c0_135 = arith.constant 0 : index
    %207 = vector.load %arg5[%c0_132, %c2_133, %c0_134, %c0_135] : memref<1x8x16x128xbf16, #tpu.memory_space<vmem>>, vector<1x1x16x128xbf16>
    %208 = vector.shape_cast %207 : vector<1x1x16x128xbf16> to vector<16x128xbf16>
    %209 = vector.shape_cast %206 : vector<16x128xbf16> to vector<1x1x16x128xbf16>
    tpu.vector_store %arg5[%c0_132, %c2_133, %c0_134, %c0_135], %209 {strides = array<i32>} : memref<1x8x16x128xbf16, #tpu.memory_space<vmem>>, vector<1x1x16x128xbf16>,
    %c8_i32_136 = arith.constant 8 : i32
    %210 = arith.muli %arg1, %c8_i32_136 : i32
    %c3_i32 = arith.constant 3 : i32
    %211 = arith.addi %210, %c3_i32 : i32
    %c1_i32_137 = arith.constant 1 : i32
    %212 = arith.muli %211, %c1_i32_137 : i32
    %c0_138 = arith.constant 0 : index
    %213 = arith.index_cast %212 : i32 to index
    %c0_139 = arith.constant 0 : index
    %c0_140 = arith.constant 0 : index
    %214 = vector.load %arg2[%c0_138, %213, %c0_139, %c0_140] : memref<1x18x18x8xbf16, #tpu.memory_space<vmem>>, vector<1x3x18x8xbf16>
    %215 = vector.shape_cast %214 : vector<1x3x18x8xbf16> to vector<3x18x8xbf16>
    %cst_141 = arith.constant 0.000000e+00 : f32
    %216 = vector.broadcast %cst_141 : f32 to vector<16x128xf32>
    %217 = vector.extract_strided_slice %215 {offsets = [0, 0, 0], sizes = [1, 16, 8], strides = [1, 1, 1]} : vector<3x18x8xbf16> to vector<1x16x8xbf16>
    %218 = vector.shape_cast %217 : vector<1x16x8xbf16> to vector<16x8xbf16>
    %c0_142 = arith.constant 0 : index
    %c0_143 = arith.constant 0 : index
    %c0_144 = arith.constant 0 : index
    %219 = vector.load %arg3[%c0_142, %c0_143, %c0_144] : memref<9x8x128xbf16, #tpu.memory_space<vmem>>, vector<1x8x128xbf16>
    %220 = vector.shape_cast %219 : vector<1x8x128xbf16> to vector<8x128xbf16>
    %cst_145 = arith.constant dense<0.000000e+00> : vector<16x128xf32>
    %221 = tpu.matmul %218, %220, %cst_145 {dimension_numbers = #tpu.dot_dimension_numbers<[1], [0], [0], [1], [0, 0, 1, 1], [], []>} : vector<16x8xbf16>, vector<8x128xbf16>, vector<16x128xf32> -> vector<16x128xf32>
    %222 = arith.addf %216, %221 : vector<16x128xf32>
    %223 = vector.extract_strided_slice %215 {offsets = [0, 1, 0], sizes = [1, 16, 8], strides = [1, 1, 1]} : vector<3x18x8xbf16> to vector<1x16x8xbf16>
    %224 = vector.shape_cast %223 : vector<1x16x8xbf16> to vector<16x8xbf16>
    %c1_146 = arith.constant 1 : index
    %c0_147 = arith.constant 0 : index
    %c0_148 = arith.constant 0 : index
    %225 = vector.load %arg3[%c1_146, %c0_147, %c0_148] : memref<9x8x128xbf16, #tpu.memory_space<vmem>>, vector<1x8x128xbf16>
    %226 = vector.shape_cast %225 : vector<1x8x128xbf16> to vector<8x128xbf16>
    %cst_149 = arith.constant dense<0.000000e+00> : vector<16x128xf32>
    %227 = tpu.matmul %224, %226, %cst_149 {dimension_numbers = #tpu.dot_dimension_numbers<[1], [0], [0], [1], [0, 0, 1, 1], [], []>} : vector<16x8xbf16>, vector<8x128xbf16>, vector<16x128xf32> -> vector<16x128xf32>
    %228 = arith.addf %222, %227 : vector<16x128xf32>
    %229 = vector.extract_strided_slice %215 {offsets = [0, 2, 0], sizes = [1, 16, 8], strides = [1, 1, 1]} : vector<3x18x8xbf16> to vector<1x16x8xbf16>
    %230 = vector.shape_cast %229 : vector<1x16x8xbf16> to vector<16x8xbf16>
    %c2_150 = arith.constant 2 : index
    %c0_151 = arith.constant 0 : index
    %c0_152 = arith.constant 0 : index
    %231 = vector.load %arg3[%c2_150, %c0_151, %c0_152] : memref<9x8x128xbf16, #tpu.memory_space<vmem>>, vector<1x8x128xbf16>
    %232 = vector.shape_cast %231 : vector<1x8x128xbf16> to vector<8x128xbf16>
    %cst_153 = arith.constant dense<0.000000e+00> : vector<16x128xf32>
    %233 = tpu.matmul %230, %232, %cst_153 {dimension_numbers = #tpu.dot_dimension_numbers<[1], [0], [0], [1], [0, 0, 1, 1], [], []>} : vector<16x8xbf16>, vector<8x128xbf16>, vector<16x128xf32> -> vector<16x128xf32>
    %234 = arith.addf %228, %233 : vector<16x128xf32>
    %235 = vector.extract_strided_slice %215 {offsets = [1, 0, 0], sizes = [1, 16, 8], strides = [1, 1, 1]} : vector<3x18x8xbf16> to vector<1x16x8xbf16>
    %236 = vector.shape_cast %235 : vector<1x16x8xbf16> to vector<16x8xbf16>
    %c3_154 = arith.constant 3 : index
    %c0_155 = arith.constant 0 : index
    %c0_156 = arith.constant 0 : index
    %237 = vector.load %arg3[%c3_154, %c0_155, %c0_156] : memref<9x8x128xbf16, #tpu.memory_space<vmem>>, vector<1x8x128xbf16>
    %238 = vector.shape_cast %237 : vector<1x8x128xbf16> to vector<8x128xbf16>
    %cst_157 = arith.constant dense<0.000000e+00> : vector<16x128xf32>
    %239 = tpu.matmul %236, %238, %cst_157 {dimension_numbers = #tpu.dot_dimension_numbers<[1], [0], [0], [1], [0, 0, 1, 1], [], []>} : vector<16x8xbf16>, vector<8x128xbf16>, vector<16x128xf32> -> vector<16x128xf32>
    %240 = arith.addf %234, %239 : vector<16x128xf32>
    %241 = vector.extract_strided_slice %215 {offsets = [1, 1, 0], sizes = [1, 16, 8], strides = [1, 1, 1]} : vector<3x18x8xbf16> to vector<1x16x8xbf16>
    %242 = vector.shape_cast %241 : vector<1x16x8xbf16> to vector<16x8xbf16>
    %c4_158 = arith.constant 4 : index
    %c0_159 = arith.constant 0 : index
    %c0_160 = arith.constant 0 : index
    %243 = vector.load %arg3[%c4_158, %c0_159, %c0_160] : memref<9x8x128xbf16, #tpu.memory_space<vmem>>, vector<1x8x128xbf16>
    %244 = vector.shape_cast %243 : vector<1x8x128xbf16> to vector<8x128xbf16>
    %cst_161 = arith.constant dense<0.000000e+00> : vector<16x128xf32>
    %245 = tpu.matmul %242, %244, %cst_161 {dimension_numbers = #tpu.dot_dimension_numbers<[1], [0], [0], [1], [0, 0, 1, 1], [], []>} : vector<16x8xbf16>, vector<8x128xbf16>, vector<16x128xf32> -> vector<16x128xf32>
    %246 = arith.addf %240, %245 : vector<16x128xf32>
    %247 = vector.extract_strided_slice %215 {offsets = [1, 2, 0], sizes = [1, 16, 8], strides = [1, 1, 1]} : vector<3x18x8xbf16> to vector<1x16x8xbf16>
    %248 = vector.shape_cast %247 : vector<1x16x8xbf16> to vector<16x8xbf16>
    %c5_162 = arith.constant 5 : index
    %c0_163 = arith.constant 0 : index
    %c0_164 = arith.constant 0 : index
    %249 = vector.load %arg3[%c5_162, %c0_163, %c0_164] : memref<9x8x128xbf16, #tpu.memory_space<vmem>>, vector<1x8x128xbf16>
    %250 = vector.shape_cast %249 : vector<1x8x128xbf16> to vector<8x128xbf16>
    %cst_165 = arith.constant dense<0.000000e+00> : vector<16x128xf32>
    %251 = tpu.matmul %248, %250, %cst_165 {dimension_numbers = #tpu.dot_dimension_numbers<[1], [0], [0], [1], [0, 0, 1, 1], [], []>} : vector<16x8xbf16>, vector<8x128xbf16>, vector<16x128xf32> -> vector<16x128xf32>
    %252 = arith.addf %246, %251 : vector<16x128xf32>
    %253 = vector.extract_strided_slice %215 {offsets = [2, 0, 0], sizes = [1, 16, 8], strides = [1, 1, 1]} : vector<3x18x8xbf16> to vector<1x16x8xbf16>
    %254 = vector.shape_cast %253 : vector<1x16x8xbf16> to vector<16x8xbf16>
    %c6_166 = arith.constant 6 : index
    %c0_167 = arith.constant 0 : index
    %c0_168 = arith.constant 0 : index
    %255 = vector.load %arg3[%c6_166, %c0_167, %c0_168] : memref<9x8x128xbf16, #tpu.memory_space<vmem>>, vector<1x8x128xbf16>
    %256 = vector.shape_cast %255 : vector<1x8x128xbf16> to vector<8x128xbf16>
    %cst_169 = arith.constant dense<0.000000e+00> : vector<16x128xf32>
    %257 = tpu.matmul %254, %256, %cst_169 {dimension_numbers = #tpu.dot_dimension_numbers<[1], [0], [0], [1], [0, 0, 1, 1], [], []>} : vector<16x8xbf16>, vector<8x128xbf16>, vector<16x128xf32> -> vector<16x128xf32>
    %258 = arith.addf %252, %257 : vector<16x128xf32>
    %259 = vector.extract_strided_slice %215 {offsets = [2, 1, 0], sizes = [1, 16, 8], strides = [1, 1, 1]} : vector<3x18x8xbf16> to vector<1x16x8xbf16>
    %260 = vector.shape_cast %259 : vector<1x16x8xbf16> to vector<16x8xbf16>
    %c7_170 = arith.constant 7 : index
    %c0_171 = arith.constant 0 : index
    %c0_172 = arith.constant 0 : index
    %261 = vector.load %arg3[%c7_170, %c0_171, %c0_172] : memref<9x8x128xbf16, #tpu.memory_space<vmem>>, vector<1x8x128xbf16>
    %262 = vector.shape_cast %261 : vector<1x8x128xbf16> to vector<8x128xbf16>
    %cst_173 = arith.constant dense<0.000000e+00> : vector<16x128xf32>
    %263 = tpu.matmul %260, %262, %cst_173 {dimension_numbers = #tpu.dot_dimension_numbers<[1], [0], [0], [1], [0, 0, 1, 1], [], []>} : vector<16x8xbf16>, vector<8x128xbf16>, vector<16x128xf32> -> vector<16x128xf32>
    %264 = arith.addf %258, %263 : vector<16x128xf32>
    %265 = vector.extract_strided_slice %215 {offsets = [2, 2, 0], sizes = [1, 16, 8], strides = [1, 1, 1]} : vector<3x18x8xbf16> to vector<1x16x8xbf16>
    %266 = vector.shape_cast %265 : vector<1x16x8xbf16> to vector<16x8xbf16>
    %c8_174 = arith.constant 8 : index
    %c0_175 = arith.constant 0 : index
    %c0_176 = arith.constant 0 : index
    %267 = vector.load %arg3[%c8_174, %c0_175, %c0_176] : memref<9x8x128xbf16, #tpu.memory_space<vmem>>, vector<1x8x128xbf16>
    %268 = vector.shape_cast %267 : vector<1x8x128xbf16> to vector<8x128xbf16>
    %cst_177 = arith.constant dense<0.000000e+00> : vector<16x128xf32>
    %269 = tpu.matmul %266, %268, %cst_177 {dimension_numbers = #tpu.dot_dimension_numbers<[1], [0], [0], [1], [0, 0, 1, 1], [], []>} : vector<16x8xbf16>, vector<8x128xbf16>, vector<16x128xf32> -> vector<16x128xf32>
    %270 = arith.addf %264, %269 : vector<16x128xf32>
    %c0_178 = arith.constant 0 : index
    %c0_179 = arith.constant 0 : index
    %271 = vector.load %arg4[%c0_178, %c0_179] : memref<1x128xf32, #tpu.memory_space<vmem>>, vector<1x128xf32>
    %272 = vector.broadcast %271 : vector<1x128xf32> to vector<16x128xf32>
    %273 = arith.addf %270, %272 : vector<16x128xf32>
    %cst_180 = arith.constant 0.000000e+00 : f32
    %274 = vector.broadcast %cst_180 : f32 to vector<16x128xf32>
    %275 = arith.maximumf %273, %274 : vector<16x128xf32>
    %276 = arith.truncf %275 : vector<16x128xf32> to vector<16x128xbf16>
    %c0_181 = arith.constant 0 : index
    %c3_182 = arith.constant 3 : index
    %c0_183 = arith.constant 0 : index
    %c0_184 = arith.constant 0 : index
    %277 = vector.load %arg5[%c0_181, %c3_182, %c0_183, %c0_184] : memref<1x8x16x128xbf16, #tpu.memory_space<vmem>>, vector<1x1x16x128xbf16>
    %278 = vector.shape_cast %277 : vector<1x1x16x128xbf16> to vector<16x128xbf16>
    %279 = vector.shape_cast %276 : vector<16x128xbf16> to vector<1x1x16x128xbf16>
    tpu.vector_store %arg5[%c0_181, %c3_182, %c0_183, %c0_184], %279 {strides = array<i32>} : memref<1x8x16x128xbf16, #tpu.memory_space<vmem>>, vector<1x1x16x128xbf16>,
    %c8_i32_185 = arith.constant 8 : i32
    %280 = arith.muli %arg1, %c8_i32_185 : i32
    %c4_i32 = arith.constant 4 : i32
    %281 = arith.addi %280, %c4_i32 : i32
    %c1_i32_186 = arith.constant 1 : i32
    %282 = arith.muli %281, %c1_i32_186 : i32
    %c0_187 = arith.constant 0 : index
    %283 = arith.index_cast %282 : i32 to index
    %c0_188 = arith.constant 0 : index
    %c0_189 = arith.constant 0 : index
    %284 = vector.load %arg2[%c0_187, %283, %c0_188, %c0_189] : memref<1x18x18x8xbf16, #tpu.memory_space<vmem>>, vector<1x3x18x8xbf16>
    %285 = vector.shape_cast %284 : vector<1x3x18x8xbf16> to vector<3x18x8xbf16>
    %cst_190 = arith.constant 0.000000e+00 : f32
    %286 = vector.broadcast %cst_190 : f32 to vector<16x128xf32>
    %287 = vector.extract_strided_slice %285 {offsets = [0, 0, 0], sizes = [1, 16, 8], strides = [1, 1, 1]} : vector<3x18x8xbf16> to vector<1x16x8xbf16>
    %288 = vector.shape_cast %287 : vector<1x16x8xbf16> to vector<16x8xbf16>
    %c0_191 = arith.constant 0 : index
    %c0_192 = arith.constant 0 : index
    %c0_193 = arith.constant 0 : index
    %289 = vector.load %arg3[%c0_191, %c0_192, %c0_193] : memref<9x8x128xbf16, #tpu.memory_space<vmem>>, vector<1x8x128xbf16>
    %290 = vector.shape_cast %289 : vector<1x8x128xbf16> to vector<8x128xbf16>
    %cst_194 = arith.constant dense<0.000000e+00> : vector<16x128xf32>
    %291 = tpu.matmul %288, %290, %cst_194 {dimension_numbers = #tpu.dot_dimension_numbers<[1], [0], [0], [1], [0, 0, 1, 1], [], []>} : vector<16x8xbf16>, vector<8x128xbf16>, vector<16x128xf32> -> vector<16x128xf32>
    %292 = arith.addf %286, %291 : vector<16x128xf32>
    %293 = vector.extract_strided_slice %285 {offsets = [0, 1, 0], sizes = [1, 16, 8], strides = [1, 1, 1]} : vector<3x18x8xbf16> to vector<1x16x8xbf16>
    %294 = vector.shape_cast %293 : vector<1x16x8xbf16> to vector<16x8xbf16>
    %c1_195 = arith.constant 1 : index
    %c0_196 = arith.constant 0 : index
    %c0_197 = arith.constant 0 : index
    %295 = vector.load %arg3[%c1_195, %c0_196, %c0_197] : memref<9x8x128xbf16, #tpu.memory_space<vmem>>, vector<1x8x128xbf16>
    %296 = vector.shape_cast %295 : vector<1x8x128xbf16> to vector<8x128xbf16>
    %cst_198 = arith.constant dense<0.000000e+00> : vector<16x128xf32>
    %297 = tpu.matmul %294, %296, %cst_198 {dimension_numbers = #tpu.dot_dimension_numbers<[1], [0], [0], [1], [0, 0, 1, 1], [], []>} : vector<16x8xbf16>, vector<8x128xbf16>, vector<16x128xf32> -> vector<16x128xf32>
    %298 = arith.addf %292, %297 : vector<16x128xf32>
    %299 = vector.extract_strided_slice %285 {offsets = [0, 2, 0], sizes = [1, 16, 8], strides = [1, 1, 1]} : vector<3x18x8xbf16> to vector<1x16x8xbf16>
    %300 = vector.shape_cast %299 : vector<1x16x8xbf16> to vector<16x8xbf16>
    %c2_199 = arith.constant 2 : index
    %c0_200 = arith.constant 0 : index
    %c0_201 = arith.constant 0 : index
    %301 = vector.load %arg3[%c2_199, %c0_200, %c0_201] : memref<9x8x128xbf16, #tpu.memory_space<vmem>>, vector<1x8x128xbf16>
    %302 = vector.shape_cast %301 : vector<1x8x128xbf16> to vector<8x128xbf16>
    %cst_202 = arith.constant dense<0.000000e+00> : vector<16x128xf32>
    %303 = tpu.matmul %300, %302, %cst_202 {dimension_numbers = #tpu.dot_dimension_numbers<[1], [0], [0], [1], [0, 0, 1, 1], [], []>} : vector<16x8xbf16>, vector<8x128xbf16>, vector<16x128xf32> -> vector<16x128xf32>
    %304 = arith.addf %298, %303 : vector<16x128xf32>
    %305 = vector.extract_strided_slice %285 {offsets = [1, 0, 0], sizes = [1, 16, 8], strides = [1, 1, 1]} : vector<3x18x8xbf16> to vector<1x16x8xbf16>
    %306 = vector.shape_cast %305 : vector<1x16x8xbf16> to vector<16x8xbf16>
    %c3_203 = arith.constant 3 : index
    %c0_204 = arith.constant 0 : index
    %c0_205 = arith.constant 0 : index
    %307 = vector.load %arg3[%c3_203, %c0_204, %c0_205] : memref<9x8x128xbf16, #tpu.memory_space<vmem>>, vector<1x8x128xbf16>
    %308 = vector.shape_cast %307 : vector<1x8x128xbf16> to vector<8x128xbf16>
    %cst_206 = arith.constant dense<0.000000e+00> : vector<16x128xf32>
    %309 = tpu.matmul %306, %308, %cst_206 {dimension_numbers = #tpu.dot_dimension_numbers<[1], [0], [0], [1], [0, 0, 1, 1], [], []>} : vector<16x8xbf16>, vector<8x128xbf16>, vector<16x128xf32> -> vector<16x128xf32>
    %310 = arith.addf %304, %309 : vector<16x128xf32>
    %311 = vector.extract_strided_slice %285 {offsets = [1, 1, 0], sizes = [1, 16, 8], strides = [1, 1, 1]} : vector<3x18x8xbf16> to vector<1x16x8xbf16>
    %312 = vector.shape_cast %311 : vector<1x16x8xbf16> to vector<16x8xbf16>
    %c4_207 = arith.constant 4 : index
    %c0_208 = arith.constant 0 : index
    %c0_209 = arith.constant 0 : index
    %313 = vector.load %arg3[%c4_207, %c0_208, %c0_209] : memref<9x8x128xbf16, #tpu.memory_space<vmem>>, vector<1x8x128xbf16>
    %314 = vector.shape_cast %313 : vector<1x8x128xbf16> to vector<8x128xbf16>
    %cst_210 = arith.constant dense<0.000000e+00> : vector<16x128xf32>
    %315 = tpu.matmul %312, %314, %cst_210 {dimension_numbers = #tpu.dot_dimension_numbers<[1], [0], [0], [1], [0, 0, 1, 1], [], []>} : vector<16x8xbf16>, vector<8x128xbf16>, vector<16x128xf32> -> vector<16x128xf32>
    %316 = arith.addf %310, %315 : vector<16x128xf32>
    %317 = vector.extract_strided_slice %285 {offsets = [1, 2, 0], sizes = [1, 16, 8], strides = [1, 1, 1]} : vector<3x18x8xbf16> to vector<1x16x8xbf16>
    %318 = vector.shape_cast %317 : vector<1x16x8xbf16> to vector<16x8xbf16>
    %c5_211 = arith.constant 5 : index
    %c0_212 = arith.constant 0 : index
    %c0_213 = arith.constant 0 : index
    %319 = vector.load %arg3[%c5_211, %c0_212, %c0_213] : memref<9x8x128xbf16, #tpu.memory_space<vmem>>, vector<1x8x128xbf16>
    %320 = vector.shape_cast %319 : vector<1x8x128xbf16> to vector<8x128xbf16>
    %cst_214 = arith.constant dense<0.000000e+00> : vector<16x128xf32>
    %321 = tpu.matmul %318, %320, %cst_214 {dimension_numbers = #tpu.dot_dimension_numbers<[1], [0], [0], [1], [0, 0, 1, 1], [], []>} : vector<16x8xbf16>, vector<8x128xbf16>, vector<16x128xf32> -> vector<16x128xf32>
    %322 = arith.addf %316, %321 : vector<16x128xf32>
    %323 = vector.extract_strided_slice %285 {offsets = [2, 0, 0], sizes = [1, 16, 8], strides = [1, 1, 1]} : vector<3x18x8xbf16> to vector<1x16x8xbf16>
    %324 = vector.shape_cast %323 : vector<1x16x8xbf16> to vector<16x8xbf16>
    %c6_215 = arith.constant 6 : index
    %c0_216 = arith.constant 0 : index
    %c0_217 = arith.constant 0 : index
    %325 = vector.load %arg3[%c6_215, %c0_216, %c0_217] : memref<9x8x128xbf16, #tpu.memory_space<vmem>>, vector<1x8x128xbf16>
    %326 = vector.shape_cast %325 : vector<1x8x128xbf16> to vector<8x128xbf16>
    %cst_218 = arith.constant dense<0.000000e+00> : vector<16x128xf32>
    %327 = tpu.matmul %324, %326, %cst_218 {dimension_numbers = #tpu.dot_dimension_numbers<[1], [0], [0], [1], [0, 0, 1, 1], [], []>} : vector<16x8xbf16>, vector<8x128xbf16>, vector<16x128xf32> -> vector<16x128xf32>
    %328 = arith.addf %322, %327 : vector<16x128xf32>
    %329 = vector.extract_strided_slice %285 {offsets = [2, 1, 0], sizes = [1, 16, 8], strides = [1, 1, 1]} : vector<3x18x8xbf16> to vector<1x16x8xbf16>
    %330 = vector.shape_cast %329 : vector<1x16x8xbf16> to vector<16x8xbf16>
    %c7_219 = arith.constant 7 : index
    %c0_220 = arith.constant 0 : index
    %c0_221 = arith.constant 0 : index
    %331 = vector.load %arg3[%c7_219, %c0_220, %c0_221] : memref<9x8x128xbf16, #tpu.memory_space<vmem>>, vector<1x8x128xbf16>
    %332 = vector.shape_cast %331 : vector<1x8x128xbf16> to vector<8x128xbf16>
    %cst_222 = arith.constant dense<0.000000e+00> : vector<16x128xf32>
    %333 = tpu.matmul %330, %332, %cst_222 {dimension_numbers = #tpu.dot_dimension_numbers<[1], [0], [0], [1], [0, 0, 1, 1], [], []>} : vector<16x8xbf16>, vector<8x128xbf16>, vector<16x128xf32> -> vector<16x128xf32>
    %334 = arith.addf %328, %333 : vector<16x128xf32>
    %335 = vector.extract_strided_slice %285 {offsets = [2, 2, 0], sizes = [1, 16, 8], strides = [1, 1, 1]} : vector<3x18x8xbf16> to vector<1x16x8xbf16>
    %336 = vector.shape_cast %335 : vector<1x16x8xbf16> to vector<16x8xbf16>
    %c8_223 = arith.constant 8 : index
    %c0_224 = arith.constant 0 : index
    %c0_225 = arith.constant 0 : index
    %337 = vector.load %arg3[%c8_223, %c0_224, %c0_225] : memref<9x8x128xbf16, #tpu.memory_space<vmem>>, vector<1x8x128xbf16>
    %338 = vector.shape_cast %337 : vector<1x8x128xbf16> to vector<8x128xbf16>
    %cst_226 = arith.constant dense<0.000000e+00> : vector<16x128xf32>
    %339 = tpu.matmul %336, %338, %cst_226 {dimension_numbers = #tpu.dot_dimension_numbers<[1], [0], [0], [1], [0, 0, 1, 1], [], []>} : vector<16x8xbf16>, vector<8x128xbf16>, vector<16x128xf32> -> vector<16x128xf32>
    %340 = arith.addf %334, %339 : vector<16x128xf32>
    %c0_227 = arith.constant 0 : index
    %c0_228 = arith.constant 0 : index
    %341 = vector.load %arg4[%c0_227, %c0_228] : memref<1x128xf32, #tpu.memory_space<vmem>>, vector<1x128xf32>
    %342 = vector.broadcast %341 : vector<1x128xf32> to vector<16x128xf32>
    %343 = arith.addf %340, %342 : vector<16x128xf32>
    %cst_229 = arith.constant 0.000000e+00 : f32
    %344 = vector.broadcast %cst_229 : f32 to vector<16x128xf32>
    %345 = arith.maximumf %343, %344 : vector<16x128xf32>
    %346 = arith.truncf %345 : vector<16x128xf32> to vector<16x128xbf16>
    %c0_230 = arith.constant 0 : index
    %c4_231 = arith.constant 4 : index
    %c0_232 = arith.constant 0 : index
    %c0_233 = arith.constant 0 : index
    %347 = vector.load %arg5[%c0_230, %c4_231, %c0_232, %c0_233] : memref<1x8x16x128xbf16, #tpu.memory_space<vmem>>, vector<1x1x16x128xbf16>
    %348 = vector.shape_cast %347 : vector<1x1x16x128xbf16> to vector<16x128xbf16>
    %349 = vector.shape_cast %346 : vector<16x128xbf16> to vector<1x1x16x128xbf16>
    tpu.vector_store %arg5[%c0_230, %c4_231, %c0_232, %c0_233], %349 {strides = array<i32>} : memref<1x8x16x128xbf16, #tpu.memory_space<vmem>>, vector<1x1x16x128xbf16>,
    %c8_i32_234 = arith.constant 8 : i32
    %350 = arith.muli %arg1, %c8_i32_234 : i32
    %c5_i32 = arith.constant 5 : i32
    %351 = arith.addi %350, %c5_i32 : i32
    %c1_i32_235 = arith.constant 1 : i32
    %352 = arith.muli %351, %c1_i32_235 : i32
    %c0_236 = arith.constant 0 : index
    %353 = arith.index_cast %352 : i32 to index
    %c0_237 = arith.constant 0 : index
    %c0_238 = arith.constant 0 : index
    %354 = vector.load %arg2[%c0_236, %353, %c0_237, %c0_238] : memref<1x18x18x8xbf16, #tpu.memory_space<vmem>>, vector<1x3x18x8xbf16>
    %355 = vector.shape_cast %354 : vector<1x3x18x8xbf16> to vector<3x18x8xbf16>
    %cst_239 = arith.constant 0.000000e+00 : f32
    %356 = vector.broadcast %cst_239 : f32 to vector<16x128xf32>
    %357 = vector.extract_strided_slice %355 {offsets = [0, 0, 0], sizes = [1, 16, 8], strides = [1, 1, 1]} : vector<3x18x8xbf16> to vector<1x16x8xbf16>
    %358 = vector.shape_cast %357 : vector<1x16x8xbf16> to vector<16x8xbf16>
    %c0_240 = arith.constant 0 : index
    %c0_241 = arith.constant 0 : index
    %c0_242 = arith.constant 0 : index
    %359 = vector.load %arg3[%c0_240, %c0_241, %c0_242] : memref<9x8x128xbf16, #tpu.memory_space<vmem>>, vector<1x8x128xbf16>
    %360 = vector.shape_cast %359 : vector<1x8x128xbf16> to vector<8x128xbf16>
    %cst_243 = arith.constant dense<0.000000e+00> : vector<16x128xf32>
    %361 = tpu.matmul %358, %360, %cst_243 {dimension_numbers = #tpu.dot_dimension_numbers<[1], [0], [0], [1], [0, 0, 1, 1], [], []>} : vector<16x8xbf16>, vector<8x128xbf16>, vector<16x128xf32> -> vector<16x128xf32>
    %362 = arith.addf %356, %361 : vector<16x128xf32>
    %363 = vector.extract_strided_slice %355 {offsets = [0, 1, 0], sizes = [1, 16, 8], strides = [1, 1, 1]} : vector<3x18x8xbf16> to vector<1x16x8xbf16>
    %364 = vector.shape_cast %363 : vector<1x16x8xbf16> to vector<16x8xbf16>
    %c1_244 = arith.constant 1 : index
    %c0_245 = arith.constant 0 : index
    %c0_246 = arith.constant 0 : index
    %365 = vector.load %arg3[%c1_244, %c0_245, %c0_246] : memref<9x8x128xbf16, #tpu.memory_space<vmem>>, vector<1x8x128xbf16>
    %366 = vector.shape_cast %365 : vector<1x8x128xbf16> to vector<8x128xbf16>
    %cst_247 = arith.constant dense<0.000000e+00> : vector<16x128xf32>
    %367 = tpu.matmul %364, %366, %cst_247 {dimension_numbers = #tpu.dot_dimension_numbers<[1], [0], [0], [1], [0, 0, 1, 1], [], []>} : vector<16x8xbf16>, vector<8x128xbf16>, vector<16x128xf32> -> vector<16x128xf32>
    %368 = arith.addf %362, %367 : vector<16x128xf32>
    %369 = vector.extract_strided_slice %355 {offsets = [0, 2, 0], sizes = [1, 16, 8], strides = [1, 1, 1]} : vector<3x18x8xbf16> to vector<1x16x8xbf16>
    %370 = vector.shape_cast %369 : vector<1x16x8xbf16> to vector<16x8xbf16>
    %c2_248 = arith.constant 2 : index
    %c0_249 = arith.constant 0 : index
    %c0_250 = arith.constant 0 : index
    %371 = vector.load %arg3[%c2_248, %c0_249, %c0_250] : memref<9x8x128xbf16, #tpu.memory_space<vmem>>, vector<1x8x128xbf16>
    %372 = vector.shape_cast %371 : vector<1x8x128xbf16> to vector<8x128xbf16>
    %cst_251 = arith.constant dense<0.000000e+00> : vector<16x128xf32>
    %373 = tpu.matmul %370, %372, %cst_251 {dimension_numbers = #tpu.dot_dimension_numbers<[1], [0], [0], [1], [0, 0, 1, 1], [], []>} : vector<16x8xbf16>, vector<8x128xbf16>, vector<16x128xf32> -> vector<16x128xf32>
    %374 = arith.addf %368, %373 : vector<16x128xf32>
    %375 = vector.extract_strided_slice %355 {offsets = [1, 0, 0], sizes = [1, 16, 8], strides = [1, 1, 1]} : vector<3x18x8xbf16> to vector<1x16x8xbf16>
    %376 = vector.shape_cast %375 : vector<1x16x8xbf16> to vector<16x8xbf16>
    %c3_252 = arith.constant 3 : index
    %c0_253 = arith.constant 0 : index
    %c0_254 = arith.constant 0 : index
    %377 = vector.load %arg3[%c3_252, %c0_253, %c0_254] : memref<9x8x128xbf16, #tpu.memory_space<vmem>>, vector<1x8x128xbf16>
    %378 = vector.shape_cast %377 : vector<1x8x128xbf16> to vector<8x128xbf16>
    %cst_255 = arith.constant dense<0.000000e+00> : vector<16x128xf32>
    %379 = tpu.matmul %376, %378, %cst_255 {dimension_numbers = #tpu.dot_dimension_numbers<[1], [0], [0], [1], [0, 0, 1, 1], [], []>} : vector<16x8xbf16>, vector<8x128xbf16>, vector<16x128xf32> -> vector<16x128xf32>
    %380 = arith.addf %374, %379 : vector<16x128xf32>
    %381 = vector.extract_strided_slice %355 {offsets = [1, 1, 0], sizes = [1, 16, 8], strides = [1, 1, 1]} : vector<3x18x8xbf16> to vector<1x16x8xbf16>
    %382 = vector.shape_cast %381 : vector<1x16x8xbf16> to vector<16x8xbf16>
    %c4_256 = arith.constant 4 : index
    %c0_257 = arith.constant 0 : index
    %c0_258 = arith.constant 0 : index
    %383 = vector.load %arg3[%c4_256, %c0_257, %c0_258] : memref<9x8x128xbf16, #tpu.memory_space<vmem>>, vector<1x8x128xbf16>
    %384 = vector.shape_cast %383 : vector<1x8x128xbf16> to vector<8x128xbf16>
    %cst_259 = arith.constant dense<0.000000e+00> : vector<16x128xf32>
    %385 = tpu.matmul %382, %384, %cst_259 {dimension_numbers = #tpu.dot_dimension_numbers<[1], [0], [0], [1], [0, 0, 1, 1], [], []>} : vector<16x8xbf16>, vector<8x128xbf16>, vector<16x128xf32> -> vector<16x128xf32>
    %386 = arith.addf %380, %385 : vector<16x128xf32>
    %387 = vector.extract_strided_slice %355 {offsets = [1, 2, 0], sizes = [1, 16, 8], strides = [1, 1, 1]} : vector<3x18x8xbf16> to vector<1x16x8xbf16>
    %388 = vector.shape_cast %387 : vector<1x16x8xbf16> to vector<16x8xbf16>
    %c5_260 = arith.constant 5 : index
    %c0_261 = arith.constant 0 : index
    %c0_262 = arith.constant 0 : index
    %389 = vector.load %arg3[%c5_260, %c0_261, %c0_262] : memref<9x8x128xbf16, #tpu.memory_space<vmem>>, vector<1x8x128xbf16>
    %390 = vector.shape_cast %389 : vector<1x8x128xbf16> to vector<8x128xbf16>
    %cst_263 = arith.constant dense<0.000000e+00> : vector<16x128xf32>
    %391 = tpu.matmul %388, %390, %cst_263 {dimension_numbers = #tpu.dot_dimension_numbers<[1], [0], [0], [1], [0, 0, 1, 1], [], []>} : vector<16x8xbf16>, vector<8x128xbf16>, vector<16x128xf32> -> vector<16x128xf32>
    %392 = arith.addf %386, %391 : vector<16x128xf32>
    %393 = vector.extract_strided_slice %355 {offsets = [2, 0, 0], sizes = [1, 16, 8], strides = [1, 1, 1]} : vector<3x18x8xbf16> to vector<1x16x8xbf16>
    %394 = vector.shape_cast %393 : vector<1x16x8xbf16> to vector<16x8xbf16>
    %c6_264 = arith.constant 6 : index
    %c0_265 = arith.constant 0 : index
    %c0_266 = arith.constant 0 : index
    %395 = vector.load %arg3[%c6_264, %c0_265, %c0_266] : memref<9x8x128xbf16, #tpu.memory_space<vmem>>, vector<1x8x128xbf16>
    %396 = vector.shape_cast %395 : vector<1x8x128xbf16> to vector<8x128xbf16>
    %cst_267 = arith.constant dense<0.000000e+00> : vector<16x128xf32>
    %397 = tpu.matmul %394, %396, %cst_267 {dimension_numbers = #tpu.dot_dimension_numbers<[1], [0], [0], [1], [0, 0, 1, 1], [], []>} : vector<16x8xbf16>, vector<8x128xbf16>, vector<16x128xf32> -> vector<16x128xf32>
    %398 = arith.addf %392, %397 : vector<16x128xf32>
    %399 = vector.extract_strided_slice %355 {offsets = [2, 1, 0], sizes = [1, 16, 8], strides = [1, 1, 1]} : vector<3x18x8xbf16> to vector<1x16x8xbf16>
    %400 = vector.shape_cast %399 : vector<1x16x8xbf16> to vector<16x8xbf16>
    %c7_268 = arith.constant 7 : index
    %c0_269 = arith.constant 0 : index
    %c0_270 = arith.constant 0 : index
    %401 = vector.load %arg3[%c7_268, %c0_269, %c0_270] : memref<9x8x128xbf16, #tpu.memory_space<vmem>>, vector<1x8x128xbf16>
    %402 = vector.shape_cast %401 : vector<1x8x128xbf16> to vector<8x128xbf16>
    %cst_271 = arith.constant dense<0.000000e+00> : vector<16x128xf32>
    %403 = tpu.matmul %400, %402, %cst_271 {dimension_numbers = #tpu.dot_dimension_numbers<[1], [0], [0], [1], [0, 0, 1, 1], [], []>} : vector<16x8xbf16>, vector<8x128xbf16>, vector<16x128xf32> -> vector<16x128xf32>
    %404 = arith.addf %398, %403 : vector<16x128xf32>
    %405 = vector.extract_strided_slice %355 {offsets = [2, 2, 0], sizes = [1, 16, 8], strides = [1, 1, 1]} : vector<3x18x8xbf16> to vector<1x16x8xbf16>
    %406 = vector.shape_cast %405 : vector<1x16x8xbf16> to vector<16x8xbf16>
    %c8_272 = arith.constant 8 : index
    %c0_273 = arith.constant 0 : index
    %c0_274 = arith.constant 0 : index
    %407 = vector.load %arg3[%c8_272, %c0_273, %c0_274] : memref<9x8x128xbf16, #tpu.memory_space<vmem>>, vector<1x8x128xbf16>
    %408 = vector.shape_cast %407 : vector<1x8x128xbf16> to vector<8x128xbf16>
    %cst_275 = arith.constant dense<0.000000e+00> : vector<16x128xf32>
    %409 = tpu.matmul %406, %408, %cst_275 {dimension_numbers = #tpu.dot_dimension_numbers<[1], [0], [0], [1], [0, 0, 1, 1], [], []>} : vector<16x8xbf16>, vector<8x128xbf16>, vector<16x128xf32> -> vector<16x128xf32>
    %410 = arith.addf %404, %409 : vector<16x128xf32>
    %c0_276 = arith.constant 0 : index
    %c0_277 = arith.constant 0 : index
    %411 = vector.load %arg4[%c0_276, %c0_277] : memref<1x128xf32, #tpu.memory_space<vmem>>, vector<1x128xf32>
    %412 = vector.broadcast %411 : vector<1x128xf32> to vector<16x128xf32>
    %413 = arith.addf %410, %412 : vector<16x128xf32>
    %cst_278 = arith.constant 0.000000e+00 : f32
    %414 = vector.broadcast %cst_278 : f32 to vector<16x128xf32>
    %415 = arith.maximumf %413, %414 : vector<16x128xf32>
    %416 = arith.truncf %415 : vector<16x128xf32> to vector<16x128xbf16>
    %c0_279 = arith.constant 0 : index
    %c5_280 = arith.constant 5 : index
    %c0_281 = arith.constant 0 : index
    %c0_282 = arith.constant 0 : index
    %417 = vector.load %arg5[%c0_279, %c5_280, %c0_281, %c0_282] : memref<1x8x16x128xbf16, #tpu.memory_space<vmem>>, vector<1x1x16x128xbf16>
    %418 = vector.shape_cast %417 : vector<1x1x16x128xbf16> to vector<16x128xbf16>
    %419 = vector.shape_cast %416 : vector<16x128xbf16> to vector<1x1x16x128xbf16>
    tpu.vector_store %arg5[%c0_279, %c5_280, %c0_281, %c0_282], %419 {strides = array<i32>} : memref<1x8x16x128xbf16, #tpu.memory_space<vmem>>, vector<1x1x16x128xbf16>,
    %c8_i32_283 = arith.constant 8 : i32
    %420 = arith.muli %arg1, %c8_i32_283 : i32
    %c6_i32 = arith.constant 6 : i32
    %421 = arith.addi %420, %c6_i32 : i32
    %c1_i32_284 = arith.constant 1 : i32
    %422 = arith.muli %421, %c1_i32_284 : i32
    %c0_285 = arith.constant 0 : index
    %423 = arith.index_cast %422 : i32 to index
    %c0_286 = arith.constant 0 : index
    %c0_287 = arith.constant 0 : index
    %424 = vector.load %arg2[%c0_285, %423, %c0_286, %c0_287] : memref<1x18x18x8xbf16, #tpu.memory_space<vmem>>, vector<1x3x18x8xbf16>
    %425 = vector.shape_cast %424 : vector<1x3x18x8xbf16> to vector<3x18x8xbf16>
    %cst_288 = arith.constant 0.000000e+00 : f32
    %426 = vector.broadcast %cst_288 : f32 to vector<16x128xf32>
    %427 = vector.extract_strided_slice %425 {offsets = [0, 0, 0], sizes = [1, 16, 8], strides = [1, 1, 1]} : vector<3x18x8xbf16> to vector<1x16x8xbf16>
    %428 = vector.shape_cast %427 : vector<1x16x8xbf16> to vector<16x8xbf16>
    %c0_289 = arith.constant 0 : index
    %c0_290 = arith.constant 0 : index
    %c0_291 = arith.constant 0 : index
    %429 = vector.load %arg3[%c0_289, %c0_290, %c0_291] : memref<9x8x128xbf16, #tpu.memory_space<vmem>>, vector<1x8x128xbf16>
    %430 = vector.shape_cast %429 : vector<1x8x128xbf16> to vector<8x128xbf16>
    %cst_292 = arith.constant dense<0.000000e+00> : vector<16x128xf32>
    %431 = tpu.matmul %428, %430, %cst_292 {dimension_numbers = #tpu.dot_dimension_numbers<[1], [0], [0], [1], [0, 0, 1, 1], [], []>} : vector<16x8xbf16>, vector<8x128xbf16>, vector<16x128xf32> -> vector<16x128xf32>
    %432 = arith.addf %426, %431 : vector<16x128xf32>
    %433 = vector.extract_strided_slice %425 {offsets = [0, 1, 0], sizes = [1, 16, 8], strides = [1, 1, 1]} : vector<3x18x8xbf16> to vector<1x16x8xbf16>
    %434 = vector.shape_cast %433 : vector<1x16x8xbf16> to vector<16x8xbf16>
    %c1_293 = arith.constant 1 : index
    %c0_294 = arith.constant 0 : index
    %c0_295 = arith.constant 0 : index
    %435 = vector.load %arg3[%c1_293, %c0_294, %c0_295] : memref<9x8x128xbf16, #tpu.memory_space<vmem>>, vector<1x8x128xbf16>
    %436 = vector.shape_cast %435 : vector<1x8x128xbf16> to vector<8x128xbf16>
    %cst_296 = arith.constant dense<0.000000e+00> : vector<16x128xf32>
    %437 = tpu.matmul %434, %436, %cst_296 {dimension_numbers = #tpu.dot_dimension_numbers<[1], [0], [0], [1], [0, 0, 1, 1], [], []>} : vector<16x8xbf16>, vector<8x128xbf16>, vector<16x128xf32> -> vector<16x128xf32>
    %438 = arith.addf %432, %437 : vector<16x128xf32>
    %439 = vector.extract_strided_slice %425 {offsets = [0, 2, 0], sizes = [1, 16, 8], strides = [1, 1, 1]} : vector<3x18x8xbf16> to vector<1x16x8xbf16>
    %440 = vector.shape_cast %439 : vector<1x16x8xbf16> to vector<16x8xbf16>
    %c2_297 = arith.constant 2 : index
    %c0_298 = arith.constant 0 : index
    %c0_299 = arith.constant 0 : index
    %441 = vector.load %arg3[%c2_297, %c0_298, %c0_299] : memref<9x8x128xbf16, #tpu.memory_space<vmem>>, vector<1x8x128xbf16>
    %442 = vector.shape_cast %441 : vector<1x8x128xbf16> to vector<8x128xbf16>
    %cst_300 = arith.constant dense<0.000000e+00> : vector<16x128xf32>
    %443 = tpu.matmul %440, %442, %cst_300 {dimension_numbers = #tpu.dot_dimension_numbers<[1], [0], [0], [1], [0, 0, 1, 1], [], []>} : vector<16x8xbf16>, vector<8x128xbf16>, vector<16x128xf32> -> vector<16x128xf32>
    %444 = arith.addf %438, %443 : vector<16x128xf32>
    %445 = vector.extract_strided_slice %425 {offsets = [1, 0, 0], sizes = [1, 16, 8], strides = [1, 1, 1]} : vector<3x18x8xbf16> to vector<1x16x8xbf16>
    %446 = vector.shape_cast %445 : vector<1x16x8xbf16> to vector<16x8xbf16>
    %c3_301 = arith.constant 3 : index
    %c0_302 = arith.constant 0 : index
    %c0_303 = arith.constant 0 : index
    %447 = vector.load %arg3[%c3_301, %c0_302, %c0_303] : memref<9x8x128xbf16, #tpu.memory_space<vmem>>, vector<1x8x128xbf16>
    %448 = vector.shape_cast %447 : vector<1x8x128xbf16> to vector<8x128xbf16>
    %cst_304 = arith.constant dense<0.000000e+00> : vector<16x128xf32>
    %449 = tpu.matmul %446, %448, %cst_304 {dimension_numbers = #tpu.dot_dimension_numbers<[1], [0], [0], [1], [0, 0, 1, 1], [], []>} : vector<16x8xbf16>, vector<8x128xbf16>, vector<16x128xf32> -> vector<16x128xf32>
    %450 = arith.addf %444, %449 : vector<16x128xf32>
    %451 = vector.extract_strided_slice %425 {offsets = [1, 1, 0], sizes = [1, 16, 8], strides = [1, 1, 1]} : vector<3x18x8xbf16> to vector<1x16x8xbf16>
    %452 = vector.shape_cast %451 : vector<1x16x8xbf16> to vector<16x8xbf16>
    %c4_305 = arith.constant 4 : index
    %c0_306 = arith.constant 0 : index
    %c0_307 = arith.constant 0 : index
    %453 = vector.load %arg3[%c4_305, %c0_306, %c0_307] : memref<9x8x128xbf16, #tpu.memory_space<vmem>>, vector<1x8x128xbf16>
    %454 = vector.shape_cast %453 : vector<1x8x128xbf16> to vector<8x128xbf16>
    %cst_308 = arith.constant dense<0.000000e+00> : vector<16x128xf32>
    %455 = tpu.matmul %452, %454, %cst_308 {dimension_numbers = #tpu.dot_dimension_numbers<[1], [0], [0], [1], [0, 0, 1, 1], [], []>} : vector<16x8xbf16>, vector<8x128xbf16>, vector<16x128xf32> -> vector<16x128xf32>
    %456 = arith.addf %450, %455 : vector<16x128xf32>
    %457 = vector.extract_strided_slice %425 {offsets = [1, 2, 0], sizes = [1, 16, 8], strides = [1, 1, 1]} : vector<3x18x8xbf16> to vector<1x16x8xbf16>
    %458 = vector.shape_cast %457 : vector<1x16x8xbf16> to vector<16x8xbf16>
    %c5_309 = arith.constant 5 : index
    %c0_310 = arith.constant 0 : index
    %c0_311 = arith.constant 0 : index
    %459 = vector.load %arg3[%c5_309, %c0_310, %c0_311] : memref<9x8x128xbf16, #tpu.memory_space<vmem>>, vector<1x8x128xbf16>
    %460 = vector.shape_cast %459 : vector<1x8x128xbf16> to vector<8x128xbf16>
    %cst_312 = arith.constant dense<0.000000e+00> : vector<16x128xf32>
    %461 = tpu.matmul %458, %460, %cst_312 {dimension_numbers = #tpu.dot_dimension_numbers<[1], [0], [0], [1], [0, 0, 1, 1], [], []>} : vector<16x8xbf16>, vector<8x128xbf16>, vector<16x128xf32> -> vector<16x128xf32>
    %462 = arith.addf %456, %461 : vector<16x128xf32>
    %463 = vector.extract_strided_slice %425 {offsets = [2, 0, 0], sizes = [1, 16, 8], strides = [1, 1, 1]} : vector<3x18x8xbf16> to vector<1x16x8xbf16>
    %464 = vector.shape_cast %463 : vector<1x16x8xbf16> to vector<16x8xbf16>
    %c6_313 = arith.constant 6 : index
    %c0_314 = arith.constant 0 : index
    %c0_315 = arith.constant 0 : index
    %465 = vector.load %arg3[%c6_313, %c0_314, %c0_315] : memref<9x8x128xbf16, #tpu.memory_space<vmem>>, vector<1x8x128xbf16>
    %466 = vector.shape_cast %465 : vector<1x8x128xbf16> to vector<8x128xbf16>
    %cst_316 = arith.constant dense<0.000000e+00> : vector<16x128xf32>
    %467 = tpu.matmul %464, %466, %cst_316 {dimension_numbers = #tpu.dot_dimension_numbers<[1], [0], [0], [1], [0, 0, 1, 1], [], []>} : vector<16x8xbf16>, vector<8x128xbf16>, vector<16x128xf32> -> vector<16x128xf32>
    %468 = arith.addf %462, %467 : vector<16x128xf32>
    %469 = vector.extract_strided_slice %425 {offsets = [2, 1, 0], sizes = [1, 16, 8], strides = [1, 1, 1]} : vector<3x18x8xbf16> to vector<1x16x8xbf16>
    %470 = vector.shape_cast %469 : vector<1x16x8xbf16> to vector<16x8xbf16>
    %c7_317 = arith.constant 7 : index
    %c0_318 = arith.constant 0 : index
    %c0_319 = arith.constant 0 : index
    %471 = vector.load %arg3[%c7_317, %c0_318, %c0_319] : memref<9x8x128xbf16, #tpu.memory_space<vmem>>, vector<1x8x128xbf16>
    %472 = vector.shape_cast %471 : vector<1x8x128xbf16> to vector<8x128xbf16>
    %cst_320 = arith.constant dense<0.000000e+00> : vector<16x128xf32>
    %473 = tpu.matmul %470, %472, %cst_320 {dimension_numbers = #tpu.dot_dimension_numbers<[1], [0], [0], [1], [0, 0, 1, 1], [], []>} : vector<16x8xbf16>, vector<8x128xbf16>, vector<16x128xf32> -> vector<16x128xf32>
    %474 = arith.addf %468, %473 : vector<16x128xf32>
    %475 = vector.extract_strided_slice %425 {offsets = [2, 2, 0], sizes = [1, 16, 8], strides = [1, 1, 1]} : vector<3x18x8xbf16> to vector<1x16x8xbf16>
    %476 = vector.shape_cast %475 : vector<1x16x8xbf16> to vector<16x8xbf16>
    %c8_321 = arith.constant 8 : index
    %c0_322 = arith.constant 0 : index
    %c0_323 = arith.constant 0 : index
    %477 = vector.load %arg3[%c8_321, %c0_322, %c0_323] : memref<9x8x128xbf16, #tpu.memory_space<vmem>>, vector<1x8x128xbf16>
    %478 = vector.shape_cast %477 : vector<1x8x128xbf16> to vector<8x128xbf16>
    %cst_324 = arith.constant dense<0.000000e+00> : vector<16x128xf32>
    %479 = tpu.matmul %476, %478, %cst_324 {dimension_numbers = #tpu.dot_dimension_numbers<[1], [0], [0], [1], [0, 0, 1, 1], [], []>} : vector<16x8xbf16>, vector<8x128xbf16>, vector<16x128xf32> -> vector<16x128xf32>
    %480 = arith.addf %474, %479 : vector<16x128xf32>
    %c0_325 = arith.constant 0 : index
    %c0_326 = arith.constant 0 : index
    %481 = vector.load %arg4[%c0_325, %c0_326] : memref<1x128xf32, #tpu.memory_space<vmem>>, vector<1x128xf32>
    %482 = vector.broadcast %481 : vector<1x128xf32> to vector<16x128xf32>
    %483 = arith.addf %480, %482 : vector<16x128xf32>
    %cst_327 = arith.constant 0.000000e+00 : f32
    %484 = vector.broadcast %cst_327 : f32 to vector<16x128xf32>
    %485 = arith.maximumf %483, %484 : vector<16x128xf32>
    %486 = arith.truncf %485 : vector<16x128xf32> to vector<16x128xbf16>
    %c0_328 = arith.constant 0 : index
    %c6_329 = arith.constant 6 : index
    %c0_330 = arith.constant 0 : index
    %c0_331 = arith.constant 0 : index
    %487 = vector.load %arg5[%c0_328, %c6_329, %c0_330, %c0_331] : memref<1x8x16x128xbf16, #tpu.memory_space<vmem>>, vector<1x1x16x128xbf16>
    %488 = vector.shape_cast %487 : vector<1x1x16x128xbf16> to vector<16x128xbf16>
    %489 = vector.shape_cast %486 : vector<16x128xbf16> to vector<1x1x16x128xbf16>
    tpu.vector_store %arg5[%c0_328, %c6_329, %c0_330, %c0_331], %489 {strides = array<i32>} : memref<1x8x16x128xbf16, #tpu.memory_space<vmem>>, vector<1x1x16x128xbf16>,
    %c8_i32_332 = arith.constant 8 : i32
    %490 = arith.muli %arg1, %c8_i32_332 : i32
    %c7_i32 = arith.constant 7 : i32
    %491 = arith.addi %490, %c7_i32 : i32
    %c1_i32_333 = arith.constant 1 : i32
    %492 = arith.muli %491, %c1_i32_333 : i32
    %c0_334 = arith.constant 0 : index
    %493 = arith.index_cast %492 : i32 to index
    %c0_335 = arith.constant 0 : index
    %c0_336 = arith.constant 0 : index
    %494 = vector.load %arg2[%c0_334, %493, %c0_335, %c0_336] : memref<1x18x18x8xbf16, #tpu.memory_space<vmem>>, vector<1x3x18x8xbf16>
    %495 = vector.shape_cast %494 : vector<1x3x18x8xbf16> to vector<3x18x8xbf16>
    %cst_337 = arith.constant 0.000000e+00 : f32
    %496 = vector.broadcast %cst_337 : f32 to vector<16x128xf32>
    %497 = vector.extract_strided_slice %495 {offsets = [0, 0, 0], sizes = [1, 16, 8], strides = [1, 1, 1]} : vector<3x18x8xbf16> to vector<1x16x8xbf16>
    %498 = vector.shape_cast %497 : vector<1x16x8xbf16> to vector<16x8xbf16>
    %c0_338 = arith.constant 0 : index
    %c0_339 = arith.constant 0 : index
    %c0_340 = arith.constant 0 : index
    %499 = vector.load %arg3[%c0_338, %c0_339, %c0_340] : memref<9x8x128xbf16, #tpu.memory_space<vmem>>, vector<1x8x128xbf16>
    %500 = vector.shape_cast %499 : vector<1x8x128xbf16> to vector<8x128xbf16>
    %cst_341 = arith.constant dense<0.000000e+00> : vector<16x128xf32>
    %501 = tpu.matmul %498, %500, %cst_341 {dimension_numbers = #tpu.dot_dimension_numbers<[1], [0], [0], [1], [0, 0, 1, 1], [], []>} : vector<16x8xbf16>, vector<8x128xbf16>, vector<16x128xf32> -> vector<16x128xf32>
    %502 = arith.addf %496, %501 : vector<16x128xf32>
    %503 = vector.extract_strided_slice %495 {offsets = [0, 1, 0], sizes = [1, 16, 8], strides = [1, 1, 1]} : vector<3x18x8xbf16> to vector<1x16x8xbf16>
    %504 = vector.shape_cast %503 : vector<1x16x8xbf16> to vector<16x8xbf16>
    %c1_342 = arith.constant 1 : index
    %c0_343 = arith.constant 0 : index
    %c0_344 = arith.constant 0 : index
    %505 = vector.load %arg3[%c1_342, %c0_343, %c0_344] : memref<9x8x128xbf16, #tpu.memory_space<vmem>>, vector<1x8x128xbf16>
    %506 = vector.shape_cast %505 : vector<1x8x128xbf16> to vector<8x128xbf16>
    %cst_345 = arith.constant dense<0.000000e+00> : vector<16x128xf32>
    %507 = tpu.matmul %504, %506, %cst_345 {dimension_numbers = #tpu.dot_dimension_numbers<[1], [0], [0], [1], [0, 0, 1, 1], [], []>} : vector<16x8xbf16>, vector<8x128xbf16>, vector<16x128xf32> -> vector<16x128xf32>
    %508 = arith.addf %502, %507 : vector<16x128xf32>
    %509 = vector.extract_strided_slice %495 {offsets = [0, 2, 0], sizes = [1, 16, 8], strides = [1, 1, 1]} : vector<3x18x8xbf16> to vector<1x16x8xbf16>
    %510 = vector.shape_cast %509 : vector<1x16x8xbf16> to vector<16x8xbf16>
    %c2_346 = arith.constant 2 : index
    %c0_347 = arith.constant 0 : index
    %c0_348 = arith.constant 0 : index
    %511 = vector.load %arg3[%c2_346, %c0_347, %c0_348] : memref<9x8x128xbf16, #tpu.memory_space<vmem>>, vector<1x8x128xbf16>
    %512 = vector.shape_cast %511 : vector<1x8x128xbf16> to vector<8x128xbf16>
    %cst_349 = arith.constant dense<0.000000e+00> : vector<16x128xf32>
    %513 = tpu.matmul %510, %512, %cst_349 {dimension_numbers = #tpu.dot_dimension_numbers<[1], [0], [0], [1], [0, 0, 1, 1], [], []>} : vector<16x8xbf16>, vector<8x128xbf16>, vector<16x128xf32> -> vector<16x128xf32>
    %514 = arith.addf %508, %513 : vector<16x128xf32>
    %515 = vector.extract_strided_slice %495 {offsets = [1, 0, 0], sizes = [1, 16, 8], strides = [1, 1, 1]} : vector<3x18x8xbf16> to vector<1x16x8xbf16>
    %516 = vector.shape_cast %515 : vector<1x16x8xbf16> to vector<16x8xbf16>
    %c3_350 = arith.constant 3 : index
    %c0_351 = arith.constant 0 : index
    %c0_352 = arith.constant 0 : index
    %517 = vector.load %arg3[%c3_350, %c0_351, %c0_352] : memref<9x8x128xbf16, #tpu.memory_space<vmem>>, vector<1x8x128xbf16>
    %518 = vector.shape_cast %517 : vector<1x8x128xbf16> to vector<8x128xbf16>
    %cst_353 = arith.constant dense<0.000000e+00> : vector<16x128xf32>
    %519 = tpu.matmul %516, %518, %cst_353 {dimension_numbers = #tpu.dot_dimension_numbers<[1], [0], [0], [1], [0, 0, 1, 1], [], []>} : vector<16x8xbf16>, vector<8x128xbf16>, vector<16x128xf32> -> vector<16x128xf32>
    %520 = arith.addf %514, %519 : vector<16x128xf32>
    %521 = vector.extract_strided_slice %495 {offsets = [1, 1, 0], sizes = [1, 16, 8], strides = [1, 1, 1]} : vector<3x18x8xbf16> to vector<1x16x8xbf16>
    %522 = vector.shape_cast %521 : vector<1x16x8xbf16> to vector<16x8xbf16>
    %c4_354 = arith.constant 4 : index
    %c0_355 = arith.constant 0 : index
    %c0_356 = arith.constant 0 : index
    %523 = vector.load %arg3[%c4_354, %c0_355, %c0_356] : memref<9x8x128xbf16, #tpu.memory_space<vmem>>, vector<1x8x128xbf16>
    %524 = vector.shape_cast %523 : vector<1x8x128xbf16> to vector<8x128xbf16>
    %cst_357 = arith.constant dense<0.000000e+00> : vector<16x128xf32>
    %525 = tpu.matmul %522, %524, %cst_357 {dimension_numbers = #tpu.dot_dimension_numbers<[1], [0], [0], [1], [0, 0, 1, 1], [], []>} : vector<16x8xbf16>, vector<8x128xbf16>, vector<16x128xf32> -> vector<16x128xf32>
    %526 = arith.addf %520, %525 : vector<16x128xf32>
    %527 = vector.extract_strided_slice %495 {offsets = [1, 2, 0], sizes = [1, 16, 8], strides = [1, 1, 1]} : vector<3x18x8xbf16> to vector<1x16x8xbf16>
    %528 = vector.shape_cast %527 : vector<1x16x8xbf16> to vector<16x8xbf16>
    %c5_358 = arith.constant 5 : index
    %c0_359 = arith.constant 0 : index
    %c0_360 = arith.constant 0 : index
    %529 = vector.load %arg3[%c5_358, %c0_359, %c0_360] : memref<9x8x128xbf16, #tpu.memory_space<vmem>>, vector<1x8x128xbf16>
    %530 = vector.shape_cast %529 : vector<1x8x128xbf16> to vector<8x128xbf16>
    %cst_361 = arith.constant dense<0.000000e+00> : vector<16x128xf32>
    %531 = tpu.matmul %528, %530, %cst_361 {dimension_numbers = #tpu.dot_dimension_numbers<[1], [0], [0], [1], [0, 0, 1, 1], [], []>} : vector<16x8xbf16>, vector<8x128xbf16>, vector<16x128xf32> -> vector<16x128xf32>
    %532 = arith.addf %526, %531 : vector<16x128xf32>
    %533 = vector.extract_strided_slice %495 {offsets = [2, 0, 0], sizes = [1, 16, 8], strides = [1, 1, 1]} : vector<3x18x8xbf16> to vector<1x16x8xbf16>
    %534 = vector.shape_cast %533 : vector<1x16x8xbf16> to vector<16x8xbf16>
    %c6_362 = arith.constant 6 : index
    %c0_363 = arith.constant 0 : index
    %c0_364 = arith.constant 0 : index
    %535 = vector.load %arg3[%c6_362, %c0_363, %c0_364] : memref<9x8x128xbf16, #tpu.memory_space<vmem>>, vector<1x8x128xbf16>
    %536 = vector.shape_cast %535 : vector<1x8x128xbf16> to vector<8x128xbf16>
    %cst_365 = arith.constant dense<0.000000e+00> : vector<16x128xf32>
    %537 = tpu.matmul %534, %536, %cst_365 {dimension_numbers = #tpu.dot_dimension_numbers<[1], [0], [0], [1], [0, 0, 1, 1], [], []>} : vector<16x8xbf16>, vector<8x128xbf16>, vector<16x128xf32> -> vector<16x128xf32>
    %538 = arith.addf %532, %537 : vector<16x128xf32>
    %539 = vector.extract_strided_slice %495 {offsets = [2, 1, 0], sizes = [1, 16, 8], strides = [1, 1, 1]} : vector<3x18x8xbf16> to vector<1x16x8xbf16>
    %540 = vector.shape_cast %539 : vector<1x16x8xbf16> to vector<16x8xbf16>
    %c7_366 = arith.constant 7 : index
    %c0_367 = arith.constant 0 : index
    %c0_368 = arith.constant 0 : index
    %541 = vector.load %arg3[%c7_366, %c0_367, %c0_368] : memref<9x8x128xbf16, #tpu.memory_space<vmem>>, vector<1x8x128xbf16>
    %542 = vector.shape_cast %541 : vector<1x8x128xbf16> to vector<8x128xbf16>
    %cst_369 = arith.constant dense<0.000000e+00> : vector<16x128xf32>
    %543 = tpu.matmul %540, %542, %cst_369 {dimension_numbers = #tpu.dot_dimension_numbers<[1], [0], [0], [1], [0, 0, 1, 1], [], []>} : vector<16x8xbf16>, vector<8x128xbf16>, vector<16x128xf32> -> vector<16x128xf32>
    %544 = arith.addf %538, %543 : vector<16x128xf32>
    %545 = vector.extract_strided_slice %495 {offsets = [2, 2, 0], sizes = [1, 16, 8], strides = [1, 1, 1]} : vector<3x18x8xbf16> to vector<1x16x8xbf16>
    %546 = vector.shape_cast %545 : vector<1x16x8xbf16> to vector<16x8xbf16>
    %c8_370 = arith.constant 8 : index
    %c0_371 = arith.constant 0 : index
    %c0_372 = arith.constant 0 : index
    %547 = vector.load %arg3[%c8_370, %c0_371, %c0_372] : memref<9x8x128xbf16, #tpu.memory_space<vmem>>, vector<1x8x128xbf16>
    %548 = vector.shape_cast %547 : vector<1x8x128xbf16> to vector<8x128xbf16>
    %cst_373 = arith.constant dense<0.000000e+00> : vector<16x128xf32>
    %549 = tpu.matmul %546, %548, %cst_373 {dimension_numbers = #tpu.dot_dimension_numbers<[1], [0], [0], [1], [0, 0, 1, 1], [], []>} : vector<16x8xbf16>, vector<8x128xbf16>, vector<16x128xf32> -> vector<16x128xf32>
    %550 = arith.addf %544, %549 : vector<16x128xf32>
    %c0_374 = arith.constant 0 : index
    %c0_375 = arith.constant 0 : index
    %551 = vector.load %arg4[%c0_374, %c0_375] : memref<1x128xf32, #tpu.memory_space<vmem>>, vector<1x128xf32>
    %552 = vector.broadcast %551 : vector<1x128xf32> to vector<16x128xf32>
    %553 = arith.addf %550, %552 : vector<16x128xf32>
    %cst_376 = arith.constant 0.000000e+00 : f32
    %554 = vector.broadcast %cst_376 : f32 to vector<16x128xf32>
    %555 = arith.maximumf %553, %554 : vector<16x128xf32>
    %556 = arith.truncf %555 : vector<16x128xf32> to vector<16x128xbf16>
    %c0_377 = arith.constant 0 : index
    %c7_378 = arith.constant 7 : index
    %c0_379 = arith.constant 0 : index
    %c0_380 = arith.constant 0 : index
    %557 = vector.load %arg5[%c0_377, %c7_378, %c0_379, %c0_380] : memref<1x8x16x128xbf16, #tpu.memory_space<vmem>>, vector<1x1x16x128xbf16>
    %558 = vector.shape_cast %557 : vector<1x1x16x128xbf16> to vector<16x128xbf16>
    %559 = vector.shape_cast %556 : vector<16x128xbf16> to vector<1x1x16x128xbf16>
    tpu.vector_store %arg5[%c0_377, %c7_378, %c0_379, %c0_380], %559 {strides = array<i32>} : memref<1x8x16x128xbf16, #tpu.memory_space<vmem>>, vector<1x1x16x128xbf16>,
    return
  }
  func.func @transform_0(%arg0: i32, %arg1: i32) -> (i32, i32, i32, i32) {
    %c0_i32 = arith.constant 0 : i32
    %c0_i32_0 = arith.constant 0 : i32
    %c0_i32_1 = arith.constant 0 : i32
    %c0_i32_2 = arith.constant 0 : i32
    return %arg0, %c0_i32, %c0_i32_0, %c0_i32_1 : i32, i32, i32, i32
  }
  func.func @transform_1(%arg0: i32, %arg1: i32) -> (i32, i32, i32) {
    %c0_i32 = arith.constant 0 : i32
    %c0_i32_0 = arith.constant 0 : i32
    %c0_i32_1 = arith.constant 0 : i32
    %c0_i32_2 = arith.constant 0 : i32
    return %c0_i32, %c0_i32_0, %c0_i32_1 : i32, i32, i32
  }
  func.func @transform_2(%arg0: i32, %arg1: i32) -> (i32, i32) {
    %c0_i32 = arith.constant 0 : i32
    %c0_i32_0 = arith.constant 0 : i32
    %c0_i32_1 = arith.constant 0 : i32
    return %c0_i32, %c0_i32_0 : i32, i32
  }
  func.func @transform_3(%arg0: i32, %arg1: i32) -> (i32, i32, i32, i32) {
    %c0_i32 = arith.constant 0 : i32
    %c0_i32_0 = arith.constant 0 : i32
    %c0_i32_1 = arith.constant 0 : i32
    return %arg0, %arg1, %c0_i32, %c0_i32_0 : i32, i32, i32, i32
  }
}

</mosaic_0001>

<bundles_post_ra>
// kernel: tpu_custom_call.1
= control target key start
LH: loop header
LB: loop body
LE: loop exit
PB: predicated region body
PF: predicated region fallthrough
CT: control target
= control target key end

     0   :  { %8 = vsyncpa [#allocation3], 0  ;;  %s6900_s0 = inlined_call_operand.vmem [shape: bf16[2,18,18,8], index: 0, kind: input, shape index: {}]   ;;  %s6901_s1 = inlined_call_operand.vmem [shape: bf16[9,8,128], index: 1, kind: input, shape index: {}]   ;;  %s6902_s2 = inlined_call_operand.vmem [shape: f32[1,128], index: 2, kind: input, shape index: {}]   ;;  %s6903_s3 = inlined_call_operand.hbm [shape: bf16[2,16,16,128], index: 3, kind: output, shape index: {}]  }
   0x1   :  { %10 = vsyncpa [#allocation3 + $0x1], 0  ;;  %s5895_s12 = smov 0   ;;  %s5897_s13 = smov 0  }
   0x2   :  { %s5899_s14 = smov 0   ;;  %s5901_s15 = smov 0  }
   0x3   :  { %s5903_s16 = smov 0   ;;  %s5905_s17 = smov 0  }
   0x4   :  { %s5907_s18 = smov 0   ;;  %s5909_s19 = smov 0  }
   0x5 LB: > { %s4695_s20 = sadd.s32 4294967295, %s5868_s19   ;;  %s4696_s21 = sadd.s32 4294967294, %s5868_s19   ;;  %s5868_s19 = sphi %s5909_s19, %s16_s19   ;;  %s5864_s18 = sphi %s5907_s18, %s6912_s18   ;;  %s5860_s17 = sphi %s5905_s17, %s6911_s17   ;;  %s5856_s16 = sphi %s5903_s16, %s6910_s16   ;;  %s5852_s15 = sphi %s5901_s15, %s6909_s15   ;;  %s5848_s14 = sphi %s5899_s14, %s6908_s14   ;;  %s5844_s13 = sphi %s5897_s13, %s6907_s13   ;;  %s5840_s12 = sphi %s5895_s12, %s6906_s12  }
   0x6   : > { %s25_s22 = sadd.s32 1, %s5860_s17  ;;  %s28_s23 = sadd.s32 1, %s5864_s18 }
   0x7   : > { %p26_p0 = scmp.ge.s32.totalorder %s25_s22, 2  ;;  %p115_p1 = scmp.ne.s32.totalorder %s5848_s14, %s5844_s13 }
   0x8   : > { %p116_p2 = scmp.eq.s32.totalorder %s4695_s20, 3  ;;  %p121_p5 = scmp.ne.s32.totalorder %s5844_s13, %s5840_s12 }
   0x9   : > { %s6914_s22 = smov (%p26_p0, %s25_s22), 0  ;;  %s6916_s23 = smov (!%p26_p0, %s28_s23), %s5864_s18 }
   0xa   : > { %s101_s24 = ssub.s32 %s5860_s17, %s6914_s22  ;;  %p5946_p3 = por %p116_p2, %p115_p1 }
   0xb   : > { %p30_p4 = scmp.ge.s32.totalorder %s6916_s23, 2  ;;  %p122_p6 = scmp.eq.s32.totalorder %s4696_s21, 3 }
   0xc   : > { %p4699_p7 = scmp.ge.s32.totalorder %s5868_s19, 1  ;;  %p154_p9 = scmp.lt.s32.totalorder %s5868_s19, 5 }
   0xd   : > { %s6918_s23 = smov (%p30_p4, %s6916_s23), 0  ;;  %p5955_p8 = por %p122_p6, %p121_p5 }
   0xe   : > { %s100_s27 = ssub.s32 %s5864_s18, %s6918_s23  ;;  %s105_s28 = sadd.s32 1, %s5848_s14 }
   0xf   : > { %s102_s29 = sor.u32 %s101_s24, %s100_s27  ;;  %p155_p10 = pnand %p4699_p7, %p154_p9 }
  0x10   : > { %p103_p11 = scmp.eq.s32.totalorder %s102_s29, 0  ;;  %p178_p12 = scmp.lt.s32.totalorder (!%p155_p10), %s5856_s16, 1 }
  0x11   : > { %158 = sbr.rel (%p155_p10) target bundleno = 538 (0x21a), region = 32  ;;  %s175_s6 = sand.u32 (!%p155_p10), 1, %s5844_s13  }
  0x12   : > { %s5964_s30 = scalar_select %p103_p11, %s5848_s14, %s105_s28  }
  0x13   : > { %s5011_s9 = smul.u32 (!%p155_p10), 96, %s5852_s15  ;;  %s5028_s7 = sshll.u32 (!%p155_p10), %s5852_s15, 4 }
  0x16   : > { %v198_v0 = vld [vmem:[%s6901_s1] sm:$0xf]  ;;  %vm226_vm0 = vcmask 1043456   ;;  %v5870_v1 = vmov 0.0   ;;  %v4705_v3 = vld [vmem:[%s6901_s1 + $0x4] sm:$0xf] }
  0x17   : > { %5226 = vmatprep.subr.bf16.mxu1 %v5870_v1  ;;  %v274_v2 = vsel %vm226_vm0, %v198_v0, 0  ;;  %5220 = vmatprep.subr.bf16.mxu0 %v5870_v1  ;;  %vm5871_vm1 = vmmov 0   ;;  %v228_v4 = vsel %vm226_vm0, %v4705_v3, 0  ;;  %s179_s8 = scalar_select %p178_p12, %s5856_s16, 1  ;;  %v4712_v5 = vld [vmem:[%s6901_s1 + $0xc] sm:$0xf] }
  0x18   : > { %5227 = vmatpush3.bf16.msra.mxu1 %v274_v2  ;;  %5228 = vmatprep.mubr.msk.bf16.mxu1 %vm5871_vm1, %v5870_v1  ;;  %vm222_vm2 = vcmask 64512   ;;  %v383_v7 = vsel %vm226_vm0, %v4712_v5, 0  ;;  %vm209_vm3 = vsmask.f32 7424  ;;  %v4710_v13 = vld [vmem:[%s6901_s1 + $0x8] sm:$0xf] }
  0x19   : > { %5221 = vmatpush3.bf16.msra.mxu0 %v228_v4  ;;  %5222 = vmatprep.mubr.msk.bf16.mxu0 %vm5871_vm1, %v5870_v1  ;;  %s5652_s10 = smul.u32 216, %s179_s8  ;;  %v4718_v17 = vld [vmem:[%s6901_s1 + $0x14] sm:$0xf]  ;;  %v327_v18 = vsel %vm226_vm0, %v4710_v13, 0  ;;  %vm319_vm4 = vcmask 1046528   ;;  %s5007_s8 = sshll.u32 %s5856_s16, 5 }
  0x1a   : > { %5232 = vmatprep.subr.bf16.mxu0 %v5870_v1  ;;  %5238 = vmatprep.subr.bf16.mxu1 %v5870_v1  ;;  %v502_v22 = vsel %vm226_vm0, %v4718_v17, 0  ;;  %v4715_v25 = vld [vmem:[%s6901_s1 + $0x10] sm:$0xf]  ;;  %v4723_v36 = vld [vmem:[%s6901_s1 + $0x1c] sm:$0xf]  ;;  %s6849_s16 = scalar_lea.sflag [#allocation3], %s175_s6 }
  0x1b   : > { %s182_s27 = scalar_lea.vmem %s6900_s0, %s5652_s10  ;;  %v448_v31 = vsel %vm226_vm0, %v4715_v25, 0  ;;  %v623_v42 = vsel %vm226_vm0, %v4723_v36, 0  ;;  %v4720_v45 = vld [vmem:[%s6901_s1 + $0x18] sm:$0xf]  ;;  %v4742_v52 = vld [vmem:[%s6901_s1 + $0x4] sm:$0xf] }
  0x1c   : > { %s5991_s28 = scalar_lea.vmem %s182_s27, %s5011_s9  ;;  %v558_v51 = vsel %vm226_vm0, %v4720_v45, 0  ;;  %v782_v57 = vsel %vm226_vm0, %v4742_v52, 0  ;;  %v4726_v60 = vld [vmem:[%s6901_s1 + $0x20] sm:$0xf]  ;;  %v4747_v61 = vld [vmem:[%s6901_s1 + $0x8] sm:$0xf] }
  0x1d   : > { %v5728_v6 = vld [vmem:[%s5991_s28] sm:$0xff]   ;;  %v5729_v8 = vld [vmem:[%s5991_s28 + $0x8] ss:$0 sps:$4 sm:$0x11]   ;;  %v5730_v16 = vld [vmem:[%s5991_s28 + $0xc] sm:$0xff]   ;;  %v677_v62 = vsel %vm226_vm0, %v4726_v60, 0 }
  0x1e   : > { %5229 = vmatmul.mubr.msk.bf16.vlgmr.msra.gmra.mxu1 %vm222_vm2, %v5728_v6  ;;  %v211_v9 = vshrl.u32 %v5728_v6, 16  ;;  %v213_v10 = vshll.u32 %v5728_v6, 16  ;;  %v218_v11 = vshll.u32 %v5729_v8, 16  ;;  %v5731_v19 = vld [vmem:[%s5991_s28 + $0x14] ss:$0 sps:$4 sm:$0x11]  }
  0x1f   : > { %5239 = vmatpush3.bf16.msra.mxu1 %v383_v7  ;;  %5240 = vmatprep.mubr.msk.bf16.mxu1 %vm5871_vm1, %v5870_v1  ;;  %v6010_v20 = vld [vmem:[%s5991_s28 + $0x18] sm:$0xff]   ;;  %v320_v23 = vrot.slane %v5728_v6, 1  ;;  %v321_v24 = vrot.slane %v5729_v8, 1  ;;  %v435_v26 = vshll.u32 %v5730_v16, 16  ;;  %v495_v27 = vrot.slane %v5730_v16, 1  ;;  %v6038_v41 = vld [vmem:[%s5991_s28 + $0xc] sm:$0xff]  }
  0x20   : > { %v215_v12 = vrot.slane %v213_v10, 1  ;;  %5250 = vmatprep.subr.bf16.mxu1 %v5870_v1  ;;  %v220_v14 = vrot.slane %v218_v11, 1  ;;  %v496_v28 = vrot.slane %v5731_v19, 1  ;;  %v6023_v29 = vld [vmem:[%s5991_s28 + $0x20] ss:$0 sps:$4 sm:$0x11]  }
  0x21   : > { %v610_v30 = vshll.u32 %v6010_v20, 16  ;;  %v322_v32 = vsel %vm319_vm4, %v320_v23, %v321_v24  ;;  %v433_v33 = vshrl.u32 %v5730_v16, 16  ;;  %v437_v34 = vrot.slane %v435_v26, 1  ;;  %v5735_v48 = vld [vmem:[%s5991_s28 + $0x14] ss:$0 sps:$4 sm:$0x11]  }
  0x22   : > { %v216_v15 = vor.u32 %v215_v12, %v211_v9  ;;  %v440_v35 = vshll.u32 %v5731_v19, 16  ;;  %v497_v37 = vsel %vm319_vm4, %v495_v27, %v496_v28  ;;  %v608_v38 = vshrl.u32 %v6010_v20, 16  ;;  %v6079_v0 = vld [vmem:[%s5991_s28 + $0x18] sm:$0xff]   ;;  %v756_v5 = vld [vmem:[%s6901_s1] sm:$0xf]  ;;  %v5738_v26 = vld [vmem:[%s5991_s28 + $0x24] sm:$0xff]  }
  0x23   : > { %v612_v39 = vrot.slane %v610_v30, 1  ;;  %v615_v40 = vshll.u32 %v6023_v29, 16  ;;  %v438_v43 = vor.u32 %v437_v34, %v433_v33  ;;  %v769_v49 = vshll.u32 %v6038_v41, 16  ;;  %v5737_v8 = vld [vmem:[%s5991_s28 + $0x20] ss:$0 sps:$4 sm:$0x11]  }
  0x24   : > { %v221_v21 = vsel %vm209_vm3, %v216_v15, %v220_v14  ;;  %v442_v44 = vrot.slane %v440_v35, 1  ;;  %v767_v54 = vshrl.u32 %v6038_v41, 16  ;;  %v774_v56 = vshll.u32 %v5735_v48, 16  ;;  %v4752_v12 = vld [vmem:[%s6901_s1 + $0x10] sm:$0xf]  ;;  %s4700_s9 = sshll.u32 %s175_s6, 6 }
  0x25   : > { %5223 = vmatmul.mubr.msk.bf16.vlgmr.msra.gmra.mxu0 %vm222_vm2, %v221_v21  ;;  %v613_v46 = vor.u32 %v612_v39, %v608_v38  ;;  %v617_v47 = vrot.slane %v615_v40, 1  ;;  %v771_v55 = vrot.slane %v769_v49, 1  ;;  %v879_v2 = vsel %vm226_vm0, %v4747_v61, 0  ;;  %v4757_v21 = vld [vmem:[%s6901_s1 + $0x18] sm:$0xf]  ;;  %s6701_s20 = scalar_lea.vmem [#allocation2], %s4700_s9  ;;  %s4586_s9 = sadd.s32 %s5028_s7, %s5007_s8 }
  0x26   : > { %5233 = vmatpush3.bf16.msra.mxu0 %v327_v18  ;;  %5241 = vmatmul.mubr.msk.bf16.vlgmr.msra.gmra.mxu1 %vm222_vm2, %v5730_v16  ;;  %v443_v50 = vsel %vm209_vm3, %v438_v43, %v442_v44  ;;  %v776_v59 = vrot.slane %v774_v56, 1  ;;  %v670_v3 = vrot.slane %v6010_v20, 1  ;;  %v671_v4 = vrot.slane %v6023_v29, 1  ;;  %v4755_v25 = vld [vmem:[%s6901_s1 + $0x14] sm:$0xf]  ;;  %s5008_s10 = sshll.u32 %s4586_s9, 6 }
  0x27   : > { %5234 = vmatprep.mubr.msk.bf16.mxu0 %vm5871_vm1, %v5870_v1  ;;  %5244 = vmatprep.subr.bf16.mxu0 %v5870_v1  ;;  %v618_v53 = vsel %vm209_vm3, %v613_v46, %v617_v47  ;;  %v772_v58 = vor.u32 %v771_v55, %v767_v54  ;;  %v872_v6 = vrot.slane %v6038_v41, 1  ;;  %v873_v7 = vrot.slane %v5735_v48, 1  ;;  %v4763_v27 = vld [vmem:[%s6901_s1 + $0x20] sm:$0xf]  ;;  %v4760_v36 = vld [vmem:[%s6901_s1 + $0x1c] sm:$0xf]  ;;  %s6842_s15 = scalar_lea.hbm %s6903_s3, %s5008_s10 }
  0x28   : > { %5251 = vmatpush3.bf16.msra.mxu1 %v502_v22  ;;  %5252 = vmatprep.mubr.msk.bf16.mxu1 %vm5871_vm1, %v5870_v1  ;;  %v985_v9 = vshll.u32 %v6079_v0, 16  ;;  %v672_v10 = vsel %vm319_vm4, %v670_v3, %v671_v4  ;;  %v828_v11 = vsel %vm226_vm0, %v756_v5, 0  ;;  %v983_v13 = vshrl.u32 %v6079_v0, 16  ;;  %v5739_v29 = vld [vmem:[%s5991_s28 + $0x2c] ss:$0 sps:$4 sm:$0x11]  }
  0x29   : > { %5262 = vmatprep.subr.bf16.mxu1 %v5870_v1  ;;  %v777_v63 = vsel %vm209_vm3, %v772_v58, %v776_v59  ;;  %v874_v14 = vsel %vm319_vm4, %v872_v6, %v873_v7  ;;  %v990_v16 = vshll.u32 %v5737_v8, 16  ;;  %v998_v17 = vsel %vm226_vm0, %v4752_v12, 0  ;;  %v4781_v45 = vld [vmem:[%s6901_s1 + $0x4] sm:$0xf]  ;;  %v4786_v60 = vld [vmem:[%s6901_s1 + $0x8] sm:$0xf] }
  0x2a   : > { %v987_v15 = vrot.slane %v985_v9, 1  ;;  %v1106_v24 = vsel %vm226_vm0, %v4757_v21, 0  ;;  %v1051_v28 = vsel %vm226_vm0, %v4755_v25, 0  ;;  %v1223_v30 = vsel %vm226_vm0, %v4763_v27, 0  ;;  %v6201_v3 = vld [vmem:[%s5991_s28 + $0x30] sm:$0xff]   ;;  %s4589_s11 = sshll.u32 %s6701_s20, 4  ;;  %s6844_s11 = int_to_ptr.vmem [resolvable:$true] %s4589_s11 }
  0x2b   : > { %v992_v19 = vrot.slane %v990_v16, 1  ;;  %v1157_v33 = vshll.u32 %v5738_v26, 16  ;;  %v1216_v34 = vrot.slane %v5738_v26, 1  ;;  %v1217_v35 = vrot.slane %v5739_v29, 1  ;;  %v4791_v7 = vld [vmem:[%s6901_s1 + $0x10] sm:$0xf] }
  0x2c   : > { %v988_v18 = vor.u32 %v987_v15, %v983_v13  ;;  %v1155_v38 = vshrl.u32 %v5738_v26, 16  ;;  %v1162_v40 = vshll.u32 %v5739_v29, 16  ;;  %v1170_v43 = vsel %vm226_vm0, %v4760_v36, 0  ;;  %v5741_v47 = vld [vmem:[%s5991_s28 + $0x20] ss:$0 sps:$4 sm:$0x11]  }
  0x2d   : > { %5235 = vmatmul.mubr.msk.bf16.vlgmr.msra.gmra.mxu0 %vm222_vm2, %v322_v32  ;;  %v1045_v32 = vrot.slane %v5737_v8, 1  ;;  %v1159_v39 = vrot.slane %v1157_v33, 1  ;;  %v1218_v44 = vsel %vm319_vm4, %v1216_v34, %v1217_v35  ;;  %v1321_v56 = vshll.u32 %v5741_v47, 16  ;;  %v4796_v27 = vld [vmem:[%s6901_s1 + $0x18] sm:$0xf]  ;;  %s5776_s27 = scalar_lea.vmem %s6844_s11, 1024 }
  0x2e   : > { %5245 = vmatpush3.bf16.msra.mxu0 %v448_v31  ;;  %5253 = vmatmul.mubr.msk.bf16.vlgmr.msra.gmra.mxu1 %vm222_vm2, %v497_v37  ;;  %v993_v23 = vsel %vm209_vm3, %v988_v18, %v992_v19  ;;  %v1044_v31 = vrot.slane %v6079_v0, 1  ;;  %v1164_v49 = vrot.slane %v1162_v40, 1  ;;  %v1420_v6 = vrot.slane %v5741_v47, 1  ;;  %v4799_v18 = vld [vmem:[%s6901_s1 + $0x1c] sm:$0xf]  ;;  %p5777_p13 = scmp.ne.s32.totalorder %s6844_s11, %s5776_s27 }
  0x2f   : > { %5246 = vmatprep.mubr.msk.bf16.mxu0 %vm5871_vm1, %v5870_v1  ;;  %5256 = vmatprep.subr.bf16.mxu0 %v5870_v1  ;;  %v1160_v48 = vor.u32 %v1159_v39, %v1155_v38  ;;  %v1323_v59 = vrot.slane %v1321_v56, 1  ;;  %v1704_v12 = vshll.u32 %v6201_v3, 16  ;;  %v1545_v13 = vsel %vm226_vm0, %v4791_v7, 0  ;;  %v4820_v34 = vld [vmem:[%s6901_s1 + $0x4] sm:$0xf] }
  0x30   : > { %5263 = vmatpush3.bf16.msra.mxu1 %v623_v42  ;;  %5264 = vmatprep.mubr.msk.bf16.mxu1 %vm5871_vm1, %v5870_v1  ;;  %v1046_v37 = vsel %vm319_vm4, %v1044_v31, %v1045_v32  ;;  %v5740_v42 = vld [vmem:[%s5991_s28 + $0x18] sm:$0xff]   ;;  %v1653_v33 = vsel %vm226_vm0, %v4796_v27, 0  ;;  %v1876_v39 = vsel %vm226_vm0, %v4820_v34, 0  ;;  %v4833_v7 = vld [vmem:[%s6901_s1 + $0x14] sm:$0xf]  ;;  %p5778_p0 = pnand %p5777_p13, %p5946_p3 }
  0x31   : > { %5274 = vmatprep.subr.bf16.mxu1 %v5870_v1  ;;  %v1314_v52 = vshrl.u32 %v5740_v42, 16  ;;  %v1165_v54 = vsel %vm209_vm3, %v1160_v48, %v1164_v49  ;;  %v1419_v5 = vrot.slane %v5740_v42, 1  ;;  %v1706_v21 = vrot.slane %v1704_v12, 1 }
  0x32   : > { %v1763_v48 = vrot.slane %v6201_v3, 1  ;;  %p5779_p1 = pneg %p5778_p0 }
  0x35   : > { %5247 = vmatmul.mubr.msk.bf16.vlgmr.msra.gmra.mxu0 %vm222_vm2, %v443_v50  ;;  %v1316_v50 = vshll.u32 %v5740_v42, 16 }
  0x36   : > { %5257 = vmatpush3.bf16.msra.mxu0 %v558_v51  ;;  %5265 = vmatmul.mubr.msk.bf16.vlgmr.msra.gmra.mxu1 %vm222_vm2, %v618_v53  ;;  %v1329_v51 = vsel %vm226_vm0, %v4781_v45, 0  ;;  %v4788_v53 = vld [vmem:[%s6901_s1 + $0xc] sm:$0xf] }
  0x37   : > { %5258 = vmatprep.mubr.msk.bf16.mxu0 %vm5871_vm1, %v5870_v1  ;;  %5268 = vmatprep.subr.bf16.mxu0 %v5870_v1  ;;  %v1318_v55 = vrot.slane %v1316_v50, 1  ;;  %v1850_v50 = vld [vmem:[%s6901_s1] sm:$0xf] }
  0x38   : > { %5275 = vmatpush3.bf16.msra.mxu1 %v782_v57  ;;  %5276 = vmatprep.mubr.msk.bf16.mxu1 %vm5871_vm1, %v5870_v1  ;;  %v1481_v57 = vsel %vm226_vm0, %v4788_v53, 0  ;;  %v5749_v53 = vld [vmem:[%s5991_s28 + $0x38] ss:$0 sps:$4 sm:$0x11]   ;;  %v1922_v56 = vsel %vm226_vm0, %v1850_v50, 0 }
  0x39   : > { %5286 = vmatprep.subr.bf16.mxu1 %v5870_v1  ;;  %v1319_v58 = vor.u32 %v1318_v55, %v1314_v52 }
  0x3b   : > { %v1324_v61 = vsel %vm209_vm3, %v1319_v58, %v1323_v59 }
  0x3d   : > { %5259 = vmatmul.mubr.msk.bf16.vlgmr.msra.gmra.mxu0 %vm222_vm2, %v6010_v20  ;;  %v4749_v20 = vld [vmem:[%s6901_s1 + $0xc] sm:$0xf] }
  0x3e   : > { %5269 = vmatpush3.bf16.msra.mxu0 %v677_v62  ;;  %5277 = vmatmul.mubr.msk.bf16.vlgmr.msra.gmra.mxu1 %vm222_vm2, %v777_v63  ;;  %v934_v22 = vsel %vm226_vm0, %v4749_v20, 0  ;;  %v5742_v62 = vld [vmem:[%s5991_s28 + $0x24] sm:$0xff]   ;;  %v4794_v63 = vld [vmem:[%s6901_s1 + $0x14] sm:$0xf]  ;;  %v1702_v20 = vshrl.u32 %v6201_v3, 16 }
  0x3f   : > { %5270 = vmatprep.mubr.msk.bf16.mxu0 %vm5871_vm1, %v5870_v1  ;;  %5280 = vmatprep.subr.bf16.mxu0 %v5870_v1  ;;  %v1598_v4 = vsel %vm226_vm0, %v4794_v63, 0  ;;  %v1532_v8 = vshll.u32 %v5742_v62, 16  ;;  %v1591_v9 = vrot.slane %v5742_v62, 1  ;;  %v1530_v15 = vshrl.u32 %v5742_v62, 16 }
  0x40   : > { %5287 = vmatpush3.bf16.msra.mxu1 %v879_v2  ;;  %5288 = vmatprep.mubr.msk.bf16.mxu1 %vm5871_vm1, %v5870_v1  ;;  %v5743_v2 = vld [vmem:[%s5991_s28 + $0x2c] ss:$0 sps:$4 sm:$0x11]  }
  0x41   : > { %5298 = vmatprep.subr.bf16.mxu1 %v5870_v1  ;;  %v1534_v16 = vrot.slane %v1532_v8, 1  ;;  %v5750_v8 = vld [vmem:[%s5991_s28 + $0x3c] sm:$0xff]  }
  0x43   : > { %v1535_v25 = vor.u32 %v1534_v16, %v1530_v15  ;;  %v2251_v15 = vshll.u32 %v5750_v8, 16  ;;  %v2310_v16 = vrot.slane %v5750_v8, 1 }
  0x45   : > { %5271 = vmatmul.mubr.msk.bf16.vlgmr.msra.gmra.mxu0 %vm222_vm2, %v672_v10  ;;  %v1592_v10 = vrot.slane %v5743_v2, 1 }
  0x46   : > { %5281 = vmatpush3.bf16.msra.mxu0 %v828_v11  ;;  %5289 = vmatmul.mubr.msk.bf16.vlgmr.msra.gmra.mxu1 %vm222_vm2, %v874_v14  ;;  %v6213_v11 = vld [vmem:[%s5991_s28 + $0x38] ss:$0 sps:$4 sm:$0x11]   ;;  %v1421_v14 = vsel %vm319_vm4, %v1419_v5, %v1420_v6 }
  0x47   : > { %5282 = vmatprep.mubr.msk.bf16.mxu0 %vm5871_vm1, %v5870_v1  ;;  %5292 = vmatprep.subr.bf16.mxu0 %v5870_v1  ;;  %v1593_v19 = vsel %vm319_vm4, %v1591_v9, %v1592_v10  ;;  %v1764_v49 = vrot.slane %v6213_v11, 1  ;;  %v4841_v9 = vld [vmem:[%s6901_s1 + $0x20] sm:$0xf]  ;;  %v2145_v10 = vsel %vm226_vm0, %v4833_v7, 0 }
  0x48   : > { %5299 = vmatpush3.bf16.msra.mxu1 %v998_v17  ;;  %5300 = vmatprep.mubr.msk.bf16.mxu1 %vm5871_vm1, %v5870_v1  ;;  %v1537_v17 = vshll.u32 %v5743_v2, 16  ;;  %v4827_v2 = vld [vmem:[%s6901_s1 + $0xc] sm:$0xf]  ;;  %v2317_v12 = vsel %vm226_vm0, %v4841_v9, 0  ;;  %v4874_v9 = vld [vmem:[%s6901_s1 + $0x18] sm:$0xf] }
  0x49   : > { %5310 = vmatprep.subr.bf16.mxu1 %v5870_v1  ;;  %v1765_v55 = vsel %vm319_vm4, %v1763_v48, %v1764_v49  ;;  %v6391_v48 = vld [vmem:[%s5991_s28 + $0x48] sm:$0xff]  }
  0x4d   : > { %5283 = vmatmul.mubr.msk.bf16.vlgmr.msra.gmra.mxu0 %vm222_vm2, %v6038_v41  ;;  %v1303_v41 = vld [vmem:[%s6901_s1] sm:$0xf] }
  0x4e   : > { %5293 = vmatpush3.bf16.msra.mxu0 %v934_v22  ;;  %5301 = vmatmul.mubr.msk.bf16.vlgmr.msra.gmra.mxu1 %vm222_vm2, %v993_v23  ;;  %v1375_v46 = vsel %vm226_vm0, %v1303_v41, 0  ;;  %v1709_v22 = vshll.u32 %v6213_v11, 16  ;;  %v6228_v23 = vld [vmem:[%s5991_s28 + $0x24] sm:$0xff]  }
  0x4f   : > { %5294 = vmatprep.mubr.msk.bf16.mxu0 %vm5871_vm1, %v5870_v1  ;;  %5304 = vmatprep.subr.bf16.mxu0 %v5870_v1  ;;  %v1863_v31 = vshll.u32 %v6228_v23, 16  ;;  %v1861_v36 = vshrl.u32 %v6228_v23, 16  ;;  %v5751_v11 = vld [vmem:[%s5991_s28 + $0x44] ss:$0 sps:$4 sm:$0x11]  }
  0x50   : > { %5311 = vmatpush3.bf16.msra.mxu1 %v1106_v24  ;;  %5312 = vmatprep.mubr.msk.bf16.mxu1 %vm5871_vm1, %v5870_v1  ;;  %v1717_v24 = vsel %vm226_vm0, %v4799_v18, 0  ;;  %v1711_v29 = vrot.slane %v1709_v22, 1  ;;  %v4838_v18 = vld [vmem:[%s6901_s1 + $0x1c] sm:$0xf]  ;;  %v2256_v22 = vshll.u32 %v5751_v11, 16 }
  0x51   : > { %5322 = vmatprep.subr.bf16.mxu1 %v5870_v1 }
  0x55   : > { %5295 = vmatmul.mubr.msk.bf16.vlgmr.msra.gmra.mxu0 %vm222_vm2, %v6079_v0  ;;  %v1426_v0 = vsel %vm226_vm0, %v4786_v60, 0 }
  0x56   : > { %5305 = vmatpush3.bf16.msra.mxu0 %v1051_v28  ;;  %5313 = vmatmul.mubr.msk.bf16.vlgmr.msra.gmra.mxu1 %vm222_vm2, %v5738_v26  ;;  %v1539_v26 = vrot.slane %v1537_v17, 1  ;;  %v1707_v28 = vor.u32 %v1706_v21, %v1702_v20  ;;  %v2311_v17 = vrot.slane %v5751_v11, 1  ;;  %v2249_v20 = vshrl.u32 %v5750_v8, 16 }
  0x57   : > { %5306 = vmatprep.mubr.msk.bf16.mxu0 %vm5871_vm1, %v5870_v1  ;;  %5316 = vmatprep.subr.bf16.mxu0 %v5870_v1  ;;  %v2253_v21 = vrot.slane %v2251_v15, 1  ;;  %v2747_v15 = vsel %vm226_vm0, %v4874_v9, 0 }
  0x58   : > { %5323 = vmatpush3.bf16.msra.mxu1 %v1223_v30  ;;  %5324 = vmatprep.mubr.msk.bf16.mxu1 %vm5871_vm1, %v5870_v1  ;;  %v5747_v30 = vld [vmem:[%s5991_s28 + $0x2c] ss:$0 sps:$4 sm:$0x11]   ;;  %v1540_v32 = vsel %vm209_vm3, %v1535_v25, %v1539_v26  ;;  %v1712_v35 = vsel %vm209_vm3, %v1707_v28, %v1711_v29  ;;  %v2264_v25 = vsel %vm226_vm0, %v4838_v18, 0  ;;  %v2312_v26 = vsel %vm319_vm4, %v2310_v16, %v2311_v17  ;;  %v4898_v16 = vld [vmem:[%s6901_s1 + $0x4] sm:$0xf] }
  0x59   : > { %5334 = vmatprep.subr.bf16.mxu1 %v5870_v1  ;;  %v1868_v38 = vshll.u32 %v5747_v30, 16  ;;  %v1967_v52 = vrot.slane %v5747_v30, 1  ;;  %v2254_v28 = vor.u32 %v2253_v21, %v2249_v20  ;;  %v2258_v29 = vrot.slane %v2256_v22, 1  ;;  %v5753_v30 = vld [vmem:[%s5991_s28 + $0x38] ss:$0 sps:$4 sm:$0x11]  }
  0x5a   : > { %v2970_v21 = vsel %vm226_vm0, %v4898_v16, 0  ;;  %v6553_v16 = vld [vmem:[%s5991_s28 + $0x48] sm:$0xff]  }
  0x5b   : > { %v1870_v41 = vrot.slane %v1868_v38, 1 }
  0x5d   : > { %5307 = vmatmul.mubr.msk.bf16.vlgmr.msra.gmra.mxu0 %vm222_vm2, %v1046_v37  ;;  %v1865_v37 = vrot.slane %v1863_v31, 1 }
  0x5e   : > { %5317 = vmatpush3.bf16.msra.mxu0 %v1170_v43  ;;  %5325 = vmatmul.mubr.msk.bf16.vlgmr.msra.gmra.mxu1 %vm222_vm2, %v1218_v44  ;;  %v4825_v43 = vld [vmem:[%s6901_s1 + $0x8] sm:$0xf] }
  0x5f   : > { %5318 = vmatprep.mubr.msk.bf16.mxu0 %vm5871_vm1, %v5870_v1  ;;  %5328 = vmatprep.subr.bf16.mxu0 %v5870_v1  ;;  %v1866_v40 = vor.u32 %v1865_v37, %v1861_v36  ;;  %v1973_v47 = vsel %vm226_vm0, %v4825_v43, 0  ;;  %v2415_v36 = vshll.u32 %v5753_v30, 16  ;;  %v4866_v37 = vld [vmem:[%s6901_s1 + $0xc] sm:$0xf] }
  0x60   : > { %5335 = vmatpush3.bf16.msra.mxu1 %v1375_v46  ;;  %5336 = vmatprep.mubr.msk.bf16.mxu1 %vm5871_vm1, %v5870_v1  ;;  %v6269_v46 = vld [vmem:[%s5991_s28 + $0x30] sm:$0xff]  }
  0x61   : > { %5346 = vmatprep.subr.bf16.mxu1 %v5870_v1  ;;  %v1871_v45 = vsel %vm209_vm3, %v1866_v40, %v1870_v41  ;;  %v2077_v59 = vshrl.u32 %v6269_v46, 16  ;;  %v2417_v41 = vrot.slane %v2415_v36, 1 }
  0x65   : > { %5319 = vmatmul.mubr.msk.bf16.vlgmr.msra.gmra.mxu0 %vm222_vm2, %v1165_v54  ;;  %v2079_v54 = vshll.u32 %v6269_v46, 16 }
  0x66   : > { %5329 = vmatpush3.bf16.msra.mxu0 %v1329_v51  ;;  %5337 = vmatmul.mubr.msk.bf16.vlgmr.msra.gmra.mxu1 %vm222_vm2, %v5740_v42  ;;  %v4802_v42 = vld [vmem:[%s6901_s1 + $0x20] sm:$0xf]  ;;  %v1966_v51 = vrot.slane %v6228_v23, 1 }
  0x67   : > { %5330 = vmatprep.mubr.msk.bf16.mxu0 %vm5871_vm1, %v5870_v1  ;;  %5340 = vmatprep.subr.bf16.mxu0 %v5870_v1  ;;  %v1770_v44 = vsel %vm226_vm0, %v4802_v42, 0  ;;  %v2081_v60 = vrot.slane %v2079_v54, 1  ;;  %v4864_v42 = vld [vmem:[%s6901_s1 + $0x8] sm:$0xf] }
  0x68   : > { %5347 = vmatpush3.bf16.msra.mxu1 %v1481_v57  ;;  %5348 = vmatprep.mubr.msk.bf16.mxu1 %vm5871_vm1, %v5870_v1  ;;  %v4830_v57 = vld [vmem:[%s6901_s1 + $0x10] sm:$0xf]  ;;  %v1968_v58 = vsel %vm319_vm4, %v1966_v51, %v1967_v52  ;;  %v2514_v51 = vrot.slane %v5753_v30, 1  ;;  %v2857_v30 = vrot.slane %v6391_v48, 1 }
  0x69   : > { %5358 = vmatprep.subr.bf16.mxu1 %v5870_v1  ;;  %v2082_v63 = vor.u32 %v2081_v60, %v2077_v59  ;;  %v4869_v52 = vld [vmem:[%s6901_s1 + $0x10] sm:$0xf] }
  0x6d   : > { %5331 = vmatmul.mubr.msk.bf16.vlgmr.msra.gmra.mxu0 %vm222_vm2, %v1324_v61  ;;  %v2084_v61 = vshll.u32 %v5749_v53, 16 }
  0x6e   : > { %5341 = vmatpush3.bf16.msra.mxu0 %v1426_v0  ;;  %5349 = vmatmul.mubr.msk.bf16.vlgmr.msra.gmra.mxu1 %vm222_vm2, %v5742_v62  ;;  %v2092_v62 = vsel %vm226_vm0, %v4830_v57, 0  ;;  %v2798_v57 = vshll.u32 %v6391_v48, 16 }
  0x6f   : > { %5342 = vmatprep.mubr.msk.bf16.mxu0 %vm5871_vm1, %v5870_v1  ;;  %5352 = vmatprep.subr.bf16.mxu0 %v5870_v1  ;;  %v2086_v0 = vrot.slane %v2084_v61, 1 }
  0x70   : > { %5359 = vmatpush3.bf16.msra.mxu1 %v1598_v4  ;;  %5360 = vmatprep.mubr.msk.bf16.mxu1 %vm5871_vm1, %v5870_v1  ;;  %v2028_v4 = vsel %vm226_vm0, %v4827_v2, 0  ;;  %v2796_v2 = vshrl.u32 %v6391_v48, 16 }
  0x71   : > { %5370 = vmatprep.subr.bf16.mxu1 %v5870_v1  ;;  %v2087_v5 = vsel %vm209_vm3, %v2082_v63, %v2086_v0  ;;  %v4877_v63 = vld [vmem:[%s6901_s1 + $0x1c] sm:$0xf] }
  0x75   : > { %5343 = vmatmul.mubr.msk.bf16.vlgmr.msra.gmra.mxu0 %vm222_vm2, %v1421_v14  ;;  %v2139_v14 = vrot.slane %v5749_v53, 1 }
  0x76   : > { %5353 = vmatpush3.bf16.msra.mxu0 %v1545_v13  ;;  %5361 = vmatmul.mubr.msk.bf16.vlgmr.msra.gmra.mxu1 %vm222_vm2, %v1593_v19  ;;  %v2138_v13 = vrot.slane %v6269_v46, 1 }
  0x77   : > { %5354 = vmatprep.mubr.msk.bf16.mxu0 %vm5871_vm1, %v5870_v1  ;;  %5364 = vmatprep.subr.bf16.mxu0 %v5870_v1 }
  0x78   : > { %5371 = vmatpush3.bf16.msra.mxu1 %v1717_v24  ;;  %5372 = vmatprep.mubr.msk.bf16.mxu1 %vm5871_vm1, %v5870_v1  ;;  %v2140_v19 = vsel %vm319_vm4, %v2138_v13, %v2139_v14  ;;  %v5752_v24 = vld [vmem:[%s5991_s28 + $0x30] sm:$0xff]  }
  0x79   : > { %5382 = vmatprep.subr.bf16.mxu1 %v5870_v1  ;;  %v2410_v31 = vshll.u32 %v5752_v24, 16  ;;  %v2408_v34 = vshrl.u32 %v5752_v24, 16  ;;  %v2513_v50 = vrot.slane %v5752_v24, 1 }
  0x7b   : > { %v2515_v59 = vsel %vm319_vm4, %v2513_v50, %v2514_v51 }
  0x7d   : > { %5355 = vmatmul.mubr.msk.bf16.vlgmr.msra.gmra.mxu0 %vm222_vm2, %v1540_v32  ;;  %v4859_v32 = vld [vmem:[%s6901_s1 + $0x4] sm:$0xf] }
  0x7e   : > { %5365 = vmatpush3.bf16.msra.mxu0 %v1653_v33  ;;  %5373 = vmatmul.mubr.msk.bf16.vlgmr.msra.gmra.mxu1 %vm222_vm2, %v1712_v35  ;;  %v2259_v33 = vsel %vm209_vm3, %v2254_v28, %v2258_v29  ;;  %v2412_v35 = vrot.slane %v2410_v31, 1  ;;  %v2423_v38 = vsel %vm226_vm0, %v4859_v32, 0  ;;  %v6459_v28 = vld [vmem:[%s5991_s28 + $0x48] sm:$0xff]   ;;  %v2944_v32 = vld [vmem:[%s6901_s1] sm:$0xf] }
  0x7f   : > { %5366 = vmatprep.mubr.msk.bf16.mxu0 %vm5871_vm1, %v5870_v1  ;;  %5376 = vmatprep.subr.bf16.mxu0 %v5870_v1  ;;  %v3173_v36 = vshll.u32 %v6459_v28, 16 }
  0x80   : > { %5383 = vmatpush3.bf16.msra.mxu1 %v1876_v39  ;;  %5384 = vmatprep.mubr.msk.bf16.mxu1 %vm5871_vm1, %v5870_v1  ;;  %v2575_v39 = vsel %vm226_vm0, %v4866_v37, 0  ;;  %v2413_v40 = vor.u32 %v2412_v35, %v2408_v34  ;;  %v6475_v35 = vld [vmem:[%s5991_s28 + $0x50] ss:$0 sps:$4 sm:$0x11]  }
  0x81   : > { %5394 = vmatprep.subr.bf16.mxu1 %v5870_v1 }
  0x82   : > { %v2418_v43 = vsel %vm209_vm3, %v2413_v40, %v2417_v41  ;;  %v3171_v41 = vshrl.u32 %v6459_v28, 16 }
  0x85   : > { %5367 = vmatmul.mubr.msk.bf16.vlgmr.msra.gmra.mxu0 %vm222_vm2, %v6201_v3  ;;  %v4835_v3 = vld [vmem:[%s6901_s1 + $0x18] sm:$0xf] }
  0x86   : > { %5377 = vmatpush3.bf16.msra.mxu0 %v1770_v44  ;;  %5385 = vmatmul.mubr.msk.bf16.vlgmr.msra.gmra.mxu1 %vm222_vm2, %v1871_v45  ;;  %v2200_v6 = vsel %vm226_vm0, %v4835_v3, 0  ;;  %v5754_v44 = vld [vmem:[%s5991_s28 + $0x3c] sm:$0xff]   ;;  %v4872_v45 = vld [vmem:[%s6901_s1 + $0x14] sm:$0xf]  ;;  %v2800_v3 = vrot.slane %v2798_v57, 1 }
  0x87   : > { %5378 = vmatprep.mubr.msk.bf16.mxu0 %vm5871_vm1, %v5870_v1  ;;  %5388 = vmatprep.subr.bf16.mxu0 %v5870_v1  ;;  %v2692_v49 = vsel %vm226_vm0, %v4872_v45, 0  ;;  %v2626_v53 = vshll.u32 %v5754_v44, 16  ;;  %v2685_v54 = vrot.slane %v5754_v44, 1  ;;  %v2624_v60 = vshrl.u32 %v5754_v44, 16  ;;  %v4919_v57 = vld [vmem:[%s6901_s1 + $0x20] sm:$0xf] }
  0x88   : > { %5395 = vmatpush3.bf16.msra.mxu1 %v1973_v47  ;;  %5396 = vmatprep.mubr.msk.bf16.mxu1 %vm5871_vm1, %v5870_v1  ;;  %v5755_v47 = vld [vmem:[%s5991_s28 + $0x44] ss:$0 sps:$4 sm:$0x11]  }
  0x89   : > { %5406 = vmatprep.subr.bf16.mxu1 %v5870_v1  ;;  %v2628_v61 = vrot.slane %v2626_v53, 1 }
  0x8b   : > { %v2629_v7 = vor.u32 %v2628_v61, %v2624_v60 }
  0x8d   : > { %5379 = vmatmul.mubr.msk.bf16.vlgmr.msra.gmra.mxu0 %vm222_vm2, %v1765_v55  ;;  %v2686_v55 = vrot.slane %v5755_v47, 1 }
  0x8e   : > { %5389 = vmatpush3.bf16.msra.mxu0 %v1922_v56  ;;  %5397 = vmatmul.mubr.msk.bf16.vlgmr.msra.gmra.mxu1 %vm222_vm2, %v1968_v58  ;;  %v6403_v56 = vld [vmem:[%s5991_s28 + $0x50] ss:$0 sps:$4 sm:$0x11]   ;;  %v2639_v58 = vsel %vm226_vm0, %v4869_v52, 0 }
  0x8f   : > { %5390 = vmatprep.mubr.msk.bf16.mxu0 %vm5871_vm1, %v5870_v1  ;;  %5400 = vmatprep.subr.bf16.mxu0 %v5870_v1  ;;  %v2687_v0 = vsel %vm319_vm4, %v2685_v54, %v2686_v55  ;;  %v2858_v31 = vrot.slane %v6403_v56, 1  ;;  %v4911_v54 = vld [vmem:[%s6901_s1 + $0x14] sm:$0xf] }
  0x90   : > { %5407 = vmatpush3.bf16.msra.mxu1 %v2092_v62  ;;  %5408 = vmatprep.mubr.msk.bf16.mxu1 %vm5871_vm1, %v5870_v1  ;;  %v2631_v62 = vshll.u32 %v5755_v47, 16  ;;  %v4905_v47 = vld [vmem:[%s6901_s1 + $0xc] sm:$0xf] }
  0x91   : > { %5418 = vmatprep.subr.bf16.mxu1 %v5870_v1  ;;  %v2859_v37 = vsel %vm319_vm4, %v2857_v30, %v2858_v31  ;;  %v4937_v30 = vld [vmem:[%s6901_s1 + $0x4] sm:$0xf] }
  0x95   : > { %5391 = vmatmul.mubr.msk.bf16.vlgmr.msra.gmra.mxu0 %vm222_vm2, %v6228_v23  ;;  %v2397_v23 = vld [vmem:[%s6901_s1] sm:$0xf] }
  0x96   : > { %5401 = vmatpush3.bf16.msra.mxu0 %v2028_v4  ;;  %5409 = vmatmul.mubr.msk.bf16.vlgmr.msra.gmra.mxu1 %vm222_vm2, %v2087_v5  ;;  %v2469_v27 = vsel %vm226_vm0, %v2397_v23, 0  ;;  %v2803_v4 = vshll.u32 %v6403_v56, 16  ;;  %v6418_v5 = vld [vmem:[%s5991_s28 + $0x3c] sm:$0xff]   ;;  %v5762_v56 = vld [vmem:[%s5991_s28 + $0x54] sm:$0xff]  }
  0x97   : > { %5402 = vmatprep.mubr.msk.bf16.mxu0 %vm5871_vm1, %v5870_v1  ;;  %5412 = vmatprep.subr.bf16.mxu0 %v5870_v1  ;;  %v2957_v13 = vshll.u32 %v6418_v5, 16  ;;  %v2955_v18 = vshrl.u32 %v6418_v5, 16 }
  0x98   : > { %5419 = vmatpush3.bf16.msra.mxu1 %v2200_v6  ;;  %5420 = vmatprep.mubr.msk.bf16.mxu1 %vm5871_vm1, %v5870_v1  ;;  %v2811_v6 = vsel %vm226_vm0, %v4877_v63, 0  ;;  %v2805_v11 = vrot.slane %v2803_v4, 1  ;;  %v3345_v63 = vshll.u32 %v5762_v56, 16 }
  0x99   : > { %5430 = vmatprep.subr.bf16.mxu1 %v5870_v1 }
  0x9d   : > { %5403 = vmatmul.mubr.msk.bf16.vlgmr.msra.gmra.mxu0 %vm222_vm2, %v6269_v46  ;;  %v2520_v46 = vsel %vm226_vm0, %v4864_v42, 0  ;;  %v3175_v42 = vrot.slane %v3173_v36, 1 }
  0x9e   : > { %5413 = vmatpush3.bf16.msra.mxu0 %v2145_v10  ;;  %5421 = vmatmul.mubr.msk.bf16.vlgmr.msra.gmra.mxu1 %vm222_vm2, %v5750_v8  ;;  %v2633_v8 = vrot.slane %v2631_v62, 1  ;;  %v2801_v10 = vor.u32 %v2800_v3, %v2796_v2  ;;  %v3411_v62 = vsel %vm226_vm0, %v4919_v57, 0  ;;  %v3232_v2 = vrot.slane %v6459_v28, 1 }
  0x9f   : > { %5414 = vmatprep.mubr.msk.bf16.mxu0 %vm5871_vm1, %v5870_v1  ;;  %5424 = vmatprep.subr.bf16.mxu0 %v5870_v1  ;;  %v3176_v45 = vor.u32 %v3175_v42, %v3171_v41  ;;  %v3233_v3 = vrot.slane %v6475_v35, 1 }
  0xa0   : > { %5431 = vmatpush3.bf16.msra.mxu1 %v2317_v12  ;;  %5432 = vmatprep.mubr.msk.bf16.mxu1 %vm5871_vm1, %v5870_v1  ;;  %v5759_v12 = vld [vmem:[%s5991_s28 + $0x44] ss:$0 sps:$4 sm:$0x11]   ;;  %v2634_v14 = vsel %vm209_vm3, %v2629_v7, %v2633_v8  ;;  %v2806_v17 = vsel %vm209_vm3, %v2801_v10, %v2805_v11  ;;  %v4916_v8 = vld [vmem:[%s6901_s1 + $0x1c] sm:$0xf]  ;;  %v3343_v10 = vshrl.u32 %v5762_v56, 16 }
  0xa1   : > { %5442 = vmatprep.subr.bf16.mxu1 %v5870_v1  ;;  %v2962_v20 = vshll.u32 %v5759_v12, 16  ;;  %v3061_v34 = vrot.slane %v5759_v12, 1  ;;  %v3347_v11 = vrot.slane %v3345_v63, 1  ;;  %v5767_v63 = vld [vmem:[%s5991_s28 + $0x5c] ss:$0 sps:$4 sm:$0x11]  }
  0xa3   : > { %v2964_v23 = vrot.slane %v2962_v20, 1 }
  0xa5   : > { %5415 = vmatmul.mubr.msk.bf16.vlgmr.msra.gmra.mxu0 %vm222_vm2, %v2140_v19  ;;  %v2959_v19 = vrot.slane %v2957_v13, 1 }
  0xa6   : > { %5425 = vmatpush3.bf16.msra.mxu0 %v2264_v25  ;;  %5433 = vmatmul.mubr.msk.bf16.vlgmr.msra.gmra.mxu1 %vm222_vm2, %v2312_v26  ;;  %v4903_v25 = vld [vmem:[%s6901_s1 + $0x8] sm:$0xf] }
  0xa7   : > { %5426 = vmatprep.mubr.msk.bf16.mxu0 %vm5871_vm1, %v5870_v1  ;;  %5436 = vmatprep.subr.bf16.mxu0 %v5870_v1  ;;  %v2960_v22 = vor.u32 %v2959_v19, %v2955_v18  ;;  %v3067_v29 = vsel %vm226_vm0, %v4903_v25, 0  ;;  %v3358_v18 = vsel %vm226_vm0, %v4916_v8, 0 }
  0xa8   : > { %5443 = vmatpush3.bf16.msra.mxu1 %v2469_v27  ;;  %5444 = vmatprep.mubr.msk.bf16.mxu1 %vm5871_vm1, %v5870_v1 }
  0xa9   : > { %5454 = vmatprep.subr.bf16.mxu1 %v5870_v1  ;;  %v2965_v27 = vsel %vm209_vm3, %v2960_v22, %v2964_v23  ;;  %v3348_v22 = vor.u32 %v3347_v11, %v3343_v10  ;;  %v6621_v11 = vld [vmem:[%s5991_s28 + $0x68] ss:$0 sps:$4 sm:$0x11]  }
  0xad   : > { %5427 = vmatmul.mubr.msk.bf16.vlgmr.msra.gmra.mxu0 %vm222_vm2, %v2259_v33  ;;  %v3060_v33 = vrot.slane %v6418_v5, 1 }
  0xae   : > { %5437 = vmatpush3.bf16.msra.mxu0 %v2423_v38  ;;  %5445 = vmatmul.mubr.msk.bf16.vlgmr.msra.gmra.mxu1 %vm222_vm2, %v5752_v24  ;;  %v4880_v24 = vld [vmem:[%s6901_s1 + $0x20] sm:$0xf]  ;;  %v3016_v38 = vsel %vm226_vm0, %v2944_v32, 0 }
  0xaf   : > { %5438 = vmatprep.mubr.msk.bf16.mxu0 %vm5871_vm1, %v5870_v1  ;;  %5448 = vmatprep.subr.bf16.mxu0 %v5870_v1  ;;  %v2864_v26 = vsel %vm226_vm0, %v4880_v24, 0  ;;  %v3062_v40 = vsel %vm319_vm4, %v3060_v33, %v3061_v34 }
  0xb0   : > { %5455 = vmatpush3.bf16.msra.mxu1 %v2575_v39  ;;  %5456 = vmatprep.mubr.msk.bf16.mxu1 %vm5871_vm1, %v5870_v1  ;;  %v4908_v39 = vld [vmem:[%s6901_s1 + $0x10] sm:$0xf] }
  0xb1   : > { %5466 = vmatprep.subr.bf16.mxu1 %v5870_v1 }
  0xb5   : > { %5439 = vmatmul.mubr.msk.bf16.vlgmr.msra.gmra.mxu0 %vm222_vm2, %v2418_v43  ;;  %v3178_v43 = vshll.u32 %v6475_v35, 16  ;;  %v3502_v35 = vshrl.u32 %v6553_v16, 16 }
  0xb6   : > { %5449 = vmatpush3.bf16.msra.mxu0 %v2520_v46  ;;  %5457 = vmatmul.mubr.msk.bf16.vlgmr.msra.gmra.mxu1 %vm222_vm2, %v5754_v44  ;;  %v3186_v44 = vsel %vm226_vm0, %v4908_v39, 0 }
  0xb7   : > { %5450 = vmatprep.mubr.msk.bf16.mxu0 %vm5871_vm1, %v5870_v1  ;;  %5460 = vmatprep.subr.bf16.mxu0 %v5870_v1  ;;  %v3180_v46 = vrot.slane %v3178_v43, 1 }
  0xb8   : > { %5467 = vmatpush3.bf16.msra.mxu1 %v2692_v49  ;;  %5468 = vmatprep.mubr.msk.bf16.mxu1 %vm5871_vm1, %v5870_v1  ;;  %v3122_v49 = vsel %vm226_vm0, %v4905_v47, 0 }
  0xb9   : > { %5478 = vmatprep.subr.bf16.mxu1 %v5870_v1  ;;  %v3181_v50 = vsel %vm209_vm3, %v3176_v45, %v3180_v46 }
  0xbd   : > { %5451 = vmatmul.mubr.msk.bf16.vlgmr.msra.gmra.mxu0 %vm222_vm2, %v2515_v59  ;;  %v5763_v59 = vld [vmem:[%s5991_s28 + $0x5c] ss:$0 sps:$4 sm:$0x11]  }
  0xbe   : > { %5461 = vmatpush3.bf16.msra.mxu0 %v2639_v58  ;;  %5469 = vmatmul.mubr.msk.bf16.vlgmr.msra.gmra.mxu1 %vm222_vm2, %v2687_v0  ;;  %v3239_v58 = vsel %vm226_vm0, %v4911_v54, 0  ;;  %v3350_v12 = vshll.u32 %v5763_v59, 16 }
  0xbf   : > { %5462 = vmatprep.mubr.msk.bf16.mxu0 %vm5871_vm1, %v5870_v1  ;;  %5472 = vmatprep.subr.bf16.mxu0 %v5870_v1 }
  0xc0   : > { %5479 = vmatpush3.bf16.msra.mxu1 %v2811_v6  ;;  %5480 = vmatprep.mubr.msk.bf16.mxu1 %vm5871_vm1, %v5870_v1  ;;  %v3405_v6 = vrot.slane %v5763_v59, 1  ;;  %v3352_v23 = vrot.slane %v3350_v12, 1  ;;  %v4950_v59 = vld [vmem:[%s6901_s1 + $0x14] sm:$0xf] }
  0xc1   : > { %5490 = vmatprep.subr.bf16.mxu1 %v5870_v1 }
  0xc2   : > { %v3353_v32 = vsel %vm209_vm3, %v3348_v22, %v3352_v23  ;;  %v3725_v23 = vshll.u32 %v5767_v63, 16 }
  0xc5   : > { %5463 = vmatmul.mubr.msk.bf16.vlgmr.msra.gmra.mxu0 %vm222_vm2, %v2634_v14  ;;  %v3234_v14 = vsel %vm319_vm4, %v3232_v2, %v3233_v3 }
  0xc6   : > { %5473 = vmatpush3.bf16.msra.mxu0 %v2747_v15  ;;  %5481 = vmatmul.mubr.msk.bf16.vlgmr.msra.gmra.mxu1 %vm222_vm2, %v2806_v17  ;;  %v3491_v15 = vld [vmem:[%s6901_s1] sm:$0xf] }
  0xc7   : > { %5474 = vmatprep.mubr.msk.bf16.mxu0 %vm5871_vm1, %v5870_v1  ;;  %5484 = vmatprep.subr.bf16.mxu0 %v5870_v1  ;;  %v3563_v24 = vsel %vm226_vm0, %v3491_v15, 0  ;;  %v3780_v15 = vrot.slane %v5767_v63, 1 }
  0xc8   : > { %5491 = vmatpush3.bf16.msra.mxu1 %v2970_v21  ;;  %5492 = vmatprep.mubr.msk.bf16.mxu1 %vm5871_vm1, %v5870_v1 }
  0xc9   : > { %5502 = vmatprep.subr.bf16.mxu1 %v5870_v1 }
  0xcd   : > { %5475 = vmatmul.mubr.msk.bf16.vlgmr.msra.gmra.mxu0 %vm222_vm2, %v6391_v48  ;;  %v4913_v48 = vld [vmem:[%s6901_s1 + $0x18] sm:$0xf] }
  0xce   : > { %5485 = vmatpush3.bf16.msra.mxu0 %v2864_v26  ;;  %5493 = vmatmul.mubr.msk.bf16.vlgmr.msra.gmra.mxu1 %vm222_vm2, %v2965_v27  ;;  %v3294_v51 = vsel %vm226_vm0, %v4913_v48, 0  ;;  %v6561_v26 = vld [vmem:[%s5991_s28 + $0x50] ss:$0 sps:$4 sm:$0x11]   ;;  %v3504_v27 = vshll.u32 %v6553_v16, 16 }
  0xcf   : > { %5486 = vmatprep.mubr.msk.bf16.mxu0 %vm5871_vm1, %v5870_v1  ;;  %5496 = vmatprep.subr.bf16.mxu0 %v5870_v1 }
  0xd0   : > { %5503 = vmatpush3.bf16.msra.mxu1 %v3067_v29  ;;  %5504 = vmatprep.mubr.msk.bf16.mxu1 %vm5871_vm1, %v5870_v1  ;;  %v3506_v36 = vrot.slane %v3504_v27, 1 }
  0xd1   : > { %5514 = vmatprep.subr.bf16.mxu1 %v5870_v1 }
  0xd2   : > { %v3507_v47 = vor.u32 %v3506_v36, %v3502_v35 }
  0xd5   : > { %5487 = vmatmul.mubr.msk.bf16.vlgmr.msra.gmra.mxu0 %vm222_vm2, %v2859_v37  ;;  %v3509_v37 = vshll.u32 %v6561_v26, 16 }
  0xd6   : > { %5497 = vmatpush3.bf16.msra.mxu0 %v3016_v38  ;;  %5505 = vmatmul.mubr.msk.bf16.vlgmr.msra.gmra.mxu1 %vm222_vm2, %v3062_v40  ;;  %v4944_v38 = vld [vmem:[%s6901_s1 + $0xc] sm:$0xf]  ;;  %v3517_v40 = vsel %vm226_vm0, %v4937_v30, 0 }
  0xd7   : > { %5498 = vmatprep.mubr.msk.bf16.mxu0 %vm5871_vm1, %v5870_v1  ;;  %5508 = vmatprep.subr.bf16.mxu0 %v5870_v1  ;;  %v3511_v48 = vrot.slane %v3509_v37, 1 }
  0xd8   : > { %5515 = vmatpush3.bf16.msra.mxu1 %v3186_v44  ;;  %5516 = vmatprep.mubr.msk.bf16.mxu1 %vm5871_vm1, %v5870_v1  ;;  %v3669_v44 = vsel %vm226_vm0, %v4944_v38, 0 }
  0xd9   : > { %5526 = vmatprep.subr.bf16.mxu1 %v5870_v1  ;;  %v3512_v57 = vsel %vm209_vm3, %v3507_v47, %v3511_v48  ;;  %v6662_v47 = vld [vmem:[%s5991_s28 + $0x5c] ss:$0 sps:$4 sm:$0x11]  }
  0xdd   : > { %5499 = vmatmul.mubr.msk.bf16.vlgmr.msra.gmra.mxu0 %vm222_vm2, %v6418_v5  ;;  %v3404_v5 = vrot.slane %v5762_v56, 1 }
  0xde   : > { %5509 = vmatpush3.bf16.msra.mxu0 %v3122_v49  ;;  %v6509_v52 = vpop.f32.mrf.mxu1  ;;  %5517 = vmatmul.mubr.msk.bf16.vlgmr.msra.gmra.mxu1 %vm222_vm2, %v3181_v50 }
  0xdf   : > { %5510 = vmatprep.mubr.msk.bf16.mxu0 %vm5871_vm1, %v5870_v1  ;;  %5520 = vmatprep.subr.bf16.mxu0 %v5870_v1  ;;  %v3406_v19 = vsel %vm319_vm4, %v3404_v5, %v3405_v6  ;;  %v3608_v5 = vrot.slane %v6561_v26, 1  ;;  %v3786_v6 = vsel %vm226_vm0, %v4950_v59, 0  ;;  %v4955_v26 = vld [vmem:[%s6901_s1 + $0x1c] sm:$0xf] }
  0xe0   : > { %v5230_v53 = vpop.f32.mrf.mxu1  ;;  %5527 = vmatpush3.bf16.msra.mxu1 %v3294_v51  ;;  %5528 = vmatprep.mubr.msk.bf16.mxu1 %vm5871_vm1, %v5870_v1 }
  0xe1   : > { %5538 = vmatprep.subr.bf16.mxu1 %v5870_v1  ;;  %v4942_v53 = vld [vmem:[%s6901_s1 + $0x8] sm:$0xf] }
  0xe2   : > { %v6521_v55 = vpop.f32.mrf.mxu1 }
  0xe4   : > { %v5231_v60 = vpop.f32.mrf.mxu1 }
  0xe5   : > { %v264_v61 = vpop.f32.mrf.mxu0  ;;  %5511 = vmatmul.mubr.msk.bf16.vlgmr.msra.gmra.mxu0 %vm222_vm2, %v6459_v28  ;;  %v6608_v60 = vld [vmem:[%s5991_s28 + $0x60] sm:$0xff]  }
  0xe6   : > { %5521 = vmatpush3.bf16.msra.mxu0 %v3239_v58  ;;  %v6532_v0 = vpop.f32.mrf.mxu1  ;;  %5529 = vmatmul.mubr.msk.bf16.vlgmr.msra.gmra.mxu1 %vm222_vm2, %v5762_v56  ;;  %v311_v33 = vadd.f32 %v6509_v52, %v264_v61  ;;  %v5766_v58 = vld [vmem:[%s5991_s28 + $0x54] sm:$0xff]   ;;  %v3892_v12 = vshll.u32 %v6608_v60, 16  ;;  %v3890_v27 = vshrl.u32 %v6608_v60, 16 }
  0xe7   : > { %v5224_v4 = vpop.f32.mrf.mxu0  ;;  %5522 = vmatprep.mubr.msk.bf16.mxu0 %vm5871_vm1, %v5870_v1  ;;  %5532 = vmatprep.subr.bf16.mxu0 %v5870_v1 }
  0xe8   : > { %v5242_v7 = vpop.f32.mrf.mxu1  ;;  %5539 = vmatpush3.bf16.msra.mxu1 %v3411_v62  ;;  %5540 = vmatprep.mubr.msk.bf16.mxu1 %vm5871_vm1, %v5870_v1  ;;  %v3614_v62 = vsel %vm226_vm0, %v4942_v53, 0  ;;  %v3607_v4 = vrot.slane %v6553_v16, 1 }
  0xe9   : > { %v267_v9 = vpop.f32.mrf.mxu0  ;;  %5550 = vmatprep.subr.bf16.mxu1 %v5870_v1  ;;  %v3720_v7 = vshll.u32 %v5766_v58, 16 }
  0xea   : > { %v6546_v13 = vpop.f32.mrf.mxu1  ;;  %v314_v45 = vadd.f32 %v6521_v55, %v267_v9 }
  0xeb   : > { %v5225_v17 = vpop.f32.mrf.mxu0  ;;  %v3722_v22 = vrot.slane %v3720_v7, 1 }
  0xec   : > { %v5243_v20 = vpop.f32.mrf.mxu1 }
  0xed   : > { %v363_v21 = vpop.f32.mrf.mxu0  ;;  %5523 = vmatmul.mubr.msk.bf16.vlgmr.msra.gmra.mxu0 %vm222_vm2, %v3234_v14  ;;  %v3779_v14 = vrot.slane %v5766_v58, 1  ;;  %v3609_v20 = vsel %vm319_vm4, %v3607_v4, %v3608_v5 }
  0xee   : > { %5533 = vmatpush3.bf16.msra.mxu0 %v3358_v18  ;;  %v538_v25 = vpop.f32.mrf.mxu1  ;;  %5541 = vmatmul.mubr.msk.bf16.vlgmr.msra.gmra.mxu1 %vm222_vm2, %v3406_v19  ;;  %v370_v41 = vadd.f32 %v363_v21, %v311_v33  ;;  %v4947_v18 = vld [vmem:[%s6901_s1 + $0x10] sm:$0xf]  ;;  %v3718_v21 = vshrl.u32 %v5766_v58, 16  ;;  %v6645_v33 = vld [vmem:[%s5991_s28 + $0x54] sm:$0xff]  }
  0xef   : > { %v5236_v28 = vpop.f32.mrf.mxu0  ;;  %5534 = vmatprep.mubr.msk.bf16.mxu0 %vm5871_vm1, %v5870_v1  ;;  %5544 = vmatprep.subr.bf16.mxu0 %v5870_v1  ;;  %v4051_v48 = vshll.u32 %v6645_v33, 16 }
  0xf0   : > { %v5254_v29 = vpop.f32.mrf.mxu1  ;;  %5551 = vmatpush3.bf16.msra.mxu1 %v3563_v24  ;;  %5552 = vmatprep.mubr.msk.bf16.mxu1 %vm5871_vm1, %v5870_v1  ;;  %v426_v51 = vadd.f32 %v6532_v0, %v370_v41  ;;  %v3894_v28 = vrot.slane %v3892_v12, 1  ;;  %v3723_v38 = vor.u32 %v3722_v22, %v3718_v21 }
  0xf1   : > { %v366_v31 = vpop.f32.mrf.mxu0  ;;  %5562 = vmatprep.subr.bf16.mxu1 %v5870_v1  ;;  %v3897_v29 = vshll.u32 %v6621_v11, 16  ;;  %v4053_v63 = vrot.slane %v4051_v48, 1 }
  0xf2   : > { %v6575_v34 = vpop.f32.mrf.mxu1  ;;  %v371_v50 = vadd.f32 %v366_v31, %v314_v45  ;;  %v3733_v31 = vsel %vm226_vm0, %v4947_v18, 0  ;;  %v6656_v45 = vld [vmem:[%s6902_s2] ss:$0 sm:$0xff] }
  0xf3   : > { %v5237_v39 = vpop.f32.mrf.mxu0 }
  0xf4   : > { %v5255_v42 = vpop.f32.mrf.mxu1  ;;  %v427_v0 = vadd.f32 %v6546_v13, %v371_v50  ;;  %v3905_v39 = vsel %vm226_vm0, %v4955_v26, 0 }
  0xf5   : > { %v484_v43 = vpop.f32.mrf.mxu0  ;;  %5535 = vmatmul.mubr.msk.bf16.vlgmr.msra.gmra.mxu0 %vm222_vm2, %v3353_v32  ;;  %v3781_v32 = vsel %vm319_vm4, %v3779_v14, %v3780_v15  ;;  %v3727_v42 = vrot.slane %v3725_v23, 1  ;;  %v6712_v23 = vld [vmem:[%s5991_s28 + $0x60] sm:$0xff]  }
  0xf6   : > { %5545 = vmatpush3.bf16.msra.mxu0 %v3517_v40  ;;  %v6586_v46 = vpop.f32.mrf.mxu1  ;;  %5553 = vmatmul.mubr.msk.bf16.vlgmr.msra.gmra.mxu1 %vm222_vm2, %v6553_v16  ;;  %v491_v55 = vadd.f32 %v484_v43, %v426_v51  ;;  %v3895_v43 = vor.u32 %v3894_v28, %v3890_v27  ;;  %v4952_v51 = vld [vmem:[%s6901_s1 + $0x18] sm:$0xf] }
  0xf7   : > { %v5248_v49 = vpop.f32.mrf.mxu0  ;;  %5546 = vmatprep.mubr.msk.bf16.mxu0 %vm5871_vm1, %v5870_v1  ;;  %5556 = vmatprep.subr.bf16.mxu0 %v5870_v1 }
  0xf8   : > { %v5266_v52 = vpop.f32.mrf.mxu1  ;;  %5563 = vmatpush3.bf16.msra.mxu1 %v3669_v44  ;;  %5564 = vmatprep.mubr.msk.bf16.mxu1 %vm5871_vm1, %v5870_v1  ;;  %v545_v9 = vadd.f32 %v538_v25, %v491_v55  ;;  %v3899_v44 = vrot.slane %v3897_v29, 1 }
  0xf9   : > { %v487_v54 = vpop.f32.mrf.mxu0  ;;  %5574 = vmatprep.subr.bf16.mxu1 %v5870_v1 }
  0xfa   : > { %v6600_v56 = vpop.f32.mrf.mxu1  ;;  %v492_v8 = vadd.f32 %v487_v54, %v427_v0  ;;  %v4056_v0 = vshll.u32 %v6662_v47, 16 }
  0xfb   : > { %v5249_v61 = vpop.f32.mrf.mxu0 }
  0xfc   : > { %v5267_v2 = vpop.f32.mrf.mxu1  ;;  %v546_v24 = vadd.f32 %v6575_v34, %v492_v8  ;;  %v3841_v61 = vsel %vm226_vm0, %v4952_v51, 0 }
  0xfd   : > { %v594_v3 = vpop.f32.mrf.mxu0  ;;  %5547 = vmatmul.mubr.msk.bf16.vlgmr.msra.gmra.mxu0 %vm222_vm2, %v3512_v57  ;;  %v3900_v57 = vsel %vm209_vm3, %v3895_v43, %v3899_v44 }
  0xfe   : > { %5557 = vmatpush3.bf16.msra.mxu0 %v3614_v62  ;;  %v6617_v10 = vpop.f32.mrf.mxu1  ;;  %5565 = vmatmul.mubr.msk.bf16.vlgmr.msra.gmra.mxu1 %vm222_vm2, %v5766_v58  ;;  %v601_v16 = vadd.f32 %v594_v3, %v545_v9  ;;  %v4976_v58 = vld [vmem:[%s6901_s1 + $0x4] sm:$0xf]  ;;  %v4049_v62 = vshrl.u32 %v6645_v33, 16 }
  0xff   : > { %v5260_v13 = vpop.f32.mrf.mxu0  ;;  %5558 = vmatprep.mubr.msk.bf16.mxu0 %vm5871_vm1, %v5870_v1  ;;  %5568 = vmatprep.subr.bf16.mxu0 %v5870_v1  ;;  %v4064_v5 = vsel %vm226_vm0, %v4976_v58, 0 }
 0x100   : > { %v5278_v17 = vpop.f32.mrf.mxu1  ;;  %5575 = vmatpush3.bf16.msra.mxu1 %v3786_v6  ;;  %5576 = vmatprep.mubr.msk.bf16.mxu1 %vm5871_vm1, %v5870_v1  ;;  %v666_v34 = vadd.f32 %v6586_v46, %v601_v16  ;;  %v4054_v12 = vor.u32 %v4053_v63, %v4049_v62  ;;  %v4058_v13 = vrot.slane %v4056_v0, 1  ;;  %v4958_v16 = vld [vmem:[%s6901_s1 + $0x20] sm:$0xf]  ;;  %v4983_v63 = vld [vmem:[%s6901_s1 + $0xc] sm:$0xf] }
 0x101   : > { %v597_v19 = vpop.f32.mrf.mxu0  ;;  %5586 = vmatprep.subr.bf16.mxu1 %v5870_v1  ;;  %v3958_v21 = vsel %vm226_vm0, %v4958_v16, 0 }
 0x102   : > { %v6635_v25 = vpop.f32.mrf.mxu1  ;;  %v602_v35 = vadd.f32 %v597_v19, %v546_v24  ;;  %v4981_v19 = vld [vmem:[%s6901_s1 + $0x8] sm:$0xf]  ;;  %v4059_v22 = vsel %vm209_vm3, %v4054_v12, %v4058_v13 }
 0x103   : > { %v5261_v30 = vpop.f32.mrf.mxu0  ;;  %v4161_v28 = vsel %vm226_vm0, %v4981_v19, 0 }
 0x104   : > { %v5279_v36 = vpop.f32.mrf.mxu1  ;;  %v667_v49 = vadd.f32 %v6600_v56, %v602_v35  ;;  %v3728_v56 = vsel %vm209_vm3, %v3723_v38, %v3727_v42  ;;  %v3951_v30 = vrot.slane %v6608_v60, 1  ;;  %v4154_v35 = vrot.slane %v6645_v33, 1 }
 0x105   : > { %v713_v37 = vpop.f32.mrf.mxu0  ;;  %5559 = vmatmul.mubr.msk.bf16.vlgmr.msra.gmra.mxu0 %vm222_vm2, %v3609_v20  ;;  %v6730_v36 = vld [vmem:[%s5991_s28 + $0x68] ss:$0 sps:$4 sm:$0x11]  }
 0x106   : > { %v720_v40 = vadd.f32 %v713_v37, %v666_v34  ;;  %5569 = vmatpush3.bf16.msra.mxu0 %v3733_v31  ;;  %v6650_v41 = vpop.f32.mrf.mxu1  ;;  %5577 = vmatmul.mubr.msk.bf16.vlgmr.msra.gmra.mxu1 %vm222_vm2, %v3781_v32  ;;  %v3952_v31 = vrot.slane %v6621_v11, 1  ;;  %v4155_v34 = vrot.slane %v6662_v47, 1  ;;  %v4265_v47 = vshrl.u32 %v6712_v23, 16 }
 0x107   : > { %v5272_v46 = vpop.f32.mrf.mxu0  ;;  %5570 = vmatprep.mubr.msk.bf16.mxu0 %vm5871_vm1, %v5870_v1  ;;  %5580 = vmatprep.subr.bf16.mxu0 %v5870_v1 }
 0x108   : > { %v5290_v50 = vpop.f32.mrf.mxu1  ;;  %5587 = vmatpush3.bf16.msra.mxu1 %v3905_v39  ;;  %5588 = vmatprep.mubr.msk.bf16.mxu1 %vm5871_vm1, %v5870_v1  ;;  %v729_v53 = vadd.f32 %v6656_v45, %v720_v40  ;;  %v3953_v43 = vsel %vm319_vm4, %v3951_v30, %v3952_v31  ;;  %v5775_v30 = vld [vmem:[%s5991_s28 + $0x74] ss:$0 sps:$4 sm:$0x11]  }
 0x109   : > { %v716_v52 = vpop.f32.mrf.mxu0  ;;  %5598 = vmatprep.subr.bf16.mxu1 %v5870_v1 }
 0x10a   : > { %v721_v54 = vadd.f32 %v716_v52, %v667_v49  ;;  %v6674_v55 = vpop.f32.mrf.mxu1  ;;  %v731_v6 = vmax.f32 %v729_v53, 0.0  ;;  %v4272_v49 = vshll.u32 %v6730_v36, 16 }
 0x10b   : > { %v5273_v59 = vpop.f32.mrf.mxu0 }
 0x10c   : > { %v730_v2 = vadd.f32 %v6656_v45, %v721_v54  ;;  %v5291_v3 = vpop.f32.mrf.mxu1  ;;  %v4274_v59 = vrot.slane %v4272_v49, 1 }
 0x10d   : > { %v864_v4 = vpop.f32.mrf.mxu0  ;;  %5571 = vmatmul.mubr.msk.bf16.vlgmr.msra.gmra.mxu0 %vm222_vm2, %v3728_v56 }
 0x10e   : > { %v732_v7 = vmax.f32 %v730_v2, 0.0  ;;  %5581 = vmatpush3.bf16.msra.mxu0 %v3841_v61  ;;  %v6689_v8 = vpop.f32.mrf.mxu1  ;;  %5589 = vmatmul.mubr.msk.bf16.vlgmr.msra.gmra.mxu1 %vm222_vm2, %v3900_v57  ;;  %v865_v24 = vadd.f32 %v864_v4, %v6617_v10  ;;  %v4038_v10 = vld [vmem:[%s6901_s1] sm:$0xf]  ;;  %v4991_v4 = vld [vmem:[%s6901_s1 + $0x18] sm:$0xf] }
 0x10f   : > { %v5284_v9 = vpop.f32.mrf.mxu0  ;;  %5582 = vmatprep.mubr.msk.bf16.mxu0 %vm5871_vm1, %v5870_v1  ;;  %5592 = vmatprep.subr.bf16.mxu0 %v5870_v1  ;;  %v4110_v44 = vsel %vm226_vm0, %v4038_v10, 0 }
 0x110   : > { %v5032_v14 = vpack.c.bf16 %v732_v7, %v731_v6  ;;  %v5302_v15 = vpop.f32.mrf.mxu1  ;;  %5599 = vmatpush3.bf16.msra.mxu1 %v4064_v5  ;;  %5600 = vmatprep.mubr.msk.bf16.mxu1 %vm5871_vm1, %v5870_v1  ;;  %v922_v37 = vadd.f32 %v6650_v41, %v865_v24  ;;  %v4156_v41 = vsel %vm319_vm4, %v4154_v35, %v4155_v34  ;;  %v4216_v6 = vsel %vm226_vm0, %v4983_v63, 0 }
 0x111   : > { %v867_v17 = vpop.f32.mrf.mxu0  ;;  %5610 = vmatprep.subr.bf16.mxu1 %v5870_v1  ;;  %v4326_v34 = vrot.slane %v6712_v23, 1 }
 0x112   : > { %5033 = vst [vmem:[%s6701_s20] sm:$0xff] %v5032_v14   ;;  %v6704_v18 = vpop.f32.mrf.mxu1  ;;  %v868_v11 = vadd.f32 %v867_v17, %v6635_v25  ;;  %v4986_v25 = vld [vmem:[%s6901_s1 + $0x10] sm:$0xf]  ;;  %v4388_v14 = vsel %vm226_vm0, %v4991_v4, 0 }
 0x113   : > { %v5285_v20 = vpop.f32.mrf.mxu0  ;;  %v4280_v53 = vsel %vm226_vm0, %v4986_v25, 0  ;;  %v4994_v25 = vld [vmem:[%s6901_s1 + $0x1c] sm:$0xf] }
 0x114   : > { %v5303_v26 = vpop.f32.mrf.mxu1  ;;  %v923_v50 = vadd.f32 %v6674_v55, %v868_v11 }
 0x115   : > { %v970_v27 = vpop.f32.mrf.mxu0  ;;  %5583 = vmatmul.mubr.msk.bf16.vlgmr.msra.gmra.mxu0 %vm222_vm2, %v6608_v60  ;;  %v4267_v60 = vshll.u32 %v6712_v23, 16  ;;  %v5774_v26 = vld [vmem:[%s5991_s28 + $0x6c] sm:$0xff]   ;;  %s5872_s28 = smov [#allocation2]  }
 0x116   : > { %5593 = vmatpush3.bf16.msra.mxu0 %v3958_v21  ;;  %v1142_v29 = vpop.f32.mrf.mxu1  ;;  %5601 = vmatmul.mubr.msk.bf16.vlgmr.msra.gmra.mxu1 %vm222_vm2, %v4059_v22  ;;  %v977_v40 = vadd.f32 %v970_v27, %v922_v37  ;;  %v4997_v27 = vld [vmem:[%s6901_s1 + $0x20] sm:$0xf]  ;;  %v4437_v49 = vshrl.u32 %v5774_v26, 16  ;;  %s5780_s29 = sshll.u32 %s5872_s28, 4  ;;  %s5781_s29 = int_to_ptr.vmem [resolvable:$false] %s5780_s29 }
 0x117   : > { %v5296_v32 = vpop.f32.mrf.mxu0  ;;  %5594 = vmatprep.mubr.msk.bf16.mxu0 %vm5871_vm1, %v5870_v1  ;;  %5604 = vmatprep.subr.bf16.mxu0 %v5870_v1  ;;  %v4269_v48 = vrot.slane %v4267_v60, 1  ;;  %v4327_v60 = vrot.slane %v6730_v36, 1  ;;  %v4505_v11 = vsel %vm226_vm0, %v4997_v27, 0  ;;  %s5782_s4 = scalar_lea.vmem %s5781_s29, 2048  ;;  %p5783_p2 = scmp.lt.s32.totalorder %s6844_s11, %s5781_s29 }
 0x118   : > { %v5314_v38 = vpop.f32.mrf.mxu1  ;;  %5611 = vmatpush3.bf16.msra.mxu1 %v4161_v28  ;;  %5612 = vmatprep.mubr.msk.bf16.mxu1 %vm5871_vm1, %v5870_v1  ;;  %v1041_v56 = vadd.f32 %v6689_v8, %v977_v40  ;;  %p5784_p4 = scmp.lt.s32.totalorder %s5782_s4, %s5776_s27 }
 0x119   : > { %v973_v39 = vpop.f32.mrf.mxu0  ;;  %5622 = vmatprep.subr.bf16.mxu1 %v5870_v1  ;;  %v4270_v55 = vor.u32 %v4269_v48, %v4265_v47 }
 0x11a   : > { %v1145_v42 = vpop.f32.mrf.mxu1  ;;  %v978_v54 = vadd.f32 %v973_v39, %v923_v50  ;;  %v4439_v39 = vshll.u32 %v5774_v26, 16  ;;  %p5785_p5 = por %p5784_p4, %p5783_p2 }
 0x11b   : > { %v5297_v46 = vpop.f32.mrf.mxu0  ;;  %v4275_v7 = vsel %vm209_vm3, %v4270_v55, %v4274_v59 }
 0x11c   : > { %v5315_v51 = vpop.f32.mrf.mxu1  ;;  %v1042_v2 = vadd.f32 %v6704_v18, %v978_v54  ;;  %v4441_v50 = vrot.slane %v4439_v39, 1  ;;  %p5786_p6 = pnand %p5785_p5, %p5779_p1 }
 0x11d   : > { %v1087_v52 = vpop.f32.mrf.mxu0  ;;  %5595 = vmatmul.mubr.msk.bf16.vlgmr.msra.gmra.mxu0 %vm222_vm2, %v3953_v43  ;;  %v4499_v43 = vrot.slane %v5775_v30, 1  ;;  %v4444_v51 = vshll.u32 %v5775_v30, 16 }
 0x11e   : > { %5605 = vmatpush3.bf16.msra.mxu0 %v4110_v44  ;;  %v1259_v57 = vpop.f32.mrf.mxu1  ;;  %5613 = vmatmul.mubr.msk.bf16.vlgmr.msra.gmra.mxu1 %vm222_vm2, %v4156_v41  ;;  %v1094_v61 = vadd.f32 %v1087_v52, %v1041_v56  ;;  %v4328_v41 = vsel %vm319_vm4, %v4326_v34, %v4327_v60  ;;  %v4442_v55 = vor.u32 %v4441_v50, %v4437_v49 }
 0x11f   : > { %v5308_v58 = vpop.f32.mrf.mxu0  ;;  %5606 = vmatprep.mubr.msk.bf16.mxu0 %vm5871_vm1, %v5870_v1  ;;  %5616 = vmatprep.subr.bf16.mxu0 %v5870_v1  ;;  %v4446_v59 = vrot.slane %v4444_v51, 1 }
 0x120   : > { %v5326_v62 = vpop.f32.mrf.mxu1  ;;  %5623 = vmatpush3.bf16.msra.mxu1 %v4280_v53  ;;  %5624 = vmatprep.mubr.msk.bf16.mxu1 %vm5871_vm1, %v5870_v1  ;;  %v1149_v9 = vadd.f32 %v1142_v29, %v1094_v61  ;;  %v4452_v53 = vsel %vm226_vm0, %v4994_v25, 0 }
 0x121   : > { %v1090_v0 = vpop.f32.mrf.mxu0  ;;  %5634 = vmatprep.subr.bf16.mxu1 %v5870_v1 }
 0x122   : > { %v1262_v3 = vpop.f32.mrf.mxu1  ;;  %v1095_v8 = vadd.f32 %v1090_v0, %v1042_v2 }
 0x123   : > { %v5309_v5 = vpop.f32.mrf.mxu0 }
 0x124   : > { %v5327_v12 = vpop.f32.mrf.mxu1  ;;  %v1150_v19 = vadd.f32 %v1145_v42, %v1095_v8  ;;  %v4498_v42 = vrot.slane %v5774_v26, 1 }
 0x125   : > { %v1206_v13 = vpop.f32.mrf.mxu0  ;;  %5607 = vmatmul.mubr.msk.bf16.vlgmr.msra.gmra.mxu0 %vm222_vm2, %v6645_v33  ;;  %v4989_v33 = vld [vmem:[%s6901_s1 + $0x14] sm:$0xf] }
 0x126   : > { %v1213_v15 = vadd.f32 %v1206_v13, %v1149_v9  ;;  %5617 = vmatpush3.bf16.msra.mxu0 %v4216_v6  ;;  %v6769_v16 = vpop.f32.mrf.mxu1  ;;  %5625 = vmatmul.mubr.msk.bf16.vlgmr.msra.gmra.mxu1 %vm222_vm2, %v4275_v7  ;;  %v4333_v29 = vsel %vm226_vm0, %v4989_v33, 0  ;;  %v4500_v54 = vsel %vm319_vm4, %v4498_v42, %v4499_v43 }
 0x127   : > { %v5320_v17 = vpop.f32.mrf.mxu0  ;;  %5618 = vmatprep.mubr.msk.bf16.mxu0 %vm5871_vm1, %v5870_v1  ;;  %5628 = vmatprep.subr.bf16.mxu0 %v5870_v1 }
 0x128   : > { %v1266_v18 = vadd.f32 %v1259_v57, %v1213_v15  ;;  %v5338_v20 = vpop.f32.mrf.mxu1  ;;  %5635 = vmatpush3.bf16.msra.mxu1 %v4388_v14  ;;  %5636 = vmatprep.mubr.msk.bf16.mxu1 %vm5871_vm1, %v5870_v1 }
 0x129   : > { %v1209_v21 = vpop.f32.mrf.mxu0  ;;  %5646 = vmatprep.subr.bf16.mxu1 %v5870_v1 }
 0x12a   : > { %v1214_v22 = vadd.f32 %v1209_v21, %v1150_v19  ;;  %v1414_v24 = vpop.f32.mrf.mxu1  ;;  %v1275_v31 = vadd.f32 %v6656_v45, %v1266_v18 }
 0x12b   : > { %v5321_v28 = vpop.f32.mrf.mxu0 }
 0x12c   : > { %v1267_v10 = vadd.f32 %v1262_v3, %v1214_v22  ;;  %v5339_v32 = vpop.f32.mrf.mxu1  ;;  %v4447_v3 = vsel %vm209_vm3, %v4442_v55, %v4446_v59 }
 0x12d   : > { %v1365_v35 = vpop.f32.mrf.mxu0  ;;  %5619 = vmatmul.mubr.msk.bf16.vlgmr.msra.gmra.mxu0 %vm222_vm2, %v6712_v23  ;;  %v1277_v23 = vmax.f32 %v1275_v31, 0.0 }
 0x12e   : > { %v1276_v37 = vadd.f32 %v6656_v45, %v1267_v10  ;;  %5629 = vmatpush3.bf16.msra.mxu0 %v4333_v29  ;;  %v1517_v38 = vpop.f32.mrf.mxu1  ;;  %5637 = vmatmul.mubr.msk.bf16.vlgmr.msra.gmra.mxu1 %vm222_vm2, %v5774_v26  ;;  %v1412_v0 = vadd.f32 %v6769_v16, %v1365_v35 }
 0x12f   : > { %v5332_v40 = vpop.f32.mrf.mxu0  ;;  %5630 = vmatprep.mubr.msk.bf16.mxu0 %vm5871_vm1, %v5870_v1  ;;  %5640 = vmatprep.subr.bf16.mxu0 %v5870_v1 }
 0x130   : > { %v1278_v36 = vmax.f32 %v1276_v37, 0.0  ;;  %v5350_v44 = vpop.f32.mrf.mxu1  ;;  %5647 = vmatpush3.bf16.msra.mxu1 %v4505_v11  ;;  %5648 = vmatprep.mubr.msk.bf16.mxu1 %vm5871_vm1, %v5870_v1 }
 0x131   : > { %v1368_v46 = vpop.f32.mrf.mxu0 }
 0x132   : > { %v5037_v47 = vpack.c.bf16 %v1278_v36, %v1277_v23  ;;  %v1520_v48 = vpop.f32.mrf.mxu1  ;;  %v1415_v8 = vadd.f32 %v1414_v24, %v1368_v46 }
 0x133   : > { %v5333_v52 = vpop.f32.mrf.mxu0 }
 0x134   : > { %5069 = vst [vmem:[%s6701_s20 + $0x8] sm:$0xff] %v5037_v47   ;;  %v5351_v56 = vpop.f32.mrf.mxu1 }
 0x135   : > { %v1462_v57 = vpop.f32.mrf.mxu0  ;;  %5631 = vmatmul.mubr.msk.bf16.vlgmr.msra.gmra.mxu0 %vm222_vm2, %v4328_v41 }
 0x136   : > { %5641 = vmatpush3.bf16.msra.mxu0 %v4452_v53  ;;  %v1634_v58 = vpop.f32.mrf.mxu1  ;;  %5649 = vmatmul.mubr.msk.bf16.vlgmr.msra.gmra.mxu1 %vm222_vm2, %v4500_v54  ;;  %v1469_v5 = vadd.f32 %v1462_v57, %v1412_v0 }
 0x137   : > { %v5344_v61 = vpop.f32.mrf.mxu0  ;;  %5642 = vmatprep.mubr.msk.bf16.mxu0 %vm5871_vm1, %v5870_v1 }
 0x138   : > { %v5362_v62 = vpop.f32.mrf.mxu1  ;;  %v1524_v14 = vadd.f32 %v1517_v38, %v1469_v5 }
 0x139   : > { %v1465_v63 = vpop.f32.mrf.mxu0 }
 0x13a   : > { %v1637_v2 = vpop.f32.mrf.mxu1  ;;  %v1470_v13 = vadd.f32 %v1465_v63, %v1415_v8 }
 0x13b   : > { %v5345_v4 = vpop.f32.mrf.mxu0 }
 0x13c   : > { %v5363_v6 = vpop.f32.mrf.mxu1  ;;  %v1525_v16 = vadd.f32 %v1520_v48, %v1470_v13 }
 0x13d   : > { %v1581_v7 = vpop.f32.mrf.mxu0  ;;  %5643 = vmatmul.mubr.msk.bf16.vlgmr.msra.gmra.mxu0 %vm222_vm2, %v4447_v3 }
 0x13e   : > { %v1753_v9 = vpop.f32.mrf.mxu1  ;;  %v1588_v17 = vadd.f32 %v1581_v7, %v1524_v14 }
 0x13f   : > { %v5356_v12 = vpop.f32.mrf.mxu0 }
 0x140   : > { %v5374_v15 = vpop.f32.mrf.mxu1  ;;  %v1641_v22 = vadd.f32 %v1634_v58, %v1588_v17 }
 0x141   : > { %v1584_v1 = vpop.f32.mrf.mxu0 }
 0x142   : > { %v1756_v18 = vpop.f32.mrf.mxu1  ;;  %v1589_v21 = vadd.f32 %v1584_v1, %v1525_v16 }
 0x143   : > { %v5357_v19 = vpop.f32.mrf.mxu0 }
 0x144   : > { %v5375_v20 = vpop.f32.mrf.mxu1  ;;  %v1642_v24 = vadd.f32 %v1637_v2, %v1589_v21 }
 0x145   : > { %v1689_v33 = vpop.f32.mrf.mxu0 }
 0x146   : > { %v1912_v26 = vpop.f32.mrf.mxu1  ;;  %v1696_v28 = vadd.f32 %v1689_v33, %v1641_v22 }
 0x147   : > { %v5368_v27 = vpop.f32.mrf.mxu0 }
 0x148   : > { %v5386_v29 = vpop.f32.mrf.mxu1  ;;  %v1760_v35 = vadd.f32 %v1753_v9, %v1696_v28 }
 0x149   : > { %v1692_v30 = vpop.f32.mrf.mxu0 }
 0x14a   : > { %v1915_v31 = vpop.f32.mrf.mxu1  ;;  %v1697_v32 = vadd.f32 %v1692_v30, %v1642_v24 }
 0x14b   : > { %v5369_v10 = vpop.f32.mrf.mxu0 }
 0x14c   : > { %v5387_v34 = vpop.f32.mrf.mxu1  ;;  %v1761_v39 = vadd.f32 %v1756_v18, %v1697_v32 }
 0x14d   : > { %v1806_v60 = vpop.f32.mrf.mxu0 }
 0x14e   : > { %v1813_v11 = vadd.f32 %v1806_v60, %v1760_v35  ;;  %v2009_v37 = vpop.f32.mrf.mxu1 }
 0x14f   : > { %v5380_v38 = vpop.f32.mrf.mxu0 }
 0x150   : > { %v5398_v40 = vpop.f32.mrf.mxu1  ;;  %v1822_v43 = vadd.f32 %v6656_v45, %v1813_v11 }
 0x151   : > { %v1809_v42 = vpop.f32.mrf.mxu0 }
 0x152   : > { %v1814_v23 = vadd.f32 %v1809_v42, %v1761_v39  ;;  %v2012_v36 = vpop.f32.mrf.mxu1  ;;  %v1824_v47 = vmax.f32 %v1822_v43, 0.0 }
 0x153   : > { %v5381_v44 = vpop.f32.mrf.mxu0 }
 0x154   : > { %v1823_v25 = vadd.f32 %v6656_v45, %v1814_v23  ;;  %v5399_v46 = vpop.f32.mrf.mxu1 }
 0x155   : > { %v1958_v41 = vpop.f32.mrf.mxu0 }
 0x156   : > { %v1825_v48 = vmax.f32 %v1823_v25, 0.0  ;;  %v2128_v49 = vpop.f32.mrf.mxu1  ;;  %v1959_v57 = vadd.f32 %v1958_v41, %v1912_v26 }
 0x157   : > { %v5392_v50 = vpop.f32.mrf.mxu0 }
 0x158   : > { %v5042_v51 = vpack.c.bf16 %v1825_v48, %v1824_v47  ;;  %v5410_v52 = vpop.f32.mrf.mxu1  ;;  %v2016_v63 = vadd.f32 %v2009_v37, %v1959_v57 }
 0x159   : > { %v1961_v53 = vpop.f32.mrf.mxu0 }
 0x15a   : > { %5070 = vst [vmem:[%s6701_s20 + $0x10] sm:$0xff] %v5042_v51   ;;  %v2131_v54 = vpop.f32.mrf.mxu1  ;;  %v1962_v62 = vadd.f32 %v1961_v53, %v1915_v31 }
 0x15b   : > { %v5393_v56 = vpop.f32.mrf.mxu0 }
 0x15c   : > { %v5411_v58 = vpop.f32.mrf.mxu1  ;;  %v2017_v6 = vadd.f32 %v2012_v36, %v1962_v62 }
 0x15d   : > { %v2064_v55 = vpop.f32.mrf.mxu0 }
 0x15e   : > { %v2236_v59 = vpop.f32.mrf.mxu1  ;;  %v2071_v3 = vadd.f32 %v2064_v55, %v2016_v63 }
 0x15f   : > { %v5404_v61 = vpop.f32.mrf.mxu0 }
 0x160   : > { %v5422_v0 = vpop.f32.mrf.mxu1  ;;  %v2135_v12 = vadd.f32 %v2128_v49, %v2071_v3 }
 0x161   : > { %v2067_v2 = vpop.f32.mrf.mxu0 }
 0x162   : > { %v2239_v4 = vpop.f32.mrf.mxu1  ;;  %v2072_v9 = vadd.f32 %v2067_v2, %v2017_v6 }
 0x163   : > { %v5405_v5 = vpop.f32.mrf.mxu0 }
 0x164   : > { %v5423_v7 = vpop.f32.mrf.mxu1  ;;  %v2136_v18 = vadd.f32 %v2131_v54, %v2072_v9 }
 0x165   : > { %v2181_v8 = vpop.f32.mrf.mxu0 }
 0x166   : > { %v2353_v13 = vpop.f32.mrf.mxu1  ;;  %v2188_v15 = vadd.f32 %v2181_v8, %v2135_v12 }
 0x167   : > { %v5416_v14 = vpop.f32.mrf.mxu0 }
 0x168   : > { %v5434_v1 = vpop.f32.mrf.mxu1  ;;  %v2243_v33 = vadd.f32 %v2236_v59, %v2188_v15 }
 0x169   : > { %v2184_v17 = vpop.f32.mrf.mxu0 }
 0x16a   : > { %v2356_v19 = vpop.f32.mrf.mxu1  ;;  %v2189_v20 = vadd.f32 %v2184_v17, %v2136_v18 }
 0x16b   : > { %v5417_v16 = vpop.f32.mrf.mxu0 }
 0x16c   : > { %v5435_v21 = vpop.f32.mrf.mxu1  ;;  %v2244_v30 = vadd.f32 %v2239_v4, %v2189_v20 }
 0x16d   : > { %v2300_v22 = vpop.f32.mrf.mxu0 }
 0x16e   : > { %v2307_v26 = vadd.f32 %v2300_v22, %v2243_v33  ;;  %v2505_v27 = vpop.f32.mrf.mxu1 }
 0x16f   : > { %v5428_v28 = vpop.f32.mrf.mxu0 }
 0x170   : > { %v2360_v29 = vadd.f32 %v2353_v13, %v2307_v26  ;;  %v5446_v24 = vpop.f32.mrf.mxu1 }
 0x171   : > { %v2303_v31 = vpop.f32.mrf.mxu0 }
 0x172   : > { %v2308_v10 = vadd.f32 %v2303_v31, %v2244_v30  ;;  %v2508_v32 = vpop.f32.mrf.mxu1  ;;  %v2369_v34 = vadd.f32 %v6656_v45, %v2360_v29 }
 0x173   : > { %v5429_v35 = vpop.f32.mrf.mxu0 }
 0x174   : > { %v2361_v60 = vadd.f32 %v2356_v19, %v2308_v10  ;;  %v5447_v11 = vpop.f32.mrf.mxu1  ;;  %v2371_v42 = vmax.f32 %v2369_v34, 0.0 }
 0x175   : > { %v2459_v37 = vpop.f32.mrf.mxu0 }
 0x176   : > { %v2370_v38 = vadd.f32 %v6656_v45, %v2361_v60  ;;  %v2611_v39 = vpop.f32.mrf.mxu1  ;;  %v2506_v52 = vadd.f32 %v2505_v27, %v2459_v37 }
 0x177   : > { %v5440_v40 = vpop.f32.mrf.mxu0 }
 0x178   : > { %v2372_v43 = vmax.f32 %v2370_v38, 0.0  ;;  %v5458_v23 = vpop.f32.mrf.mxu1 }
 0x179   : > { %v2462_v36 = vpop.f32.mrf.mxu0 }
 0x17a   : > { %v5047_v44 = vpack.c.bf16 %v2372_v43, %v2371_v42  ;;  %v2614_v25 = vpop.f32.mrf.mxu1  ;;  %v2509_v55 = vadd.f32 %v2508_v32, %v2462_v36 }
 0x17b   : > { %v5441_v46 = vpop.f32.mrf.mxu0 }
 0x17c   : > { %5071 = vst [vmem:[%s6701_s20 + $0x18] sm:$0xff] %v5047_v44   ;;  %v5459_v41 = vpop.f32.mrf.mxu1 }
 0x17d   : > { %v2556_v47 = vpop.f32.mrf.mxu0 }
 0x17e   : > { %v2728_v48 = vpop.f32.mrf.mxu1  ;;  %v2563_v56 = vadd.f32 %v2556_v47, %v2506_v52 }
 0x17f   : > { %v5452_v49 = vpop.f32.mrf.mxu0 }
 0x180   : > { %v5470_v50 = vpop.f32.mrf.mxu1  ;;  %v2618_v63 = vadd.f32 %v2611_v39, %v2563_v56 }
 0x181   : > { %v2559_v51 = vpop.f32.mrf.mxu0 }
 0x182   : > { %v2731_v53 = vpop.f32.mrf.mxu1  ;;  %v2564_v62 = vadd.f32 %v2559_v51, %v2509_v55 }
 0x183   : > { %v5453_v54 = vpop.f32.mrf.mxu0 }
 0x184   : > { %v5471_v57 = vpop.f32.mrf.mxu1  ;;  %v2619_v6 = vadd.f32 %v2614_v25, %v2564_v62 }
 0x185   : > { %v2675_v58 = vpop.f32.mrf.mxu0 }
 0x186   : > { %v2847_v59 = vpop.f32.mrf.mxu1  ;;  %v2682_v3 = vadd.f32 %v2675_v58, %v2618_v63 }
 0x187   : > { %v5464_v61 = vpop.f32.mrf.mxu0 }
 0x188   : > { %v5482_v0 = vpop.f32.mrf.mxu1  ;;  %v2735_v12 = vadd.f32 %v2728_v48, %v2682_v3 }
 0x189   : > { %v2678_v2 = vpop.f32.mrf.mxu0 }
 0x18a   : > { %v2850_v4 = vpop.f32.mrf.mxu1  ;;  %v2683_v9 = vadd.f32 %v2678_v2, %v2619_v6 }
 0x18b   : > { %v5465_v5 = vpop.f32.mrf.mxu0 }
 0x18c   : > { %v5483_v7 = vpop.f32.mrf.mxu1  ;;  %v2736_v18 = vadd.f32 %v2731_v53, %v2683_v9 }
 0x18d   : > { %v2783_v8 = vpop.f32.mrf.mxu0 }
 0x18e   : > { %v3006_v13 = vpop.f32.mrf.mxu1  ;;  %v2790_v15 = vadd.f32 %v2783_v8, %v2735_v12 }
 0x18f   : > { %v5476_v14 = vpop.f32.mrf.mxu0 }
 0x190   : > { %v5494_v1 = vpop.f32.mrf.mxu1  ;;  %v2854_v33 = vadd.f32 %v2847_v59, %v2790_v15 }
 0x191   : > { %v2786_v17 = vpop.f32.mrf.mxu0 }
 0x192   : > { %v3009_v19 = vpop.f32.mrf.mxu1  ;;  %v2791_v20 = vadd.f32 %v2786_v17, %v2736_v18 }
 0x193   : > { %v5477_v16 = vpop.f32.mrf.mxu0 }
 0x194   : > { %v5495_v21 = vpop.f32.mrf.mxu1  ;;  %v2855_v29 = vadd.f32 %v2850_v4, %v2791_v20 }
 0x195   : > { %v2900_v22 = vpop.f32.mrf.mxu0 }
 0x196   : > { %v2907_v26 = vadd.f32 %v2900_v22, %v2854_v33  ;;  %v3103_v27 = vpop.f32.mrf.mxu1 }
 0x197   : > { %v5488_v28 = vpop.f32.mrf.mxu0 }
 0x198   : > { %v5506_v30 = vpop.f32.mrf.mxu1  ;;  %v2916_v31 = vadd.f32 %v6656_v45, %v2907_v26 }
 0x199   : > { %v2903_v24 = vpop.f32.mrf.mxu0 }
 0x19a   : > { %v2908_v10 = vadd.f32 %v2903_v24, %v2855_v29  ;;  %v3106_v32 = vpop.f32.mrf.mxu1  ;;  %v2918_v37 = vmax.f32 %v2916_v31, 0.0 }
 0x19b   : > { %v5489_v35 = vpop.f32.mrf.mxu0 }
 0x19c   : > { %v2917_v34 = vadd.f32 %v6656_v45, %v2908_v10  ;;  %v5507_v60 = vpop.f32.mrf.mxu1 }
 0x19d   : > { %v3052_v11 = vpop.f32.mrf.mxu0 }
 0x19e   : > { %v2919_v38 = vmax.f32 %v2917_v34, 0.0  ;;  %v3222_v39 = vpop.f32.mrf.mxu1  ;;  %v3053_v25 = vadd.f32 %v3052_v11, %v3006_v13 }
 0x19f   : > { %v5500_v40 = vpop.f32.mrf.mxu0 }
 0x1a0   : > { %v5052_v42 = vpack.c.bf16 %v2919_v38, %v2918_v37  ;;  %v5518_v43 = vpop.f32.mrf.mxu1  ;;  %v3110_v50 = vadd.f32 %v3103_v27, %v3053_v25 }
 0x1a1   : > { %v3055_v23 = vpop.f32.mrf.mxu0 }
 0x1a2   : > { %5072 = vst [vmem:[%s6701_s20 + $0x20] sm:$0xff] %v5052_v42   ;;  %v3225_v36 = vpop.f32.mrf.mxu1  ;;  %v3056_v49 = vadd.f32 %v3055_v23, %v3009_v19 }
 0x1a3   : > { %v5501_v44 = vpop.f32.mrf.mxu0 }
 0x1a4   : > { %v5519_v46 = vpop.f32.mrf.mxu1  ;;  %v3111_v57 = vadd.f32 %v3106_v32, %v3056_v49 }
 0x1a5   : > { %v3158_v41 = vpop.f32.mrf.mxu0 }
 0x1a6   : > { %v3330_v47 = vpop.f32.mrf.mxu1  ;;  %v3165_v53 = vadd.f32 %v3158_v41, %v3110_v50 }
 0x1a7   : > { %v5512_v48 = vpop.f32.mrf.mxu0 }
 0x1a8   : > { %v5530_v51 = vpop.f32.mrf.mxu1  ;;  %v3229_v61 = vadd.f32 %v3222_v39, %v3165_v53 }
 0x1a9   : > { %v3161_v52 = vpop.f32.mrf.mxu0 }
 0x1aa   : > { %v3333_v54 = vpop.f32.mrf.mxu1  ;;  %v3166_v59 = vadd.f32 %v3161_v52, %v3111_v57 }
 0x1ab   : > { %v5513_v56 = vpop.f32.mrf.mxu0 }
 0x1ac   : > { %v5531_v58 = vpop.f32.mrf.mxu1  ;;  %v3230_v4 = vadd.f32 %v3225_v36, %v3166_v59 }
 0x1ad   : > { %v3275_v55 = vpop.f32.mrf.mxu0 }
 0x1ae   : > { %v3447_v62 = vpop.f32.mrf.mxu1  ;;  %v3282_v0 = vadd.f32 %v3275_v55, %v3229_v61 }
 0x1af   : > { %v5524_v63 = vpop.f32.mrf.mxu0 }
 0x1b0   : > { %v5542_v2 = vpop.f32.mrf.mxu1  ;;  %v3337_v8 = vadd.f32 %v3330_v47, %v3282_v0 }
 0x1b1   : > { %v3278_v3 = vpop.f32.mrf.mxu0 }
 0x1b2   : > { %v3450_v5 = vpop.f32.mrf.mxu1  ;;  %v3283_v7 = vadd.f32 %v3278_v3, %v3230_v4 }
 0x1b3   : > { %v5525_v6 = vpop.f32.mrf.mxu0 }
 0x1b4   : > { %v5543_v9 = vpop.f32.mrf.mxu1  ;;  %v3338_v17 = vadd.f32 %v3333_v54, %v3283_v7 }
 0x1b5   : > { %v3394_v12 = vpop.f32.mrf.mxu0 }
 0x1b6   : > { %v3401_v13 = vadd.f32 %v3394_v12, %v3337_v8  ;;  %v3599_v14 = vpop.f32.mrf.mxu1 }
 0x1b7   : > { %v5536_v15 = vpop.f32.mrf.mxu0 }
 0x1b8   : > { %v3454_v1 = vadd.f32 %v3447_v62, %v3401_v13  ;;  %v5554_v18 = vpop.f32.mrf.mxu1 }
 0x1b9   : > { %v3397_v19 = vpop.f32.mrf.mxu0 }
 0x1ba   : > { %v3402_v16 = vadd.f32 %v3397_v19, %v3338_v17  ;;  %v3602_v20 = vpop.f32.mrf.mxu1  ;;  %v3463_v21 = vadd.f32 %v6656_v45, %v3454_v1 }
 0x1bb   : > { %v5537_v33 = vpop.f32.mrf.mxu0 }
 0x1bc   : > { %v3455_v22 = vadd.f32 %v3450_v5, %v3402_v16  ;;  %v5555_v26 = vpop.f32.mrf.mxu1  ;;  %v3465_v24 = vmax.f32 %v3463_v21, 0.0 }
 0x1bd   : > { %v3553_v27 = vpop.f32.mrf.mxu0 }
 0x1be   : > { %v3464_v28 = vadd.f32 %v6656_v45, %v3455_v22  ;;  %v3705_v29 = vpop.f32.mrf.mxu1  ;;  %v3600_v43 = vadd.f32 %v3599_v14, %v3553_v27  ;;  %v6829_v14 = vld [vmem:[%s6902_s2] ss:$0 sm:$0xff] }
 0x1bf   : > { %v5548_v30 = vpop.f32.mrf.mxu0 }
 0x1c0   : > { %v3466_v31 = vmax.f32 %v3464_v28, 0.0  ;;  %v5566_v10 = vpop.f32.mrf.mxu1 }
 0x1c1   : > { %v3556_v32 = vpop.f32.mrf.mxu0 }
 0x1c2   : > { %v5057_v35 = vpack.c.bf16 %v3466_v31, %v3465_v24  ;;  %v3708_v34 = vpop.f32.mrf.mxu1  ;;  %v3603_v46 = vadd.f32 %v3602_v20, %v3556_v32 }
 0x1c3   : > { %v5549_v60 = vpop.f32.mrf.mxu0 }
 0x1c4   : > { %5073 = vst [vmem:[%s6701_s20 + $0x28] sm:$0xff] %v5057_v35   ;;  %v5567_v11 = vpop.f32.mrf.mxu1 }
 0x1c5   : > { %v3650_v37 = vpop.f32.mrf.mxu0 }
 0x1c6   : > { %v3822_v38 = vpop.f32.mrf.mxu1  ;;  %v3657_v45 = vadd.f32 %v3650_v37, %v3600_v43 }
 0x1c7   : > { %v5560_v39 = vpop.f32.mrf.mxu0 }
 0x1c8   : > { %v5578_v40 = vpop.f32.mrf.mxu1  ;;  %v3712_v49 = vadd.f32 %v3705_v29, %v3657_v45 }
 0x1c9   : > { %v3653_v42 = vpop.f32.mrf.mxu0 }
 0x1ca   : > { %v3825_v23 = vpop.f32.mrf.mxu1  ;;  %v3658_v48 = vadd.f32 %v3653_v42, %v3603_v46 }
 0x1cb   : > { %v5561_v36 = vpop.f32.mrf.mxu0 }
 0x1cc   : > { %v5579_v44 = vpop.f32.mrf.mxu1  ;;  %v3713_v56 = vadd.f32 %v3708_v34, %v3658_v48 }
 0x1cd   : > { %v3769_v25 = vpop.f32.mrf.mxu0 }
 0x1ce   : > { %v3941_v41 = vpop.f32.mrf.mxu1  ;;  %v3776_v52 = vadd.f32 %v3769_v25, %v3712_v49 }
 0x1cf   : > { %v5572_v47 = vpop.f32.mrf.mxu0 }
 0x1d0   : > { %v5590_v50 = vpop.f32.mrf.mxu1  ;;  %v3829_v59 = vadd.f32 %v3822_v38, %v3776_v52 }
 0x1d1   : > { %v3772_v51 = vpop.f32.mrf.mxu0 }
 0x1d2   : > { %v3944_v53 = vpop.f32.mrf.mxu1  ;;  %v3777_v55 = vadd.f32 %v3772_v51, %v3713_v56 }
 0x1d3   : > { %v5573_v54 = vpop.f32.mrf.mxu0 }
 0x1d4   : > { %v5591_v57 = vpop.f32.mrf.mxu1  ;;  %v3830_v3 = vadd.f32 %v3825_v23, %v3777_v55 }
 0x1d5   : > { %v3877_v58 = vpop.f32.mrf.mxu0 }
 0x1d6   : > { %v4100_v61 = vpop.f32.mrf.mxu1  ;;  %v3884_v63 = vadd.f32 %v3877_v58, %v3829_v59 }
 0x1d7   : > { %v5584_v62 = vpop.f32.mrf.mxu0 }
 0x1d8   : > { %v5602_v0 = vpop.f32.mrf.mxu1  ;;  %v3948_v7 = vadd.f32 %v3941_v41, %v3884_v63 }
 0x1d9   : > { %v3880_v2 = vpop.f32.mrf.mxu0 }
 0x1da   : > { %v4103_v4 = vpop.f32.mrf.mxu1  ;;  %v3885_v6 = vadd.f32 %v3880_v2, %v3830_v3 }
 0x1db   : > { %v5585_v5 = vpop.f32.mrf.mxu0 }
 0x1dc   : > { %v5603_v8 = vpop.f32.mrf.mxu1  ;;  %v3949_v1 = vadd.f32 %v3944_v53, %v3885_v6 }
 0x1dd   : > { %v3994_v9 = vpop.f32.mrf.mxu0 }
 0x1de   : > { %v4001_v12 = vadd.f32 %v3994_v9, %v3948_v7  ;;  %v4197_v13 = vpop.f32.mrf.mxu1 }
 0x1df   : > { %v5596_v15 = vpop.f32.mrf.mxu0 }
 0x1e0   : > { %v5614_v17 = vpop.f32.mrf.mxu1  ;;  %v4010_v19 = vadd.f32 %v6829_v14, %v4001_v12 }
 0x1e1   : > { %v3997_v18 = vpop.f32.mrf.mxu0 }
 0x1e2   : > { %v4002_v16 = vadd.f32 %v3997_v18, %v3949_v1  ;;  %v4200_v20 = vpop.f32.mrf.mxu1  ;;  %v4012_v27 = vmax.f32 %v4010_v19, 0.0 }
 0x1e3   : > { %v5597_v33 = vpop.f32.mrf.mxu0 }
 0x1e4   : > { %v4011_v21 = vadd.f32 %v6829_v14, %v4002_v16  ;;  %v5615_v22 = vpop.f32.mrf.mxu1 }
 0x1e5   : > { %v4146_v26 = vpop.f32.mrf.mxu0 }
 0x1e6   : > { %v4013_v28 = vmax.f32 %v4011_v21, 0.0  ;;  %v4316_v29 = vpop.f32.mrf.mxu1  ;;  %v4147_v34 = vadd.f32 %v4146_v26, %v4100_v61 }
 0x1e7   : > { %v5608_v30 = vpop.f32.mrf.mxu0 }
 0x1e8   : > { %v5062_v24 = vpack.c.bf16 %v4013_v28, %v4012_v27  ;;  %v5626_v31 = vpop.f32.mrf.mxu1  ;;  %v4204_v40 = vadd.f32 %v4197_v13, %v4147_v34 }
 0x1e9   : > { %v4149_v10 = vpop.f32.mrf.mxu0 }
 0x1ea   : > { %5074 = vst [vmem:[%s6701_s20 + $0x30] sm:$0xff] %v5062_v24   ;;  %v4319_v32 = vpop.f32.mrf.mxu1  ;;  %v4150_v39 = vadd.f32 %v4149_v10, %v4103_v4 }
 0x1eb   : > { %v5609_v35 = vpop.f32.mrf.mxu0 }
 0x1ec   : > { %v5627_v60 = vpop.f32.mrf.mxu1  ;;  %v4205_v44 = vadd.f32 %v4200_v20, %v4150_v39 }
 0x1ed   : > { %v4252_v11 = vpop.f32.mrf.mxu0 }
 0x1ee   : > { %v4424_v37 = vpop.f32.mrf.mxu1  ;;  %v4259_v23 = vadd.f32 %v4252_v11, %v4204_v40 }
 0x1ef   : > { %v5620_v38 = vpop.f32.mrf.mxu0 }
 0x1f0   : > { %v5638_v42 = vpop.f32.mrf.mxu1  ;;  %v4323_v47 = vadd.f32 %v4316_v29, %v4259_v23 }
 0x1f1   : > { %v4255_v43 = vpop.f32.mrf.mxu0 }
 0x1f2   : > { %v4427_v36 = vpop.f32.mrf.mxu1  ;;  %v4260_v41 = vadd.f32 %v4255_v43, %v4205_v44 }
 0x1f3   : > { %v5621_v45 = vpop.f32.mrf.mxu0 }
 0x1f4   : > { %v5639_v25 = vpop.f32.mrf.mxu1  ;;  %v4324_v53 = vadd.f32 %v4319_v32, %v4260_v41 }
 0x1f5   : > { %v4369_v46 = vpop.f32.mrf.mxu0 }
 0x1f6   : > { %v4541_v48 = vpop.f32.mrf.mxu1  ;;  %v4376_v50 = vadd.f32 %v4369_v46, %v4323_v47 }
 0x1f7   : > { %v5632_v49 = vpop.f32.mrf.mxu0 }
 0x1f8   : > { %v5650_v51 = vpop.f32.mrf.mxu1  ;;  %v4431_v58 = vadd.f32 %v4424_v37, %v4376_v50 }
 0x1f9   : > { %v4372_v52 = vpop.f32.mrf.mxu0 }
 0x1fa   : > { %v4544_v54 = vpop.f32.mrf.mxu1  ;;  %v4377_v57 = vadd.f32 %v4372_v52, %v4324_v53 }
 0x1fb   : > { %v5633_v56 = vpop.f32.mrf.mxu0 }
 0x1fc   : > { %v5651_v55 = vpop.f32.mrf.mxu1  ;;  %v4432_v0 = vadd.f32 %v4427_v36, %v4377_v57 }
 0x1fd   : > { %v4488_v59 = vpop.f32.mrf.mxu0 }
 0x1fe   : > { %v4495_v61 = vadd.f32 %v4488_v59, %v4431_v58 }
 0x1ff   : > { %v5644_v62 = vpop.f32.mrf.mxu0 }
 0x200   : > { %v4548_v63 = vadd.f32 %v4541_v48, %v4495_v61 }
 0x201   : > { %v4491_v2 = vpop.f32.mrf.mxu0 }
 0x202   : > { %v4496_v3 = vadd.f32 %v4491_v2, %v4432_v0  ;;  %v4557_v5 = vadd.f32 %v6829_v14, %v4548_v63 }
 0x203   : > { %v5645_v4 = vpop.f32.mrf.mxu0 }
 0x204   : > { %v4549_v6 = vadd.f32 %v4544_v54, %v4496_v3  ;;  %v4559_v8 = vmax.f32 %v4557_v5, 0.0 }
 0x206   : > { %v4558_v7 = vadd.f32 %v6829_v14, %v4549_v6 }
 0x208   : > { %v4560_v9 = vmax.f32 %v4558_v7, 0.0 }
 0x20a   : > { %v5067_v12 = vpack.c.bf16 %v4560_v9, %v4559_v8 }
 0x20c   : > { %5075 = vst [vmem:[%s6701_s20 + $0x38] sm:$0xff] %v5067_v12  }
 0x20d   : > { %5789 = shalt.err (!%p5786_p6)
}
 0x20e   : > { %s5790_s6 = scalar_lea.hbm %s6842_s15, 1024  ;;  %s5794_s7 = scalar_lea.hbm %s6903_s3, 4096 }
 0x20f   : > { %p5791_p7 = scmp.ne.s32.totalorder %s6842_s15, %s5790_s6  ;;  %p5795_p11 = scmp.lt.s32.totalorder %s6842_s15, %s6903_s3 }
 0x210   : > { %p5796_p12 = scmp.lt.s32.totalorder %s5794_s7, %s5790_s6 }
 0x211   : > { %p5792_p9 = pnand %p5791_p7, %p5946_p3 }
 0x212   : > { %p5797_p13 = por %p5796_p12, %p5795_p11 }
 0x213   : > { %p5793_p10 = pneg %p5792_p9 }
 0x215   : > { %p5798_p0 = pnand %p5797_p13, %p5793_p10 }
 0x217   : > { %5801 = shalt.err (!%p5798_p0)
}
 0x218   : > { %s5873_s10 = smov 64   ;;  %s5874_s21 = smov 4  }
 0x219   : > { %5653 = dma.vmem_to_hbm [thread:$0]  (%p5946_p3), %s6844_s11, 1024, %s6842_s15, %s6849_s16, %s5873_s10, %s5873_s10, %s5874_s21  }
 0x21a PF: > { %p5659_p1 = scmp.ge.s32.totalorder %s5868_s19, 2  ;;  %s4604_s24 = sand.u32 1, %s5840_s12  }
 0x21b   : > { %s4605_s27 = scalar_lea.sflag [#allocation3], %s4604_s24 }
 0x21c   : > { %p5656_p2 = pnand %p5659_p1, %p5955_p8 }
 0x21e   : > { %p5657_p4 = pneg %p5656_p2 }
 0x220   : > { %5835 = dma.done.wait (%p5657_p4), %s4605_s27, 1024  }
 0x221   : > { %5837 = vsyncadd (%p5657_p4), %s4605_s27, 4294966272  ;;  %s16_s19 = sadd.s32 1, %s5868_s19   ;;  %s6906_s12 = smov %s5844_s13 }
 0x222   : > { %p13_p5 = scmp.ge.s32.totalorder %s16_s19, 6   ;;  %s6907_s13 = smov %s5848_s14 }
 0x223   : > { %s6908_s14 = smov %s5964_s30  ;;  %s6909_s15 = smov %s5860_s17 }
 0x224   : > { %s6910_s16 = smov %s5864_s18  ;;  %s6911_s17 = smov %s6914_s22 }
 0x225   : > { %s6912_s18 = smov %s6918_s23  ;;  %15 = sbr.rel (!%p13_p5) target bundleno = 5 (0x5), region = 90 }
 0x22a   :  { %4610 = vsyncpa [#allocation3], 1 }
 0x22b   :  { %4612 = vsyncpa [#allocation3 + $0x1], 1 }

</bundles_post_ra>
